<compile_context>
chip_gen: v5e
topology: v5e:2x2
jax: 0.10.0
libtpu: 0.0.40
codegen_flags: <defaults>
</compile_context>

<pallas_src>
import functools

import jax
import jax.numpy as jnp
from jax import lax
from jax.experimental import pallas as pl
from jax.experimental.pallas import tpu as pltpu

EXPANSION = 4
BN_EPS = 1e-5


# ----------------------------------------------------------------------------
# Pallas kernel: grid = (batch, H-tiles).
# conv1(1x1)+bn+relu -> conv2(3x3,stride,pad1)+bn+relu -> conv3(1x1)+bn
# + shortcut (1x1 conv+bn projection, or identity), residual add + relu.
# ----------------------------------------------------------------------------
def _bottleneck_kernel(*refs, stride, n_h_tiles, has_projection, compute_dtype,
                       fuse_conv2):
    if has_projection:
        (x_ref, w1_ref, w2_ref, w3_ref, ws_ref,
         s1_ref, b1_ref, s2_ref, b2_ref, s3_ref, b3_ref, ss_ref, bs_ref,
         out_ref, h1p_ref) = refs
    else:
        (x_ref, w1_ref, w2_ref, w3_ref,
         s1_ref, b1_ref, s2_ref, b2_ref, s3_ref, b3_ref,
         out_ref, h1p_ref) = refs
        ws_ref = ss_ref = bs_ref = None

    ti = pl.program_id(1)
    H, W, cin = x_ref.shape[1], x_ref.shape[2], x_ref.shape[3]
    p = w1_ref.shape[1]
    tile_ho, wo, cout = out_ref.shape[1], out_ref.shape[2], out_ref.shape[3]
    t_in = tile_ho * stride
    cdt = compute_dtype

    def conv1_bn_relu(x2d):
        h = jnp.dot(x2d.astype(cdt), w1_ref[...],
                    preferred_element_type=jnp.float32)
        return jnp.maximum(h * s1_ref[...] + b1_ref[...], 0.0)

    # ---- conv1 (1x1) + bn1 + relu on the real rows of this tile -----------
    row0 = pl.multiple_of(ti * t_in, t_in)
    x_main = x_ref[0, pl.ds(row0, t_in)]                       # [t_in, W, Cin]
    h_main = conv1_bn_relu(x_main.reshape(t_in * W, cin))
    h_main = h_main.astype(cdt).reshape(t_in, W, p)

    # Halo rows (one above / one below the tile).  At the image boundary the
    # halo is the conv2 zero-padding, so the result is masked to zero.
    x_top = x_ref[0, pl.ds(jnp.maximum(row0 - 1, 0), 1)][0]    # [W, Cin]
    x_bot = x_ref[0, pl.ds(jnp.minimum(row0 + t_in, H - 1), 1)][0]
    h_top = jnp.where(ti > 0, conv1_bn_relu(x_top), 0.0).astype(cdt)
    h_bot = jnp.where(ti < n_h_tiles - 1, conv1_bn_relu(x_bot), 0.0).astype(cdt)

    # ---- assemble conv2's zero-padded input in a VMEM scratch ring ---------
    zcol = jnp.zeros((t_in + 2, 1, p), cdt)
    h1p_ref[:, pl.ds(0, 1)] = zcol                             # left pad col
    h1p_ref[:, pl.ds(W + 1, 1)] = zcol                         # right pad col
    h1p_ref[0, pl.ds(1, W)] = h_top                            # top halo / pad
    h1p_ref[pl.ds(1, t_in), pl.ds(1, W)] = h_main
    h1p_ref[t_in + 1, pl.ds(1, W)] = h_bot                     # bottom halo
    h1p = h1p_ref[...]                                         # [t_in+2, W+2, P]

    # ---- conv2 (3x3, stride, pad=1) + bn2 + relu ---------------------------
    # Resolve the three dx column shifts once, then taps are row slices.
    cols = []
    for dx in range(3):
        if stride == 1:
            cols.append(lax.slice(h1p, (0, dx, 0), (t_in + 2, dx + wo, p)))
        else:
            cols.append(lax.slice(h1p, (0, dx, 0),
                                  (t_in + 2, dx + stride * (wo - 1) + 1, p),
                                  (1, stride, 1)))
    taps = []
    for dy in range(3):
        for dx in range(3):
            if stride == 1:
                taps.append(lax.slice(cols[dx], (dy, 0, 0),
                                      (dy + tile_ho, wo, p)))
            else:
                taps.append(lax.slice(cols[dx], (dy, 0, 0),
                                      (dy + stride * (tile_ho - 1) + 1, wo, p),
                                      (stride, 1, 1)))

    mo = tile_ho * wo
    if fuse_conv2:
        # Single K = 9P MXU matmul on the im2col patch.
        patch = jnp.concatenate(taps, axis=-1).reshape(mo, 9 * p)
        h2 = jnp.dot(patch, w2_ref[...], preferred_element_type=jnp.float32)
    else:
        # Fallback: 9 accumulated dots (always lowers).
        h2 = jnp.zeros((mo, p), jnp.float32)
        for k, tap in enumerate(taps):
            h2 = h2 + jnp.dot(tap.reshape(mo, p), w2_ref[pl.ds(k * p, p), :],
                              preferred_element_type=jnp.float32)
    h2 = jnp.maximum(h2 * s2_ref[...] + b2_ref[...], 0.0)

    # ---- conv3 (1x1) + bn3 -------------------------------------------------
    h3 = jnp.dot(h2.astype(cdt), w3_ref[...],
                 preferred_element_type=jnp.float32)            # [mo, 4P]
    h3 = h3 * s3_ref[...] + b3_ref[...]

    # ---- shortcut ----------------------------------------------------------
    xs = lax.slice(x_main, (0, 0, 0),
                   (stride * (tile_ho - 1) + 1, stride * (wo - 1) + 1, cin),
                   (stride, stride, 1)).reshape(mo, cin)
    if has_projection:
        sc = jnp.dot(xs.astype(cdt), ws_ref[...],
                     preferred_element_type=jnp.float32)
        sc = sc * ss_ref[...] + bs_ref[...]
    else:
        sc = xs.astype(jnp.float32)      # identity: exact at input precision

    out = jnp.maximum(h3 + sc, 0.0)      # residual add + relu in f32
    out_ref[0] = out.reshape(tile_ho, wo, cout).astype(out_ref.dtype)


# ----------------------------------------------------------------------------
# Wrapper helpers.
# ----------------------------------------------------------------------------
def _fold_bn(gamma, beta, mean, var, eps=BN_EPS):
    scale = gamma / jnp.sqrt(var + eps)
    bias = beta - mean * scale
    return (scale.reshape(1, -1).astype(jnp.float32),
            bias.reshape(1, -1).astype(jnp.float32))


def _full_spec(shape):
    nd = len(shape)
    return pl.BlockSpec(shape, lambda n, t, _nd=nd: (0,) * _nd)


def _vmem_capacity_bytes():
    try:
        info = pltpu.get_tpu_info()
        cap = int(getattr(info, "vmem_capacity_bytes", 0) or 0)
        if cap > 0:
            return cap
    except Exception:
        pass
    return 64 * 2 ** 20      # conservative fallback (v7x has 64 MiB per core)


def _estimate_vmem_bytes(H, W, Wo, cin, p, cout, tile_ho, stride,
                         x_dtype, compute_dtype, out_dtype, has_projection):
    lane = lambda c: -(-c // 128) * 128
    sub = lambda r: -(-r // 8) * 8
    xb = jnp.dtype(x_dtype).itemsize
    cb = jnp.dtype(compute_dtype).itemsize
    ob = jnp.dtype(out_dtype).itemsize
    t_in = tile_ho * stride
    mo = tile_ho * Wo
    # Pipelined blocks are double-buffered by default.
    blocks = 2 * (H * sub(W) * lane(cin) * xb                 # resident image
                  + tile_ho * sub(Wo) * lane(cout) * ob)      # output tile
    weights = 2 * cb * (sub(cin) * lane(p) + sub(9 * p) * lane(p)
                        + sub(p) * lane(cout)
                        + (sub(cin) * lane(cout) if has_projection else 0))
    bn = 2 * 8 * 4 * (2 * lane(p) + 2 * lane(cout))
    interm = (t_in * sub(W) * lane(cin) * (xb + cb)           # x_main + cast
              + (t_in + 2) * sub(W) * lane(p) * (4 + cb)      # conv1 out + cast
              + (t_in + 2) * sub(W + 2) * lane(p) * cb        # h1p scratch
              + 3 * (t_in + 2) * sub(Wo) * lane(p) * cb       # dx-shifted cols
              + 2 * sub(mo) * lane(9 * p) * cb                # im2col patch
              + sub(mo) * (lane(p) * (4 + cb) + 3 * lane(cout) * 4
                           + lane(cin) * (xb + cb)))
    return blocks + weights + bn + 2 * interm


def _pick_tile_h(Ho, fits):
    for d in range(Ho, 0, -1):
        if Ho % d == 0 and fits(d):
            return d
    return 1


def bottleneck_forward_nhwc(x_nhwc, params, stride=1, *, tile_h_out=None,
                            compute_dtype=jnp.bfloat16, out_dtype=None):
    """Fused Bottleneck forward on an NHWC activation; returns NHWC."""
    N, H, W, cin = x_nhwc.shape
    if out_dtype is None:
        out_dtype = x_nhwc.dtype

    # PyTorch OIHW conv weights -> matmul-friendly layouts in compute dtype.
    w1 = jnp.transpose(params["w1"][:, :, 0, 0]).astype(compute_dtype)     # [Cin, P]
    p = w1.shape[1]
    w2 = jnp.transpose(params["w2"], (2, 3, 1, 0)).astype(compute_dtype)   # [3,3,P,P]
    w2 = w2.reshape(9 * p, p)                                  # rows = (dy,dx,Pin)
    w3 = jnp.transpose(params["w3"][:, :, 0, 0]).astype(compute_dtype)     # [P, 4P]
    cout = w3.shape[1]

    has_projection = params.get("ws") is not None
    if not has_projection and (stride != 1 or cin != cout):
        raise ValueError("identity shortcut requires stride == 1 and "
                         "in_planes == expansion * planes")

    s1, b1 = _fold_bn(*params["bn1"])
    s2, b2 = _fold_bn(*params["bn2"])
    s3, b3 = _fold_bn(*params["bn3"])

    if stride > 1 and (H % stride or W % stride):
        # TODO(synk): support odd spatial extents with stride > 1.
        raise ValueError("H and W must be divisible by stride")
    Ho = (H - 1) // stride + 1
    Wo = (W - 1) // stride + 1

    # Generation-aware VMEM budget (128 MiB parts -> ~96 MiB, 64 MiB -> ~48 MiB).
    vmem_cap = _vmem_capacity_bytes()
    vmem_budget = max(32 * 2 ** 20,
                      min(int(0.75 * vmem_cap), vmem_cap - 16 * 2 ** 20))

    def fits(t):
        return _estimate_vmem_bytes(H, W, Wo, cin, p, cout, t, stride,
                                    x_nhwc.dtype, compute_dtype, out_dtype,
                                    has_projection) <= vmem_budget

    if tile_h_out is None:
        tile_h_out = _pick_tile_h(Ho, fits)
    if Ho % tile_h_out:
        raise ValueError("tile_h_out must divide the output height")
    n_h_tiles = Ho // tile_h_out

    operands = [x_nhwc, w1, w2, w3]
    in_specs = [
        # Per-image (unpadded) input, resident in VMEM across the H-tile axis.
        pl.BlockSpec((1, H, W, cin), lambda n, t: (n, 0, 0, 0)),
        _full_spec(w1.shape), _full_spec(w2.shape), _full_spec(w3.shape),
    ]
    if has_projection:
        ws = jnp.transpose(params["ws"][:, :, 0, 0]).astype(compute_dtype)  # [Cin, 4P]
        ss, bs = _fold_bn(*params["bns"])
        operands.append(ws)
        in_specs.append(_full_spec(ws.shape))
    operands += [s1, b1, s2, b2, s3, b3]
    in_specs += [_full_spec(a.shape) for a in (s1, b1, s2, b2, s3, b3)]
    if has_projection:
        operands += [ss, bs]
        in_specs += [_full_spec(ss.shape), _full_spec(bs.shape)]

    # Megacore: when N >= 2 split on batch so the two cores never duplicate
    # the per-image resident input block (important on v7x).
    dims = ("parallel", "arbitrary") if N > 1 else ("parallel", "parallel")

    def build(fuse_conv2):
        kernel = functools.partial(
            _bottleneck_kernel, stride=stride, n_h_tiles=n_h_tiles,
            has_projection=has_projection, compute_dtype=compute_dtype,
            fuse_conv2=fuse_conv2)
        return pl.pallas_call(
            kernel,
            out_shape=jax.ShapeDtypeStruct((N, Ho, Wo, cout), out_dtype),
            grid=(N, n_h_tiles),
            in_specs=in_specs,
            out_specs=pl.BlockSpec((1, tile_h_out, Wo, cout),
                                   lambda n, t: (n, t, 0, 0)),
            scratch_shapes=[pltpu.VMEM(
                (tile_h_out * stride + 2, W + 2, p), compute_dtype)],
            compiler_params=pltpu.CompilerParams(
                dimension_semantics=dims,
                vmem_limit_bytes=int(vmem_budget)),
        )

    try:
        return build(True)(*operands)
    except Exception:
        # Fall back to the 9-tap accumulate path if the fused im2col
        # (lane-dim concatenate) does not lower on this toolchain.
        return build(False)(*operands)


def bottleneck_forward(x_nchw, params, stride=1, **kwargs):
    """NCHW (PyTorch-layout) convenience wrapper.

    For chaining many blocks, keep activations NHWC (+ bf16) and call
    bottleneck_forward_nhwc directly to avoid per-block layout round-trips
    and f32 output traffic.
    """
    x = jnp.transpose(x_nchw, (0, 2, 3, 1))
    kwargs.setdefault("out_dtype", jnp.float32)
    out = bottleneck_forward_nhwc(x, params, stride, **kwargs)
    return jnp.transpose(out, (0, 3, 1, 2))


# ----------------------------------------------------------------------------
# Pure-JAX reference (PyTorch eval-mode forward).  staged_dtype=bf16 mimics
# the kernel's bf16-input / f32-accumulate numerics for tight comparison.
# ----------------------------------------------------------------------------
def _reference(x, params, stride, eps=BN_EPS, staged_dtype=None):
    if staged_dtype is None:
        cast = lambda a: a.astype(jnp.float32)
    else:
        cast = lambda a: a.astype(staged_dtype).astype(jnp.float32)

    def conv(h, w, s=1, pad=0):
        return lax.conv_general_dilated(
            cast(h), cast(w), (s, s), [(pad, pad), (pad, pad)],
            dimension_numbers=("NCHW", "OIHW", "NCHW"))

    def bn(h, g, b, m, v):
        g, b, m, v = (t[None, :, None, None] for t in (g, b, m, v))
        return (h - m) / jnp.sqrt(v + eps) * g + b

    out = jax.nn.relu(bn(conv(x, params["w1"]), *params["bn1"]))
    out = jax.nn.relu(bn(conv(out, params["w2"], stride, 1), *params["bn2"]))
    out = bn(conv(out, params["w3"]), *params["bn3"])
    if params.get("ws") is not None:
        sc = bn(conv(x, params["ws"], stride), *params["bns"])
    else:
        sc = x.astype(jnp.float32)
    return jax.nn.relu(out + sc)


def _init_params(key, in_planes, planes, projection=True):
    cout = EXPANSION * planes
    ks = jax.random.split(key, 8)

    def bn_params(k, c):
        k1, k2, k3, k4 = jax.random.split(k, 4)
        return (jax.random.uniform(k1, (c,), minval=0.5, maxval=1.5),
                0.1 * jax.random.normal(k2, (c,)),
                0.1 * jax.random.normal(k3, (c,)),
                jax.random.uniform(k4, (c,), minval=0.5, maxval=1.5))

    params = {
        "w1": 0.2 * jax.random.normal(ks[0], (planes, in_planes, 1, 1)),
        "w2": 0.2 * jax.random.normal(ks[1], (planes, planes, 3, 3)),
        "w3": 0.2 * jax.random.normal(ks[2], (cout, planes, 1, 1)),
        "bn1": bn_params(ks[4], planes),
        "bn2": bn_params(ks[5], planes),
        "bn3": bn_params(ks[6], cout),
        "ws": None,
        "bns": None,
    }
    if projection:
        params["ws"] = 0.2 * jax.random.normal(ks[3], (cout, in_planes, 1, 1))
        params["bns"] = bn_params(ks[7], cout)
    return params


if __name__ == "__main__":
    key = jax.random.PRNGKey(0)
    k1, k2, k3, kp1, kp2, kp3 = jax.random.split(key, 6)

    # Case A: projection shortcut, stride 1, bf16 MXU inputs, 4 H-tiles
    # (exercises first / interior / last halo rows).
    xA = jax.random.normal(k1, (2, 4, 16, 16), dtype=jnp.float32)
    pA = _init_params(kp1, 4, 4, projection=True)
    outA = jax.block_until_ready(
        bottleneck_forward(xA, pA, stride=1, tile_h_out=4,
                           compute_dtype=jnp.bfloat16))
    refA = _reference(xA, pA, 1, staged_dtype=jnp.bfloat16)
    assert outA.shape == (2, 16, 16, 16)
    assert jnp.allclose(outA, refA, atol=1e-2, rtol=1e-2), (
        float(jnp.max(jnp.abs(outA - refA))))

    # Case B: projection shortcut, stride 2, bf16 compute AND bf16 output.
    xB = jax.random.normal(k2, (2, 8, 16, 16), dtype=jnp.float32)
    pB = _init_params(kp2, 8, 4, projection=True)
    outB = jax.block_until_ready(
        bottleneck_forward(xB, pB, stride=2, tile_h_out=2,
                           compute_dtype=jnp.bfloat16,
                           out_dtype=jnp.bfloat16))
    refB = _reference(xB, pB, 2, staged_dtype=jnp.bfloat16)
    assert outB.shape == (2, 16, 8, 8)
    assert jnp.allclose(outB.astype(jnp.float32), refB, atol=3e-2, rtol=3e-2), (
        float(jnp.max(jnp.abs(outB.astype(jnp.float32) - refB))))

    # Case C: identity shortcut (in_planes == 4*planes, stride 1), f32 compute,
    # auto (whole-image) H tile — exact eval-mode PyTorch semantics.
    xC = jax.random.normal(k3, (2, 16, 16, 16), dtype=jnp.float32)
    pC = _init_params(kp3, 16, 4, projection=False)
    outC = jax.block_until_ready(
        bottleneck_forward(xC, pC, stride=1, compute_dtype=jnp.float32))
    refC = _reference(xC, pC, 1)
    assert outC.shape == (2, 16, 16, 16)
    assert jnp.allclose(outC, refC, atol=1e-4, rtol=1e-4), (
        float(jnp.max(jnp.abs(outC - refC))))

    print("KERNEL_OK")
</pallas_src>

<mosaic_0001>
module attributes {stable_mosaic.version = 11 : i64} {
  func.func @_bottleneck_kernel(%arg0: i32, %arg1: i32, %arg2: memref<1x16x16x4xf32, #tpu.memory_space<vmem>>, %arg3: memref<4x4xbf16, #tpu.memory_space<vmem>>, %arg4: memref<36x4xbf16, #tpu.memory_space<vmem>>, %arg5: memref<4x16xbf16, #tpu.memory_space<vmem>>, %arg6: memref<4x16xbf16, #tpu.memory_space<vmem>>, %arg7: memref<1x4xf32, #tpu.memory_space<vmem>>, %arg8: memref<1x4xf32, #tpu.memory_space<vmem>>, %arg9: memref<1x4xf32, #tpu.memory_space<vmem>>, %arg10: memref<1x4xf32, #tpu.memory_space<vmem>>, %arg11: memref<1x16xf32, #tpu.memory_space<vmem>>, %arg12: memref<1x16xf32, #tpu.memory_space<vmem>>, %arg13: memref<1x16xf32, #tpu.memory_space<vmem>>, %arg14: memref<1x16xf32, #tpu.memory_space<vmem>>, %arg15: memref<1x4x16x16xf32, #tpu.memory_space<vmem>>, %arg16: memref<6x18x4xbf16, #tpu.memory_space<vmem>>) attributes {dimension_semantics = [#tpu.dimension_semantics<parallel>, #tpu.dimension_semantics<arbitrary>], iteration_bounds = array<i64: 2, 4>, scalar_prefetch = 0 : i64, scratch_operands = 1 : i64, tpu.core_type = #tpu.core_type<tc>, window_params = [{transform_indices = @transform_0, window_bounds = array<i64: 1, 16, 16, 4>}, {pipeline_mode = #tpu.pipeline_mode<synchronous>, transform_indices = @transform_1, window_bounds = array<i64: 4, 4>}, {pipeline_mode = #tpu.pipeline_mode<synchronous>, transform_indices = @transform_2, window_bounds = array<i64: 36, 4>}, {pipeline_mode = #tpu.pipeline_mode<synchronous>, transform_indices = @transform_3, window_bounds = array<i64: 4, 16>}, {pipeline_mode = #tpu.pipeline_mode<synchronous>, transform_indices = @transform_4, window_bounds = array<i64: 4, 16>}, {pipeline_mode = #tpu.pipeline_mode<synchronous>, transform_indices = @transform_5, window_bounds = array<i64: 1, 4>}, {pipeline_mode = #tpu.pipeline_mode<synchronous>, transform_indices = @transform_6, window_bounds = array<i64: 1, 4>}, {pipeline_mode = #tpu.pipeline_mode<synchronous>, transform_indices = @transform_7, window_bounds = array<i64: 1, 4>}, {pipeline_mode = #tpu.pipeline_mode<synchronous>, transform_indices = @transform_8, window_bounds = array<i64: 1, 4>}, {pipeline_mode = #tpu.pipeline_mode<synchronous>, transform_indices = @transform_9, window_bounds = array<i64: 1, 16>}, {pipeline_mode = #tpu.pipeline_mode<synchronous>, transform_indices = @transform_10, window_bounds = array<i64: 1, 16>}, {pipeline_mode = #tpu.pipeline_mode<synchronous>, transform_indices = @transform_11, window_bounds = array<i64: 1, 16>}, {pipeline_mode = #tpu.pipeline_mode<synchronous>, transform_indices = @transform_12, window_bounds = array<i64: 1, 16>}, {transform_indices = @transform_13, window_bounds = array<i64: 1, 4, 16, 16>}]} {
    %c4_i32 = arith.constant 4 : i32
    %0 = arith.muli %arg1, %c4_i32 : i32
    %1 = tpu.assume_multiple %0, 4 : i32
    %c0 = arith.constant 0 : index
    %2 = arith.index_cast %1 : i32 to index
    %c0_0 = arith.constant 0 : index
    %c0_1 = arith.constant 0 : index
    %3 = vector.load %arg2[%c0, %2, %c0_0, %c0_1] : memref<1x16x16x4xf32, #tpu.memory_space<vmem>>, vector<1x4x16x4xf32>
    %4 = vector.shape_cast %3 : vector<1x4x16x4xf32> to vector<4x16x4xf32>
    %5 = vector.shape_cast %4 : vector<4x16x4xf32> to vector<64x4xf32>
    %6 = arith.truncf %5 : vector<64x4xf32> to vector<64x4xbf16>
    %c0_2 = arith.constant 0 : index
    %c0_3 = arith.constant 0 : index
    %7 = vector.load %arg3[%c0_2, %c0_3] : memref<4x4xbf16, #tpu.memory_space<vmem>>, vector<4x4xbf16>
    %cst = arith.constant dense<0.000000e+00> : vector<64x4xf32>
    %8 = tpu.matmul %6, %7, %cst {dimension_numbers = #tpu.dot_dimension_numbers<[1], [0], [0], [1], [0, 0, 1, 1], [], []>} : vector<64x4xbf16>, vector<4x4xbf16>, vector<64x4xf32> -> vector<64x4xf32>
    %c0_4 = arith.constant 0 : index
    %c0_5 = arith.constant 0 : index
    %9 = vector.load %arg7[%c0_4, %c0_5] : memref<1x4xf32, #tpu.memory_space<vmem>>, vector<1x4xf32>
    %10 = vector.broadcast %9 : vector<1x4xf32> to vector<64x4xf32>
    %11 = arith.mulf %8, %10 : vector<64x4xf32>
    %c0_6 = arith.constant 0 : index
    %c0_7 = arith.constant 0 : index
    %12 = vector.load %arg8[%c0_6, %c0_7] : memref<1x4xf32, #tpu.memory_space<vmem>>, vector<1x4xf32>
    %13 = vector.broadcast %12 : vector<1x4xf32> to vector<64x4xf32>
    %14 = arith.addf %11, %13 : vector<64x4xf32>
    %cst_8 = arith.constant 0.000000e+00 : f32
    %15 = vector.broadcast %cst_8 : f32 to vector<64x4xf32>
    %16 = arith.maximumf %14, %15 : vector<64x4xf32>
    %17 = arith.truncf %16 : vector<64x4xf32> to vector<64x4xbf16>
    %18 = vector.shape_cast %17 : vector<64x4xbf16> to vector<4x16x4xbf16>
    %c1_i32 = arith.constant 1 : i32
    %19 = arith.subi %1, %c1_i32 : i32
    %c0_i32 = arith.constant 0 : i32
    %20 = arith.maxsi %19, %c0_i32 : i32
    %c0_9 = arith.constant 0 : index
    %21 = arith.index_cast %20 : i32 to index
    %c0_10 = arith.constant 0 : index
    %c0_11 = arith.constant 0 : index
    %22 = vector.load %arg2[%c0_9, %21, %c0_10, %c0_11] : memref<1x16x16x4xf32, #tpu.memory_space<vmem>>, vector<1x1x16x4xf32>
    %23 = vector.shape_cast %22 : vector<1x1x16x4xf32> to vector<1x16x4xf32>
    %24 = vector.shape_cast %23 : vector<1x16x4xf32> to vector<16x4xf32>
    %c4_i32_12 = arith.constant 4 : i32
    %25 = arith.addi %1, %c4_i32_12 : i32
    %c15_i32 = arith.constant 15 : i32
    %26 = arith.minsi %25, %c15_i32 : i32
    %c0_13 = arith.constant 0 : index
    %27 = arith.index_cast %26 : i32 to index
    %c0_14 = arith.constant 0 : index
    %c0_15 = arith.constant 0 : index
    %28 = vector.load %arg2[%c0_13, %27, %c0_14, %c0_15] : memref<1x16x16x4xf32, #tpu.memory_space<vmem>>, vector<1x1x16x4xf32>
    %29 = vector.shape_cast %28 : vector<1x1x16x4xf32> to vector<1x16x4xf32>
    %30 = vector.shape_cast %29 : vector<1x16x4xf32> to vector<16x4xf32>
    %c0_i32_16 = arith.constant 0 : i32
    %31 = arith.cmpi sgt, %arg1, %c0_i32_16 : i32
    %32 = arith.truncf %24 : vector<16x4xf32> to vector<16x4xbf16>
    %c0_17 = arith.constant 0 : index
    %c0_18 = arith.constant 0 : index
    %33 = vector.load %arg3[%c0_17, %c0_18] : memref<4x4xbf16, #tpu.memory_space<vmem>>, vector<4x4xbf16>
    %cst_19 = arith.constant dense<0.000000e+00> : vector<16x4xf32>
    %34 = tpu.matmul %32, %33, %cst_19 {dimension_numbers = #tpu.dot_dimension_numbers<[1], [0], [0], [1], [0, 0, 1, 1], [], []>} : vector<16x4xbf16>, vector<4x4xbf16>, vector<16x4xf32> -> vector<16x4xf32>
    %c0_20 = arith.constant 0 : index
    %c0_21 = arith.constant 0 : index
    %35 = vector.load %arg7[%c0_20, %c0_21] : memref<1x4xf32, #tpu.memory_space<vmem>>, vector<1x4xf32>
    %36 = vector.broadcast %35 : vector<1x4xf32> to vector<16x4xf32>
    %37 = arith.mulf %34, %36 : vector<16x4xf32>
    %c0_22 = arith.constant 0 : index
    %c0_23 = arith.constant 0 : index
    %38 = vector.load %arg8[%c0_22, %c0_23] : memref<1x4xf32, #tpu.memory_space<vmem>>, vector<1x4xf32>
    %39 = vector.broadcast %38 : vector<1x4xf32> to vector<16x4xf32>
    %40 = arith.addf %37, %39 : vector<16x4xf32>
    %cst_24 = arith.constant 0.000000e+00 : f32
    %41 = vector.broadcast %cst_24 : f32 to vector<16x4xf32>
    %42 = arith.maximumf %40, %41 : vector<16x4xf32>
    %cst_25 = arith.constant 0.000000e+00 : f32
    %43 = vector.broadcast %cst_25 : f32 to vector<16x4xf32>
    %44 = arith.select %31, %42, %43 : vector<16x4xf32>
    %45 = arith.truncf %44 : vector<16x4xf32> to vector<16x4xbf16>
    %c3_i32 = arith.constant 3 : i32
    %46 = arith.cmpi slt, %arg1, %c3_i32 : i32
    %47 = arith.truncf %30 : vector<16x4xf32> to vector<16x4xbf16>
    %c0_26 = arith.constant 0 : index
    %c0_27 = arith.constant 0 : index
    %48 = vector.load %arg3[%c0_26, %c0_27] : memref<4x4xbf16, #tpu.memory_space<vmem>>, vector<4x4xbf16>
    %cst_28 = arith.constant dense<0.000000e+00> : vector<16x4xf32>
    %49 = tpu.matmul %47, %48, %cst_28 {dimension_numbers = #tpu.dot_dimension_numbers<[1], [0], [0], [1], [0, 0, 1, 1], [], []>} : vector<16x4xbf16>, vector<4x4xbf16>, vector<16x4xf32> -> vector<16x4xf32>
    %c0_29 = arith.constant 0 : index
    %c0_30 = arith.constant 0 : index
    %50 = vector.load %arg7[%c0_29, %c0_30] : memref<1x4xf32, #tpu.memory_space<vmem>>, vector<1x4xf32>
    %51 = vector.broadcast %50 : vector<1x4xf32> to vector<16x4xf32>
    %52 = arith.mulf %49, %51 : vector<16x4xf32>
    %c0_31 = arith.constant 0 : index
    %c0_32 = arith.constant 0 : index
    %53 = vector.load %arg8[%c0_31, %c0_32] : memref<1x4xf32, #tpu.memory_space<vmem>>, vector<1x4xf32>
    %54 = vector.broadcast %53 : vector<1x4xf32> to vector<16x4xf32>
    %55 = arith.addf %52, %54 : vector<16x4xf32>
    %cst_33 = arith.constant 0.000000e+00 : f32
    %56 = vector.broadcast %cst_33 : f32 to vector<16x4xf32>
    %57 = arith.maximumf %55, %56 : vector<16x4xf32>
    %cst_34 = arith.constant 0.000000e+00 : f32
    %58 = vector.broadcast %cst_34 : f32 to vector<16x4xf32>
    %59 = arith.select %46, %57, %58 : vector<16x4xf32>
    %60 = arith.truncf %59 : vector<16x4xf32> to vector<16x4xbf16>
    %cst_35 = arith.constant 0.000000e+00 : bf16
    %61 = vector.broadcast %cst_35 : bf16 to vector<6x1x4xbf16>
    %c0_36 = arith.constant 0 : index
    %c0_37 = arith.constant 0 : index
    %c0_38 = arith.constant 0 : index
    %62 = vector.load %arg16[%c0_36, %c0_37, %c0_38] : memref<6x18x4xbf16, #tpu.memory_space<vmem>>, vector<6x1x4xbf16>
    tpu.vector_store %arg16[%c0_36, %c0_37, %c0_38], %61 {strides = array<i32>} : memref<6x18x4xbf16, #tpu.memory_space<vmem>>, vector<6x1x4xbf16>,
    %c0_39 = arith.constant 0 : index
    %c17 = arith.constant 17 : index
    %c0_40 = arith.constant 0 : index
    %63 = vector.load %arg16[%c0_39, %c17, %c0_40] : memref<6x18x4xbf16, #tpu.memory_space<vmem>>, vector<6x1x4xbf16>
    tpu.vector_store %arg16[%c0_39, %c17, %c0_40], %61 {strides = array<i32>} : memref<6x18x4xbf16, #tpu.memory_space<vmem>>, vector<6x1x4xbf16>,
    %c0_41 = arith.constant 0 : index
    %c1 = arith.constant 1 : index
    %c0_42 = arith.constant 0 : index
    %64 = vector.load %arg16[%c0_41, %c1, %c0_42] : memref<6x18x4xbf16, #tpu.memory_space<vmem>>, vector<1x16x4xbf16>
    %65 = vector.shape_cast %64 : vector<1x16x4xbf16> to vector<16x4xbf16>
    %66 = vector.shape_cast %45 : vector<16x4xbf16> to vector<1x16x4xbf16>
    tpu.vector_store %arg16[%c0_41, %c1, %c0_42], %66 {strides = array<i32>} : memref<6x18x4xbf16, #tpu.memory_space<vmem>>, vector<1x16x4xbf16>,
    %c1_43 = arith.constant 1 : index
    %c1_44 = arith.constant 1 : index
    %c0_45 = arith.constant 0 : index
    %67 = vector.load %arg16[%c1_43, %c1_44, %c0_45] : memref<6x18x4xbf16, #tpu.memory_space<vmem>>, vector<4x16x4xbf16>
    tpu.vector_store %arg16[%c1_43, %c1_44, %c0_45], %18 {strides = array<i32>} : memref<6x18x4xbf16, #tpu.memory_space<vmem>>, vector<4x16x4xbf16>,
    %c5 = arith.constant 5 : index
    %c1_46 = arith.constant 1 : index
    %c0_47 = arith.constant 0 : index
    %68 = vector.load %arg16[%c5, %c1_46, %c0_47] : memref<6x18x4xbf16, #tpu.memory_space<vmem>>, vector<1x16x4xbf16>
    %69 = vector.shape_cast %68 : vector<1x16x4xbf16> to vector<16x4xbf16>
    %70 = vector.shape_cast %60 : vector<16x4xbf16> to vector<1x16x4xbf16>
    tpu.vector_store %arg16[%c5, %c1_46, %c0_47], %70 {strides = array<i32>} : memref<6x18x4xbf16, #tpu.memory_space<vmem>>, vector<1x16x4xbf16>,
    %c0_48 = arith.constant 0 : index
    %c0_49 = arith.constant 0 : index
    %c0_50 = arith.constant 0 : index
    %71 = vector.load %arg16[%c0_48, %c0_49, %c0_50] : memref<6x18x4xbf16, #tpu.memory_space<vmem>>, vector<6x18x4xbf16>
    %72 = vector.extract_strided_slice %71 {offsets = [0, 0, 0], sizes = [6, 16, 4], strides = [1, 1, 1]} : vector<6x18x4xbf16> to vector<6x16x4xbf16>
    %73 = vector.extract_strided_slice %71 {offsets = [0, 1, 0], sizes = [6, 16, 4], strides = [1, 1, 1]} : vector<6x18x4xbf16> to vector<6x16x4xbf16>
    %74 = vector.extract_strided_slice %71 {offsets = [0, 2, 0], sizes = [6, 16, 4], strides = [1, 1, 1]} : vector<6x18x4xbf16> to vector<6x16x4xbf16>
    %75 = vector.extract_strided_slice %72 {offsets = [0, 0, 0], sizes = [4, 16, 4], strides = [1, 1, 1]} : vector<6x16x4xbf16> to vector<4x16x4xbf16>
    %76 = vector.extract_strided_slice %73 {offsets = [0, 0, 0], sizes = [4, 16, 4], strides = [1, 1, 1]} : vector<6x16x4xbf16> to vector<4x16x4xbf16>
    %77 = vector.extract_strided_slice %74 {offsets = [0, 0, 0], sizes = [4, 16, 4], strides = [1, 1, 1]} : vector<6x16x4xbf16> to vector<4x16x4xbf16>
    %78 = vector.extract_strided_slice %72 {offsets = [1, 0, 0], sizes = [4, 16, 4], strides = [1, 1, 1]} : vector<6x16x4xbf16> to vector<4x16x4xbf16>
    %79 = vector.extract_strided_slice %73 {offsets = [1, 0, 0], sizes = [4, 16, 4], strides = [1, 1, 1]} : vector<6x16x4xbf16> to vector<4x16x4xbf16>
    %80 = vector.extract_strided_slice %74 {offsets = [1, 0, 0], sizes = [4, 16, 4], strides = [1, 1, 1]} : vector<6x16x4xbf16> to vector<4x16x4xbf16>
    %81 = vector.extract_strided_slice %72 {offsets = [2, 0, 0], sizes = [4, 16, 4], strides = [1, 1, 1]} : vector<6x16x4xbf16> to vector<4x16x4xbf16>
    %82 = vector.extract_strided_slice %73 {offsets = [2, 0, 0], sizes = [4, 16, 4], strides = [1, 1, 1]} : vector<6x16x4xbf16> to vector<4x16x4xbf16>
    %83 = vector.extract_strided_slice %74 {offsets = [2, 0, 0], sizes = [4, 16, 4], strides = [1, 1, 1]} : vector<6x16x4xbf16> to vector<4x16x4xbf16>
    %84 = tpu.concatenate %75, %76, %77, %78, %79, %80, %81, %82, %83 in 2 : vector<4x16x4xbf16>, vector<4x16x4xbf16>, vector<4x16x4xbf16>, vector<4x16x4xbf16>, vector<4x16x4xbf16>, vector<4x16x4xbf16>, vector<4x16x4xbf16>, vector<4x16x4xbf16>, vector<4x16x4xbf16> -> vector<4x16x36xbf16>
    %85 = vector.shape_cast %84 : vector<4x16x36xbf16> to vector<64x36xbf16>
    %c0_51 = arith.constant 0 : index
    %c0_52 = arith.constant 0 : index
    %86 = vector.load %arg4[%c0_51, %c0_52] : memref<36x4xbf16, #tpu.memory_space<vmem>>, vector<36x4xbf16>
    %cst_53 = arith.constant dense<0.000000e+00> : vector<64x4xf32>
    %87 = tpu.matmul %85, %86, %cst_53 {dimension_numbers = #tpu.dot_dimension_numbers<[1], [0], [0], [1], [0, 0, 1, 1], [], []>} : vector<64x36xbf16>, vector<36x4xbf16>, vector<64x4xf32> -> vector<64x4xf32>
    %c0_54 = arith.constant 0 : index
    %c0_55 = arith.constant 0 : index
    %88 = vector.load %arg9[%c0_54, %c0_55] : memref<1x4xf32, #tpu.memory_space<vmem>>, vector<1x4xf32>
    %89 = vector.broadcast %88 : vector<1x4xf32> to vector<64x4xf32>
    %90 = arith.mulf %87, %89 : vector<64x4xf32>
    %c0_56 = arith.constant 0 : index
    %c0_57 = arith.constant 0 : index
    %91 = vector.load %arg10[%c0_56, %c0_57] : memref<1x4xf32, #tpu.memory_space<vmem>>, vector<1x4xf32>
    %92 = vector.broadcast %91 : vector<1x4xf32> to vector<64x4xf32>
    %93 = arith.addf %90, %92 : vector<64x4xf32>
    %cst_58 = arith.constant 0.000000e+00 : f32
    %94 = vector.broadcast %cst_58 : f32 to vector<64x4xf32>
    %95 = arith.maximumf %93, %94 : vector<64x4xf32>
    %96 = arith.truncf %95 : vector<64x4xf32> to vector<64x4xbf16>
    %c0_59 = arith.constant 0 : index
    %c0_60 = arith.constant 0 : index
    %97 = vector.load %arg5[%c0_59, %c0_60] : memref<4x16xbf16, #tpu.memory_space<vmem>>, vector<4x16xbf16>
    %cst_61 = arith.constant dense<0.000000e+00> : vector<64x16xf32>
    %98 = tpu.matmul %96, %97, %cst_61 {dimension_numbers = #tpu.dot_dimension_numbers<[1], [0], [0], [1], [0, 0, 1, 1], [], []>} : vector<64x4xbf16>, vector<4x16xbf16>, vector<64x16xf32> -> vector<64x16xf32>
    %c0_62 = arith.constant 0 : index
    %c0_63 = arith.constant 0 : index
    %99 = vector.load %arg11[%c0_62, %c0_63] : memref<1x16xf32, #tpu.memory_space<vmem>>, vector<1x16xf32>
    %100 = vector.broadcast %99 : vector<1x16xf32> to vector<64x16xf32>
    %101 = arith.mulf %98, %100 : vector<64x16xf32>
    %c0_64 = arith.constant 0 : index
    %c0_65 = arith.constant 0 : index
    %102 = vector.load %arg12[%c0_64, %c0_65] : memref<1x16xf32, #tpu.memory_space<vmem>>, vector<1x16xf32>
    %103 = vector.broadcast %102 : vector<1x16xf32> to vector<64x16xf32>
    %104 = arith.addf %101, %103 : vector<64x16xf32>
    %105 = vector.extract_strided_slice %4 {offsets = [0, 0, 0], sizes = [4, 16, 4], strides = [1, 1, 1]} : vector<4x16x4xf32> to vector<4x16x4xf32>
    %106 = vector.shape_cast %105 : vector<4x16x4xf32> to vector<64x4xf32>
    %107 = arith.truncf %106 : vector<64x4xf32> to vector<64x4xbf16>
    %c0_66 = arith.constant 0 : index
    %c0_67 = arith.constant 0 : index
    %108 = vector.load %arg6[%c0_66, %c0_67] : memref<4x16xbf16, #tpu.memory_space<vmem>>, vector<4x16xbf16>
    %cst_68 = arith.constant dense<0.000000e+00> : vector<64x16xf32>
    %109 = tpu.matmul %107, %108, %cst_68 {dimension_numbers = #tpu.dot_dimension_numbers<[1], [0], [0], [1], [0, 0, 1, 1], [], []>} : vector<64x4xbf16>, vector<4x16xbf16>, vector<64x16xf32> -> vector<64x16xf32>
    %c0_69 = arith.constant 0 : index
    %c0_70 = arith.constant 0 : index
    %110 = vector.load %arg13[%c0_69, %c0_70] : memref<1x16xf32, #tpu.memory_space<vmem>>, vector<1x16xf32>
    %111 = vector.broadcast %110 : vector<1x16xf32> to vector<64x16xf32>
    %112 = arith.mulf %109, %111 : vector<64x16xf32>
    %c0_71 = arith.constant 0 : index
    %c0_72 = arith.constant 0 : index
    %113 = vector.load %arg14[%c0_71, %c0_72] : memref<1x16xf32, #tpu.memory_space<vmem>>, vector<1x16xf32>
    %114 = vector.broadcast %113 : vector<1x16xf32> to vector<64x16xf32>
    %115 = arith.addf %112, %114 : vector<64x16xf32>
    %116 = arith.addf %104, %115 : vector<64x16xf32>
    %cst_73 = arith.constant 0.000000e+00 : f32
    %117 = vector.broadcast %cst_73 : f32 to vector<64x16xf32>
    %118 = arith.maximumf %116, %117 : vector<64x16xf32>
    %119 = vector.shape_cast %118 : vector<64x16xf32> to vector<4x16x16xf32>
    %c0_74 = arith.constant 0 : index
    %c0_75 = arith.constant 0 : index
    %c0_76 = arith.constant 0 : index
    %c0_77 = arith.constant 0 : index
    %120 = vector.load %arg15[%c0_74, %c0_75, %c0_76, %c0_77] : memref<1x4x16x16xf32, #tpu.memory_space<vmem>>, vector<1x4x16x16xf32>
    %121 = vector.shape_cast %120 : vector<1x4x16x16xf32> to vector<4x16x16xf32>
    %122 = vector.shape_cast %119 : vector<4x16x16xf32> to vector<1x4x16x16xf32>
    tpu.vector_store %arg15[%c0_74, %c0_75, %c0_76, %c0_77], %122 {strides = array<i32>} : memref<1x4x16x16xf32, #tpu.memory_space<vmem>>, vector<1x4x16x16xf32>,
    return
  }
  func.func @transform_0(%arg0: i32, %arg1: i32) -> (i32, i32, i32, i32) {
    %c0_i32 = arith.constant 0 : i32
    %c0_i32_0 = arith.constant 0 : i32
    %c0_i32_1 = arith.constant 0 : i32
    %c0_i32_2 = arith.constant 0 : i32
    return %arg0, %c0_i32, %c0_i32_0, %c0_i32_1 : i32, i32, i32, i32
  }
  func.func @transform_1(%arg0: i32, %arg1: i32) -> (i32, i32) {
    %c0_i32 = arith.constant 0 : i32
    %c0_i32_0 = arith.constant 0 : i32
    %c0_i32_1 = arith.constant 0 : i32
    return %c0_i32, %c0_i32_0 : i32, i32
  }
  func.func @transform_2(%arg0: i32, %arg1: i32) -> (i32, i32) {
    %c0_i32 = arith.constant 0 : i32
    %c0_i32_0 = arith.constant 0 : i32
    %c0_i32_1 = arith.constant 0 : i32
    return %c0_i32, %c0_i32_0 : i32, i32
  }
  func.func @transform_3(%arg0: i32, %arg1: i32) -> (i32, i32) {
    %c0_i32 = arith.constant 0 : i32
    %c0_i32_0 = arith.constant 0 : i32
    %c0_i32_1 = arith.constant 0 : i32
    return %c0_i32, %c0_i32_0 : i32, i32
  }
  func.func @transform_4(%arg0: i32, %arg1: i32) -> (i32, i32) {
    %c0_i32 = arith.constant 0 : i32
    %c0_i32_0 = arith.constant 0 : i32
    %c0_i32_1 = arith.constant 0 : i32
    return %c0_i32, %c0_i32_0 : i32, i32
  }
  func.func @transform_5(%arg0: i32, %arg1: i32) -> (i32, i32) {
    %c0_i32 = arith.constant 0 : i32
    %c0_i32_0 = arith.constant 0 : i32
    %c0_i32_1 = arith.constant 0 : i32
    return %c0_i32, %c0_i32_0 : i32, i32
  }
  func.func @transform_6(%arg0: i32, %arg1: i32) -> (i32, i32) {
    %c0_i32 = arith.constant 0 : i32
    %c0_i32_0 = arith.constant 0 : i32
    %c0_i32_1 = arith.constant 0 : i32
    return %c0_i32, %c0_i32_0 : i32, i32
  }
  func.func @transform_7(%arg0: i32, %arg1: i32) -> (i32, i32) {
    %c0_i32 = arith.constant 0 : i32
    %c0_i32_0 = arith.constant 0 : i32
    %c0_i32_1 = arith.constant 0 : i32
    return %c0_i32, %c0_i32_0 : i32, i32
  }
  func.func @transform_8(%arg0: i32, %arg1: i32) -> (i32, i32) {
    %c0_i32 = arith.constant 0 : i32
    %c0_i32_0 = arith.constant 0 : i32
    %c0_i32_1 = arith.constant 0 : i32
    return %c0_i32, %c0_i32_0 : i32, i32
  }
  func.func @transform_9(%arg0: i32, %arg1: i32) -> (i32, i32) {
    %c0_i32 = arith.constant 0 : i32
    %c0_i32_0 = arith.constant 0 : i32
    %c0_i32_1 = arith.constant 0 : i32
    return %c0_i32, %c0_i32_0 : i32, i32
  }
  func.func @transform_10(%arg0: i32, %arg1: i32) -> (i32, i32) {
    %c0_i32 = arith.constant 0 : i32
    %c0_i32_0 = arith.constant 0 : i32
    %c0_i32_1 = arith.constant 0 : i32
    return %c0_i32, %c0_i32_0 : i32, i32
  }
  func.func @transform_11(%arg0: i32, %arg1: i32) -> (i32, i32) {
    %c0_i32 = arith.constant 0 : i32
    %c0_i32_0 = arith.constant 0 : i32
    %c0_i32_1 = arith.constant 0 : i32
    return %c0_i32, %c0_i32_0 : i32, i32
  }
  func.func @transform_12(%arg0: i32, %arg1: i32) -> (i32, i32) {
    %c0_i32 = arith.constant 0 : i32
    %c0_i32_0 = arith.constant 0 : i32
    %c0_i32_1 = arith.constant 0 : i32
    return %c0_i32, %c0_i32_0 : i32, i32
  }
  func.func @transform_13(%arg0: i32, %arg1: i32) -> (i32, i32, i32, i32) {
    %c0_i32 = arith.constant 0 : i32
    %c0_i32_0 = arith.constant 0 : i32
    %c0_i32_1 = arith.constant 0 : i32
    return %arg0, %arg1, %c0_i32, %c0_i32_0 : i32, i32, i32, i32
  }
}

module attributes {stable_mosaic.version = 11 : i64} {
  func.func @_bottleneck_kernel(%arg0: i32, %arg1: i32, %arg2: memref<1x16x16x4xf32, #tpu.memory_space<vmem>>, %arg3: memref<4x4xbf16, #tpu.memory_space<vmem>>, %arg4: memref<36x4xbf16, #tpu.memory_space<vmem>>, %arg5: memref<4x16xbf16, #tpu.memory_space<vmem>>, %arg6: memref<4x16xbf16, #tpu.memory_space<vmem>>, %arg7: memref<1x4xf32, #tpu.memory_space<vmem>>, %arg8: memref<1x4xf32, #tpu.memory_space<vmem>>, %arg9: memref<1x4xf32, #tpu.memory_space<vmem>>, %arg10: memref<1x4xf32, #tpu.memory_space<vmem>>, %arg11: memref<1x16xf32, #tpu.memory_space<vmem>>, %arg12: memref<1x16xf32, #tpu.memory_space<vmem>>, %arg13: memref<1x16xf32, #tpu.memory_space<vmem>>, %arg14: memref<1x16xf32, #tpu.memory_space<vmem>>, %arg15: memref<1x4x16x16xf32, #tpu.memory_space<vmem>>, %arg16: memref<6x18x4xbf16, #tpu.memory_space<vmem>>) attributes {dimension_semantics = [#tpu.dimension_semantics<parallel>, #tpu.dimension_semantics<arbitrary>], iteration_bounds = array<i64: 2, 4>, scalar_prefetch = 0 : i64, scratch_operands = 1 : i64, tpu.core_type = #tpu.core_type<tc>, window_params = [{transform_indices = @transform_0, window_bounds = array<i64: 1, 16, 16, 4>}, {pipeline_mode = #tpu.pipeline_mode<synchronous>, transform_indices = @transform_1, window_bounds = array<i64: 4, 4>}, {pipeline_mode = #tpu.pipeline_mode<synchronous>, transform_indices = @transform_2, window_bounds = array<i64: 36, 4>}, {pipeline_mode = #tpu.pipeline_mode<synchronous>, transform_indices = @transform_3, window_bounds = array<i64: 4, 16>}, {pipeline_mode = #tpu.pipeline_mode<synchronous>, transform_indices = @transform_4, window_bounds = array<i64: 4, 16>}, {pipeline_mode = #tpu.pipeline_mode<synchronous>, transform_indices = @transform_5, window_bounds = array<i64: 1, 4>}, {pipeline_mode = #tpu.pipeline_mode<synchronous>, transform_indices = @transform_6, window_bounds = array<i64: 1, 4>}, {pipeline_mode = #tpu.pipeline_mode<synchronous>, transform_indices = @transform_7, window_bounds = array<i64: 1, 4>}, {pipeline_mode = #tpu.pipeline_mode<synchronous>, transform_indices = @transform_8, window_bounds = array<i64: 1, 4>}, {pipeline_mode = #tpu.pipeline_mode<synchronous>, transform_indices = @transform_9, window_bounds = array<i64: 1, 16>}, {pipeline_mode = #tpu.pipeline_mode<synchronous>, transform_indices = @transform_10, window_bounds = array<i64: 1, 16>}, {pipeline_mode = #tpu.pipeline_mode<synchronous>, transform_indices = @transform_11, window_bounds = array<i64: 1, 16>}, {pipeline_mode = #tpu.pipeline_mode<synchronous>, transform_indices = @transform_12, window_bounds = array<i64: 1, 16>}, {transform_indices = @transform_13, window_bounds = array<i64: 1, 4, 16, 16>}]} {
    %c4_i32 = arith.constant 4 : i32
    %0 = arith.muli %arg1, %c4_i32 : i32
    %1 = tpu.assume_multiple %0, 4 : i32
    %c0 = arith.constant 0 : index
    %2 = arith.index_cast %1 : i32 to index
    %c0_0 = arith.constant 0 : index
    %c0_1 = arith.constant 0 : index
    %3 = vector.load %arg2[%c0, %2, %c0_0, %c0_1] : memref<1x16x16x4xf32, #tpu.memory_space<vmem>>, vector<1x4x16x4xf32>
    %4 = vector.shape_cast %3 : vector<1x4x16x4xf32> to vector<4x16x4xf32>
    %5 = vector.shape_cast %4 : vector<4x16x4xf32> to vector<64x4xf32>
    %6 = arith.truncf %5 : vector<64x4xf32> to vector<64x4xbf16>
    %c0_2 = arith.constant 0 : index
    %c0_3 = arith.constant 0 : index
    %7 = vector.load %arg3[%c0_2, %c0_3] : memref<4x4xbf16, #tpu.memory_space<vmem>>, vector<4x4xbf16>
    %cst = arith.constant dense<0.000000e+00> : vector<64x4xf32>
    %8 = tpu.matmul %6, %7, %cst {dimension_numbers = #tpu.dot_dimension_numbers<[1], [0], [0], [1], [0, 0, 1, 1], [], []>} : vector<64x4xbf16>, vector<4x4xbf16>, vector<64x4xf32> -> vector<64x4xf32>
    %c0_4 = arith.constant 0 : index
    %c0_5 = arith.constant 0 : index
    %9 = vector.load %arg7[%c0_4, %c0_5] : memref<1x4xf32, #tpu.memory_space<vmem>>, vector<1x4xf32>
    %10 = vector.broadcast %9 : vector<1x4xf32> to vector<64x4xf32>
    %11 = arith.mulf %8, %10 : vector<64x4xf32>
    %c0_6 = arith.constant 0 : index
    %c0_7 = arith.constant 0 : index
    %12 = vector.load %arg8[%c0_6, %c0_7] : memref<1x4xf32, #tpu.memory_space<vmem>>, vector<1x4xf32>
    %13 = vector.broadcast %12 : vector<1x4xf32> to vector<64x4xf32>
    %14 = arith.addf %11, %13 : vector<64x4xf32>
    %cst_8 = arith.constant 0.000000e+00 : f32
    %15 = vector.broadcast %cst_8 : f32 to vector<64x4xf32>
    %16 = arith.maximumf %14, %15 : vector<64x4xf32>
    %17 = arith.truncf %16 : vector<64x4xf32> to vector<64x4xbf16>
    %18 = vector.shape_cast %17 : vector<64x4xbf16> to vector<4x16x4xbf16>
    %c1_i32 = arith.constant 1 : i32
    %19 = arith.subi %1, %c1_i32 : i32
    %c0_i32 = arith.constant 0 : i32
    %20 = arith.maxsi %19, %c0_i32 : i32
    %c0_9 = arith.constant 0 : index
    %21 = arith.index_cast %20 : i32 to index
    %c0_10 = arith.constant 0 : index
    %c0_11 = arith.constant 0 : index
    %22 = vector.load %arg2[%c0_9, %21, %c0_10, %c0_11] : memref<1x16x16x4xf32, #tpu.memory_space<vmem>>, vector<1x1x16x4xf32>
    %23 = vector.shape_cast %22 : vector<1x1x16x4xf32> to vector<1x16x4xf32>
    %24 = vector.shape_cast %23 : vector<1x16x4xf32> to vector<16x4xf32>
    %c4_i32_12 = arith.constant 4 : i32
    %25 = arith.addi %1, %c4_i32_12 : i32
    %c15_i32 = arith.constant 15 : i32
    %26 = arith.minsi %25, %c15_i32 : i32
    %c0_13 = arith.constant 0 : index
    %27 = arith.index_cast %26 : i32 to index
    %c0_14 = arith.constant 0 : index
    %c0_15 = arith.constant 0 : index
    %28 = vector.load %arg2[%c0_13, %27, %c0_14, %c0_15] : memref<1x16x16x4xf32, #tpu.memory_space<vmem>>, vector<1x1x16x4xf32>
    %29 = vector.shape_cast %28 : vector<1x1x16x4xf32> to vector<1x16x4xf32>
    %30 = vector.shape_cast %29 : vector<1x16x4xf32> to vector<16x4xf32>
    %c0_i32_16 = arith.constant 0 : i32
    %31 = arith.cmpi sgt, %arg1, %c0_i32_16 : i32
    %32 = arith.truncf %24 : vector<16x4xf32> to vector<16x4xbf16>
    %c0_17 = arith.constant 0 : index
    %c0_18 = arith.constant 0 : index
    %33 = vector.load %arg3[%c0_17, %c0_18] : memref<4x4xbf16, #tpu.memory_space<vmem>>, vector<4x4xbf16>
    %cst_19 = arith.constant dense<0.000000e+00> : vector<16x4xf32>
    %34 = tpu.matmul %32, %33, %cst_19 {dimension_numbers = #tpu.dot_dimension_numbers<[1], [0], [0], [1], [0, 0, 1, 1], [], []>} : vector<16x4xbf16>, vector<4x4xbf16>, vector<16x4xf32> -> vector<16x4xf32>
    %c0_20 = arith.constant 0 : index
    %c0_21 = arith.constant 0 : index
    %35 = vector.load %arg7[%c0_20, %c0_21] : memref<1x4xf32, #tpu.memory_space<vmem>>, vector<1x4xf32>
    %36 = vector.broadcast %35 : vector<1x4xf32> to vector<16x4xf32>
    %37 = arith.mulf %34, %36 : vector<16x4xf32>
    %c0_22 = arith.constant 0 : index
    %c0_23 = arith.constant 0 : index
    %38 = vector.load %arg8[%c0_22, %c0_23] : memref<1x4xf32, #tpu.memory_space<vmem>>, vector<1x4xf32>
    %39 = vector.broadcast %38 : vector<1x4xf32> to vector<16x4xf32>
    %40 = arith.addf %37, %39 : vector<16x4xf32>
    %cst_24 = arith.constant 0.000000e+00 : f32
    %41 = vector.broadcast %cst_24 : f32 to vector<16x4xf32>
    %42 = arith.maximumf %40, %41 : vector<16x4xf32>
    %cst_25 = arith.constant 0.000000e+00 : f32
    %43 = vector.broadcast %cst_25 : f32 to vector<16x4xf32>
    %44 = arith.select %31, %42, %43 : vector<16x4xf32>
    %45 = arith.truncf %44 : vector<16x4xf32> to vector<16x4xbf16>
    %c3_i32 = arith.constant 3 : i32
    %46 = arith.cmpi slt, %arg1, %c3_i32 : i32
    %47 = arith.truncf %30 : vector<16x4xf32> to vector<16x4xbf16>
    %c0_26 = arith.constant 0 : index
    %c0_27 = arith.constant 0 : index
    %48 = vector.load %arg3[%c0_26, %c0_27] : memref<4x4xbf16, #tpu.memory_space<vmem>>, vector<4x4xbf16>
    %cst_28 = arith.constant dense<0.000000e+00> : vector<16x4xf32>
    %49 = tpu.matmul %47, %48, %cst_28 {dimension_numbers = #tpu.dot_dimension_numbers<[1], [0], [0], [1], [0, 0, 1, 1], [], []>} : vector<16x4xbf16>, vector<4x4xbf16>, vector<16x4xf32> -> vector<16x4xf32>
    %c0_29 = arith.constant 0 : index
    %c0_30 = arith.constant 0 : index
    %50 = vector.load %arg7[%c0_29, %c0_30] : memref<1x4xf32, #tpu.memory_space<vmem>>, vector<1x4xf32>
    %51 = vector.broadcast %50 : vector<1x4xf32> to vector<16x4xf32>
    %52 = arith.mulf %49, %51 : vector<16x4xf32>
    %c0_31 = arith.constant 0 : index
    %c0_32 = arith.constant 0 : index
    %53 = vector.load %arg8[%c0_31, %c0_32] : memref<1x4xf32, #tpu.memory_space<vmem>>, vector<1x4xf32>
    %54 = vector.broadcast %53 : vector<1x4xf32> to vector<16x4xf32>
    %55 = arith.addf %52, %54 : vector<16x4xf32>
    %cst_33 = arith.constant 0.000000e+00 : f32
    %56 = vector.broadcast %cst_33 : f32 to vector<16x4xf32>
    %57 = arith.maximumf %55, %56 : vector<16x4xf32>
    %cst_34 = arith.constant 0.000000e+00 : f32
    %58 = vector.broadcast %cst_34 : f32 to vector<16x4xf32>
    %59 = arith.select %46, %57, %58 : vector<16x4xf32>
    %60 = arith.truncf %59 : vector<16x4xf32> to vector<16x4xbf16>
    %cst_35 = arith.constant 0.000000e+00 : bf16
    %61 = vector.broadcast %cst_35 : bf16 to vector<6x1x4xbf16>
    %c0_36 = arith.constant 0 : index
    %c0_37 = arith.constant 0 : index
    %c0_38 = arith.constant 0 : index
    %62 = vector.load %arg16[%c0_36, %c0_37, %c0_38] : memref<6x18x4xbf16, #tpu.memory_space<vmem>>, vector<6x1x4xbf16>
    tpu.vector_store %arg16[%c0_36, %c0_37, %c0_38], %61 {strides = array<i32>} : memref<6x18x4xbf16, #tpu.memory_space<vmem>>, vector<6x1x4xbf16>,
    %c0_39 = arith.constant 0 : index
    %c17 = arith.constant 17 : index
    %c0_40 = arith.constant 0 : index
    %63 = vector.load %arg16[%c0_39, %c17, %c0_40] : memref<6x18x4xbf16, #tpu.memory_space<vmem>>, vector<6x1x4xbf16>
    tpu.vector_store %arg16[%c0_39, %c17, %c0_40], %61 {strides = array<i32>} : memref<6x18x4xbf16, #tpu.memory_space<vmem>>, vector<6x1x4xbf16>,
    %c0_41 = arith.constant 0 : index
    %c1 = arith.constant 1 : index
    %c0_42 = arith.constant 0 : index
    %64 = vector.load %arg16[%c0_41, %c1, %c0_42] : memref<6x18x4xbf16, #tpu.memory_space<vmem>>, vector<1x16x4xbf16>
    %65 = vector.shape_cast %64 : vector<1x16x4xbf16> to vector<16x4xbf16>
    %66 = vector.shape_cast %45 : vector<16x4xbf16> to vector<1x16x4xbf16>
    tpu.vector_store %arg16[%c0_41, %c1, %c0_42], %66 {strides = array<i32>} : memref<6x18x4xbf16, #tpu.memory_space<vmem>>, vector<1x16x4xbf16>,
    %c1_43 = arith.constant 1 : index
    %c1_44 = arith.constant 1 : index
    %c0_45 = arith.constant 0 : index
    %67 = vector.load %arg16[%c1_43, %c1_44, %c0_45] : memref<6x18x4xbf16, #tpu.memory_space<vmem>>, vector<4x16x4xbf16>
    tpu.vector_store %arg16[%c1_43, %c1_44, %c0_45], %18 {strides = array<i32>} : memref<6x18x4xbf16, #tpu.memory_space<vmem>>, vector<4x16x4xbf16>,
    %c5 = arith.constant 5 : index
    %c1_46 = arith.constant 1 : index
    %c0_47 = arith.constant 0 : index
    %68 = vector.load %arg16[%c5, %c1_46, %c0_47] : memref<6x18x4xbf16, #tpu.memory_space<vmem>>, vector<1x16x4xbf16>
    %69 = vector.shape_cast %68 : vector<1x16x4xbf16> to vector<16x4xbf16>
    %70 = vector.shape_cast %60 : vector<16x4xbf16> to vector<1x16x4xbf16>
    tpu.vector_store %arg16[%c5, %c1_46, %c0_47], %70 {strides = array<i32>} : memref<6x18x4xbf16, #tpu.memory_space<vmem>>, vector<1x16x4xbf16>,
    %c0_48 = arith.constant 0 : index
    %c0_49 = arith.constant 0 : index
    %c0_50 = arith.constant 0 : index
    %71 = vector.load %arg16[%c0_48, %c0_49, %c0_50] : memref<6x18x4xbf16, #tpu.memory_space<vmem>>, vector<6x18x4xbf16>
    %72 = vector.extract_strided_slice %71 {offsets = [0, 0, 0], sizes = [6, 16, 4], strides = [1, 1, 1]} : vector<6x18x4xbf16> to vector<6x16x4xbf16>
    %73 = vector.extract_strided_slice %71 {offsets = [0, 1, 0], sizes = [6, 16, 4], strides = [1, 1, 1]} : vector<6x18x4xbf16> to vector<6x16x4xbf16>
    %74 = vector.extract_strided_slice %71 {offsets = [0, 2, 0], sizes = [6, 16, 4], strides = [1, 1, 1]} : vector<6x18x4xbf16> to vector<6x16x4xbf16>
    %75 = vector.extract_strided_slice %72 {offsets = [0, 0, 0], sizes = [4, 16, 4], strides = [1, 1, 1]} : vector<6x16x4xbf16> to vector<4x16x4xbf16>
    %76 = vector.extract_strided_slice %73 {offsets = [0, 0, 0], sizes = [4, 16, 4], strides = [1, 1, 1]} : vector<6x16x4xbf16> to vector<4x16x4xbf16>
    %77 = vector.extract_strided_slice %74 {offsets = [0, 0, 0], sizes = [4, 16, 4], strides = [1, 1, 1]} : vector<6x16x4xbf16> to vector<4x16x4xbf16>
    %78 = vector.extract_strided_slice %72 {offsets = [1, 0, 0], sizes = [4, 16, 4], strides = [1, 1, 1]} : vector<6x16x4xbf16> to vector<4x16x4xbf16>
    %79 = vector.extract_strided_slice %73 {offsets = [1, 0, 0], sizes = [4, 16, 4], strides = [1, 1, 1]} : vector<6x16x4xbf16> to vector<4x16x4xbf16>
    %80 = vector.extract_strided_slice %74 {offsets = [1, 0, 0], sizes = [4, 16, 4], strides = [1, 1, 1]} : vector<6x16x4xbf16> to vector<4x16x4xbf16>
    %81 = vector.extract_strided_slice %72 {offsets = [2, 0, 0], sizes = [4, 16, 4], strides = [1, 1, 1]} : vector<6x16x4xbf16> to vector<4x16x4xbf16>
    %82 = vector.extract_strided_slice %73 {offsets = [2, 0, 0], sizes = [4, 16, 4], strides = [1, 1, 1]} : vector<6x16x4xbf16> to vector<4x16x4xbf16>
    %83 = vector.extract_strided_slice %74 {offsets = [2, 0, 0], sizes = [4, 16, 4], strides = [1, 1, 1]} : vector<6x16x4xbf16> to vector<4x16x4xbf16>
    %cst_51 = arith.constant 0.000000e+00 : f32
    %84 = vector.broadcast %cst_51 : f32 to vector<64x4xf32>
    %85 = vector.shape_cast %75 : vector<4x16x4xbf16> to vector<64x4xbf16>
    %c0_52 = arith.constant 0 : index
    %c0_53 = arith.constant 0 : index
    %86 = vector.load %arg4[%c0_52, %c0_53] : memref<36x4xbf16, #tpu.memory_space<vmem>>, vector<4x4xbf16>
    %cst_54 = arith.constant dense<0.000000e+00> : vector<64x4xf32>
    %87 = tpu.matmul %85, %86, %cst_54 {dimension_numbers = #tpu.dot_dimension_numbers<[1], [0], [0], [1], [0, 0, 1, 1], [], []>} : vector<64x4xbf16>, vector<4x4xbf16>, vector<64x4xf32> -> vector<64x4xf32>
    %88 = arith.addf %84, %87 : vector<64x4xf32>
    %89 = vector.shape_cast %76 : vector<4x16x4xbf16> to vector<64x4xbf16>
    %c4 = arith.constant 4 : index
    %c0_55 = arith.constant 0 : index
    %90 = vector.load %arg4[%c4, %c0_55] : memref<36x4xbf16, #tpu.memory_space<vmem>>, vector<4x4xbf16>
    %cst_56 = arith.constant dense<0.000000e+00> : vector<64x4xf32>
    %91 = tpu.matmul %89, %90, %cst_56 {dimension_numbers = #tpu.dot_dimension_numbers<[1], [0], [0], [1], [0, 0, 1, 1], [], []>} : vector<64x4xbf16>, vector<4x4xbf16>, vector<64x4xf32> -> vector<64x4xf32>
    %92 = arith.addf %88, %91 : vector<64x4xf32>
    %93 = vector.shape_cast %77 : vector<4x16x4xbf16> to vector<64x4xbf16>
    %c8 = arith.constant 8 : index
    %c0_57 = arith.constant 0 : index
    %94 = vector.load %arg4[%c8, %c0_57] : memref<36x4xbf16, #tpu.memory_space<vmem>>, vector<4x4xbf16>
    %cst_58 = arith.constant dense<0.000000e+00> : vector<64x4xf32>
    %95 = tpu.matmul %93, %94, %cst_58 {dimension_numbers = #tpu.dot_dimension_numbers<[1], [0], [0], [1], [0, 0, 1, 1], [], []>} : vector<64x4xbf16>, vector<4x4xbf16>, vector<64x4xf32> -> vector<64x4xf32>
    %96 = arith.addf %92, %95 : vector<64x4xf32>
    %97 = vector.shape_cast %78 : vector<4x16x4xbf16> to vector<64x4xbf16>
    %c12 = arith.constant 12 : index
    %c0_59 = arith.constant 0 : index
    %98 = vector.load %arg4[%c12, %c0_59] : memref<36x4xbf16, #tpu.memory_space<vmem>>, vector<4x4xbf16>
    %cst_60 = arith.constant dense<0.000000e+00> : vector<64x4xf32>
    %99 = tpu.matmul %97, %98, %cst_60 {dimension_numbers = #tpu.dot_dimension_numbers<[1], [0], [0], [1], [0, 0, 1, 1], [], []>} : vector<64x4xbf16>, vector<4x4xbf16>, vector<64x4xf32> -> vector<64x4xf32>
    %100 = arith.addf %96, %99 : vector<64x4xf32>
    %101 = vector.shape_cast %79 : vector<4x16x4xbf16> to vector<64x4xbf16>
    %c16 = arith.constant 16 : index
    %c0_61 = arith.constant 0 : index
    %102 = vector.load %arg4[%c16, %c0_61] : memref<36x4xbf16, #tpu.memory_space<vmem>>, vector<4x4xbf16>
    %cst_62 = arith.constant dense<0.000000e+00> : vector<64x4xf32>
    %103 = tpu.matmul %101, %102, %cst_62 {dimension_numbers = #tpu.dot_dimension_numbers<[1], [0], [0], [1], [0, 0, 1, 1], [], []>} : vector<64x4xbf16>, vector<4x4xbf16>, vector<64x4xf32> -> vector<64x4xf32>
    %104 = arith.addf %100, %103 : vector<64x4xf32>
    %105 = vector.shape_cast %80 : vector<4x16x4xbf16> to vector<64x4xbf16>
    %c20 = arith.constant 20 : index
    %c0_63 = arith.constant 0 : index
    %106 = vector.load %arg4[%c20, %c0_63] : memref<36x4xbf16, #tpu.memory_space<vmem>>, vector<4x4xbf16>
    %cst_64 = arith.constant dense<0.000000e+00> : vector<64x4xf32>
    %107 = tpu.matmul %105, %106, %cst_64 {dimension_numbers = #tpu.dot_dimension_numbers<[1], [0], [0], [1], [0, 0, 1, 1], [], []>} : vector<64x4xbf16>, vector<4x4xbf16>, vector<64x4xf32> -> vector<64x4xf32>
    %108 = arith.addf %104, %107 : vector<64x4xf32>
    %109 = vector.shape_cast %81 : vector<4x16x4xbf16> to vector<64x4xbf16>
    %c24 = arith.constant 24 : index
    %c0_65 = arith.constant 0 : index
    %110 = vector.load %arg4[%c24, %c0_65] : memref<36x4xbf16, #tpu.memory_space<vmem>>, vector<4x4xbf16>
    %cst_66 = arith.constant dense<0.000000e+00> : vector<64x4xf32>
    %111 = tpu.matmul %109, %110, %cst_66 {dimension_numbers = #tpu.dot_dimension_numbers<[1], [0], [0], [1], [0, 0, 1, 1], [], []>} : vector<64x4xbf16>, vector<4x4xbf16>, vector<64x4xf32> -> vector<64x4xf32>
    %112 = arith.addf %108, %111 : vector<64x4xf32>
    %113 = vector.shape_cast %82 : vector<4x16x4xbf16> to vector<64x4xbf16>
    %c28 = arith.constant 28 : index
    %c0_67 = arith.constant 0 : index
    %114 = vector.load %arg4[%c28, %c0_67] : memref<36x4xbf16, #tpu.memory_space<vmem>>, vector<4x4xbf16>
    %cst_68 = arith.constant dense<0.000000e+00> : vector<64x4xf32>
    %115 = tpu.matmul %113, %114, %cst_68 {dimension_numbers = #tpu.dot_dimension_numbers<[1], [0], [0], [1], [0, 0, 1, 1], [], []>} : vector<64x4xbf16>, vector<4x4xbf16>, vector<64x4xf32> -> vector<64x4xf32>
    %116 = arith.addf %112, %115 : vector<64x4xf32>
    %117 = vector.shape_cast %83 : vector<4x16x4xbf16> to vector<64x4xbf16>
    %c32 = arith.constant 32 : index
    %c0_69 = arith.constant 0 : index
    %118 = vector.load %arg4[%c32, %c0_69] : memref<36x4xbf16, #tpu.memory_space<vmem>>, vector<4x4xbf16>
    %cst_70 = arith.constant dense<0.000000e+00> : vector<64x4xf32>
    %119 = tpu.matmul %117, %118, %cst_70 {dimension_numbers = #tpu.dot_dimension_numbers<[1], [0], [0], [1], [0, 0, 1, 1], [], []>} : vector<64x4xbf16>, vector<4x4xbf16>, vector<64x4xf32> -> vector<64x4xf32>
    %120 = arith.addf %116, %119 : vector<64x4xf32>
    %c0_71 = arith.constant 0 : index
    %c0_72 = arith.constant 0 : index
    %121 = vector.load %arg9[%c0_71, %c0_72] : memref<1x4xf32, #tpu.memory_space<vmem>>, vector<1x4xf32>
    %122 = vector.broadcast %121 : vector<1x4xf32> to vector<64x4xf32>
    %123 = arith.mulf %120, %122 : vector<64x4xf32>
    %c0_73 = arith.constant 0 : index
    %c0_74 = arith.constant 0 : index
    %124 = vector.load %arg10[%c0_73, %c0_74] : memref<1x4xf32, #tpu.memory_space<vmem>>, vector<1x4xf32>
    %125 = vector.broadcast %124 : vector<1x4xf32> to vector<64x4xf32>
    %126 = arith.addf %123, %125 : vector<64x4xf32>
    %cst_75 = arith.constant 0.000000e+00 : f32
    %127 = vector.broadcast %cst_75 : f32 to vector<64x4xf32>
    %128 = arith.maximumf %126, %127 : vector<64x4xf32>
    %129 = arith.truncf %128 : vector<64x4xf32> to vector<64x4xbf16>
    %c0_76 = arith.constant 0 : index
    %c0_77 = arith.constant 0 : index
    %130 = vector.load %arg5[%c0_76, %c0_77] : memref<4x16xbf16, #tpu.memory_space<vmem>>, vector<4x16xbf16>
    %cst_78 = arith.constant dense<0.000000e+00> : vector<64x16xf32>
    %131 = tpu.matmul %129, %130, %cst_78 {dimension_numbers = #tpu.dot_dimension_numbers<[1], [0], [0], [1], [0, 0, 1, 1], [], []>} : vector<64x4xbf16>, vector<4x16xbf16>, vector<64x16xf32> -> vector<64x16xf32>
    %c0_79 = arith.constant 0 : index
    %c0_80 = arith.constant 0 : index
    %132 = vector.load %arg11[%c0_79, %c0_80] : memref<1x16xf32, #tpu.memory_space<vmem>>, vector<1x16xf32>
    %133 = vector.broadcast %132 : vector<1x16xf32> to vector<64x16xf32>
    %134 = arith.mulf %131, %133 : vector<64x16xf32>
    %c0_81 = arith.constant 0 : index
    %c0_82 = arith.constant 0 : index
    %135 = vector.load %arg12[%c0_81, %c0_82] : memref<1x16xf32, #tpu.memory_space<vmem>>, vector<1x16xf32>
    %136 = vector.broadcast %135 : vector<1x16xf32> to vector<64x16xf32>
    %137 = arith.addf %134, %136 : vector<64x16xf32>
    %138 = vector.extract_strided_slice %4 {offsets = [0, 0, 0], sizes = [4, 16, 4], strides = [1, 1, 1]} : vector<4x16x4xf32> to vector<4x16x4xf32>
    %139 = vector.shape_cast %138 : vector<4x16x4xf32> to vector<64x4xf32>
    %140 = arith.truncf %139 : vector<64x4xf32> to vector<64x4xbf16>
    %c0_83 = arith.constant 0 : index
    %c0_84 = arith.constant 0 : index
    %141 = vector.load %arg6[%c0_83, %c0_84] : memref<4x16xbf16, #tpu.memory_space<vmem>>, vector<4x16xbf16>
    %cst_85 = arith.constant dense<0.000000e+00> : vector<64x16xf32>
    %142 = tpu.matmul %140, %141, %cst_85 {dimension_numbers = #tpu.dot_dimension_numbers<[1], [0], [0], [1], [0, 0, 1, 1], [], []>} : vector<64x4xbf16>, vector<4x16xbf16>, vector<64x16xf32> -> vector<64x16xf32>
    %c0_86 = arith.constant 0 : index
    %c0_87 = arith.constant 0 : index
    %143 = vector.load %arg13[%c0_86, %c0_87] : memref<1x16xf32, #tpu.memory_space<vmem>>, vector<1x16xf32>
    %144 = vector.broadcast %143 : vector<1x16xf32> to vector<64x16xf32>
    %145 = arith.mulf %142, %144 : vector<64x16xf32>
    %c0_88 = arith.constant 0 : index
    %c0_89 = arith.constant 0 : index
    %146 = vector.load %arg14[%c0_88, %c0_89] : memref<1x16xf32, #tpu.memory_space<vmem>>, vector<1x16xf32>
    %147 = vector.broadcast %146 : vector<1x16xf32> to vector<64x16xf32>
    %148 = arith.addf %145, %147 : vector<64x16xf32>
    %149 = arith.addf %137, %148 : vector<64x16xf32>
    %cst_90 = arith.constant 0.000000e+00 : f32
    %150 = vector.broadcast %cst_90 : f32 to vector<64x16xf32>
    %151 = arith.maximumf %149, %150 : vector<64x16xf32>
    %152 = vector.shape_cast %151 : vector<64x16xf32> to vector<4x16x16xf32>
    %c0_91 = arith.constant 0 : index
    %c0_92 = arith.constant 0 : index
    %c0_93 = arith.constant 0 : index
    %c0_94 = arith.constant 0 : index
    %153 = vector.load %arg15[%c0_91, %c0_92, %c0_93, %c0_94] : memref<1x4x16x16xf32, #tpu.memory_space<vmem>>, vector<1x4x16x16xf32>
    %154 = vector.shape_cast %153 : vector<1x4x16x16xf32> to vector<4x16x16xf32>
    %155 = vector.shape_cast %152 : vector<4x16x16xf32> to vector<1x4x16x16xf32>
    tpu.vector_store %arg15[%c0_91, %c0_92, %c0_93, %c0_94], %155 {strides = array<i32>} : memref<1x4x16x16xf32, #tpu.memory_space<vmem>>, vector<1x4x16x16xf32>,
    return
  }
  func.func @transform_0(%arg0: i32, %arg1: i32) -> (i32, i32, i32, i32) {
    %c0_i32 = arith.constant 0 : i32
    %c0_i32_0 = arith.constant 0 : i32
    %c0_i32_1 = arith.constant 0 : i32
    %c0_i32_2 = arith.constant 0 : i32
    return %arg0, %c0_i32, %c0_i32_0, %c0_i32_1 : i32, i32, i32, i32
  }
  func.func @transform_1(%arg0: i32, %arg1: i32) -> (i32, i32) {
    %c0_i32 = arith.constant 0 : i32
    %c0_i32_0 = arith.constant 0 : i32
    %c0_i32_1 = arith.constant 0 : i32
    return %c0_i32, %c0_i32_0 : i32, i32
  }
  func.func @transform_2(%arg0: i32, %arg1: i32) -> (i32, i32) {
    %c0_i32 = arith.constant 0 : i32
    %c0_i32_0 = arith.constant 0 : i32
    %c0_i32_1 = arith.constant 0 : i32
    return %c0_i32, %c0_i32_0 : i32, i32
  }
  func.func @transform_3(%arg0: i32, %arg1: i32) -> (i32, i32) {
    %c0_i32 = arith.constant 0 : i32
    %c0_i32_0 = arith.constant 0 : i32
    %c0_i32_1 = arith.constant 0 : i32
    return %c0_i32, %c0_i32_0 : i32, i32
  }
  func.func @transform_4(%arg0: i32, %arg1: i32) -> (i32, i32) {
    %c0_i32 = arith.constant 0 : i32
    %c0_i32_0 = arith.constant 0 : i32
    %c0_i32_1 = arith.constant 0 : i32
    return %c0_i32, %c0_i32_0 : i32, i32
  }
  func.func @transform_5(%arg0: i32, %arg1: i32) -> (i32, i32) {
    %c0_i32 = arith.constant 0 : i32
    %c0_i32_0 = arith.constant 0 : i32
    %c0_i32_1 = arith.constant 0 : i32
    return %c0_i32, %c0_i32_0 : i32, i32
  }
  func.func @transform_6(%arg0: i32, %arg1: i32) -> (i32, i32) {
    %c0_i32 = arith.constant 0 : i32
    %c0_i32_0 = arith.constant 0 : i32
    %c0_i32_1 = arith.constant 0 : i32
    return %c0_i32, %c0_i32_0 : i32, i32
  }
  func.func @transform_7(%arg0: i32, %arg1: i32) -> (i32, i32) {
    %c0_i32 = arith.constant 0 : i32
    %c0_i32_0 = arith.constant 0 : i32
    %c0_i32_1 = arith.constant 0 : i32
    return %c0_i32, %c0_i32_0 : i32, i32
  }
  func.func @transform_8(%arg0: i32, %arg1: i32) -> (i32, i32) {
    %c0_i32 = arith.constant 0 : i32
    %c0_i32_0 = arith.constant 0 : i32
    %c0_i32_1 = arith.constant 0 : i32
    return %c0_i32, %c0_i32_0 : i32, i32
  }
  func.func @transform_9(%arg0: i32, %arg1: i32) -> (i32, i32) {
    %c0_i32 = arith.constant 0 : i32
    %c0_i32_0 = arith.constant 0 : i32
    %c0_i32_1 = arith.constant 0 : i32
    return %c0_i32, %c0_i32_0 : i32, i32
  }
  func.func @transform_10(%arg0: i32, %arg1: i32) -> (i32, i32) {
    %c0_i32 = arith.constant 0 : i32
    %c0_i32_0 = arith.constant 0 : i32
    %c0_i32_1 = arith.constant 0 : i32
    return %c0_i32, %c0_i32_0 : i32, i32
  }
  func.func @transform_11(%arg0: i32, %arg1: i32) -> (i32, i32) {
    %c0_i32 = arith.constant 0 : i32
    %c0_i32_0 = arith.constant 0 : i32
    %c0_i32_1 = arith.constant 0 : i32
    return %c0_i32, %c0_i32_0 : i32, i32
  }
  func.func @transform_12(%arg0: i32, %arg1: i32) -> (i32, i32) {
    %c0_i32 = arith.constant 0 : i32
    %c0_i32_0 = arith.constant 0 : i32
    %c0_i32_1 = arith.constant 0 : i32
    return %c0_i32, %c0_i32_0 : i32, i32
  }
  func.func @transform_13(%arg0: i32, %arg1: i32) -> (i32, i32, i32, i32) {
    %c0_i32 = arith.constant 0 : i32
    %c0_i32_0 = arith.constant 0 : i32
    %c0_i32_1 = arith.constant 0 : i32
    return %arg0, %arg1, %c0_i32, %c0_i32_0 : i32, i32, i32, i32
  }
}

</mosaic_0001>

<bundles_post_ra>
// kernel: tpu_custom_call.1
= control target key start
LH: loop header
LB: loop body
LE: loop exit
PB: predicated region body
PF: predicated region fallthrough
CT: control target
= control target key end

     0   :  { %s2346_s0 = inlined_call_operand.vmem [shape: f32[2,16,16,4], index: 0, kind: input, shape index: {}]   ;;  %s2347_s1 = inlined_call_operand.vmem [shape: bf16[4,4], index: 1, kind: input, shape index: {}]   ;;  %s2348_s2 = inlined_call_operand.vmem [shape: bf16[36,4], index: 2, kind: input, shape index: {}]   ;;  %s2349_s3 = inlined_call_operand.vmem [shape: bf16[4,16], index: 3, kind: input, shape index: {}]   ;;  %s2350_s4 = inlined_call_operand.vmem [shape: bf16[4,16], index: 4, kind: input, shape index: {}]   ;;  %s2351_s5 = inlined_call_operand.vmem [shape: f32[1,4], index: 5, kind: input, shape index: {}]   ;;  %s2352_s6 = inlined_call_operand.vmem [shape: f32[1,4], index: 6, kind: input, shape index: {}]   ;;  %s2353_s7 = inlined_call_operand.vmem [shape: f32[1,4], index: 7, kind: input, shape index: {}]   ;;  %s2354_s8 = inlined_call_operand.vmem [shape: f32[1,4], index: 8, kind: input, shape index: {}]   ;;  %s2355_s9 = inlined_call_operand.vmem [shape: f32[1,16], index: 9, kind: input, shape index: {}]   ;;  %s2356_s10 = inlined_call_operand.vmem [shape: f32[1,16], index: 10, kind: input, shape index: {}]   ;;  %s2357_s11 = inlined_call_operand.vmem [shape: f32[1,16], index: 11, kind: input, shape index: {}]   ;;  %s2358_s12 = inlined_call_operand.vmem [shape: f32[1,16], index: 12, kind: input, shape index: {}]   ;;  %s2359_s13 = inlined_call_operand.hbm [shape: f32[2,16,16,16], index: 13, kind: output, shape index: {}]  }
   0x1   :  { %2365 = sst [smem:[#allocation12_spill]] %s2347_s1 }
   0x2   :  { %18 = vsyncpa [#allocation4], 0 }
   0x3   :  { %20 = vsyncpa [#allocation4 + $0x1], 0  ;;  %s1830_s25 = smov 0   ;;  %s1832_s26 = smov 0  }
   0x4   :  { %s1834_s27 = smov 0   ;;  %s1836_s28 = smov 0  }
   0x5   :  { %s1838_s29 = smov 0   ;;  %s1840_s30 = smov 0  }
   0x6   :  { %s1842_s14 = smov 0   ;;  %s1844_s15 = smov 0  }
   0x7 LB: > { %2366 = sst [smem:[#allocation6_spill]] %s1721_s25  ;;  %s1486_s16 = sadd.s32 4294967295, %s1749_s15   ;;  %s1749_s15 = sphi %s1844_s15, %s26_s15   ;;  %s1745_s14 = sphi %s1842_s14, %s2392_s14   ;;  %s1741_s30 = sphi %s1840_s30, %s2391_s30   ;;  %s1737_s29 = sphi %s1838_s29, %s2390_s29   ;;  %s1733_s28 = sphi %s1836_s28, %s2389_s28   ;;  %s1729_s27 = sphi %s1834_s27, %s2395_s27   ;;  %s1725_s26 = sphi %s1832_s26, %s2394_s26   ;;  %s1721_s25 = sphi %s1830_s25, %s2393_s25  }
   0x8   : > { %2367 = sst [smem:[#allocation7_spill]] %s1741_s30  ;;  %s1487_s17 = sadd.s32 4294967294, %s1749_s15  }
   0x9   : > { %2368 = sst [smem:[#allocation8_spill]] %s1745_s14  ;;  %s35_s18 = sadd.s32 1, %s1741_s30 }
   0xa   : > { %p36_p0 = scmp.ge.s32.totalorder %s35_s18, 4  ;;  %s38_s19 = sadd.s32 1, %s1745_s14 }
   0xb   : > { %p335_p1 = scmp.ne.s32.totalorder %s1729_s27, %s1725_s26  ;;  %p336_p2 = scmp.eq.s32.totalorder %s1486_s16, 7 }
   0xc   : > { %s2397_s18 = smov (%p36_p0, %s35_s18), 0  ;;  %s2399_s19 = smov (!%p36_p0, %s38_s19), %s1745_s14 }
   0xd   : > { %2369 = sst [smem:[#allocation9_spill]] %s2397_s18  ;;  %s321_s20 = ssub.s32 %s1741_s30, %s2397_s18 }
   0xe   : > { %p1881_p3 = por %p336_p2, %p335_p1  ;;  %p40_p4 = scmp.ge.s32.totalorder %s2399_s19, 2 }
   0xf   : > { %p341_p5 = scmp.ne.s32.totalorder %s1725_s26, %s1721_s25  ;;  %p342_p6 = scmp.eq.s32.totalorder %s1487_s17, 7 }
  0x10   : > { %p1490_p7 = scmp.ge.s32.totalorder %s1749_s15, 1  ;;  %s2401_s19 = smov (%p40_p4, %s2399_s19), 0 }
  0x11   : > { %2371 = sst [smem:[#allocation10_spill]] %s2401_s19  ;;  %p1890_p8 = por %p342_p6, %p341_p5 }
  0x12   : > { %p404_p9 = scmp.lt.s32.totalorder %s1749_s15, 9  ;;  %s320_s23 = ssub.s32 %s1745_s14, %s2401_s19 }
  0x13   : > { %s325_s24 = sadd.s32 1, %s1729_s27  ;;  %s322_s16 = sor.u32 %s321_s20, %s320_s23 }
  0x14   : > { %p405_p10 = pnand %p1490_p7, %p404_p9  ;;  %p323_p11 = scmp.eq.s32.totalorder %s322_s16, 0 }
  0x15   : > { %s2374_s1 = sld [smem:[#allocation12_spill]] (!%p405_p10)  ;;  %p448_p12 = scmp.lt.s32.totalorder (!%p405_p10), %s1737_s29, 1 }
  0x16   : > { %s1899_s18 = scalar_select %p323_p11, %s1729_s27, %s325_s24  }
  0x17   : > { %408 = sbr.rel (%p405_p10) target bundleno = 692 (0x2b4), region = 72  ;;  %s1494_s17 = sshll.u32 (!%p405_p10), %s1733_s28, 2 }
  0x18   : > { %2373 = sst [smem:[#allocation11_spill]] %s1899_s18  ;;  %s1557_s23 = sshll.u32 (!%p405_p10), %s1733_s28, 6 }
  0x19   : > { %s1500_s24 = sadd.s32 (!%p405_p10), 4294967295, %s1494_s17  ;;  %s564_s18 = sadd.s32 (!%p405_p10), 4, %s1494_s17 }
  0x1a   : > { %p558_p13 = scmp.gt.s32.totalorder (!%p405_p10), %s1500_s24, 0  ;;  %p565_p0 = scmp.lt.s32.totalorder (!%p405_p10), %s564_s18, 15 }
  0x1b   : > { %p571_p1 = scmp.gt.s32.totalorder (!%p405_p10), %s1733_s28, 0  ;;  %p603_p2 = scmp.lt.s32.totalorder (!%p405_p10), %s1733_s28, 3 }
  0x1c   : > { %v470_v0 = vld [vmem:[%s2374_s1] sm:$0x3]  ;;  %vm484_vm0 = vcmask 1041408   ;;  %s449_s20 = scalar_select %p448_p12, %s1737_s29, 1  ;;  %vm471_vm1 = vcmask 31744   ;;  %vm635_vm2 = vcmask 24576  }
  0x1d   : > { %v486_v1 = vsel %vm484_vm0, %v470_v0, 0  ;;  %s2403_s24 = smov (!%p558_p13, %s1500_s24), 0  ;;  %s2405_s18 = smov (!%p565_p0, %s564_s18), 15  ;;  %vm636_vm3 = vsmask.f32 256  ;;  %vm698_vm8 = vcmask 27648  }
  0x1e   : > { %495 = vmatpush.bf16.msra.mxu0 %v486_v1  ;;  %583 = vmatpush.bf16.msra.mxu1 %v486_v1  ;;  %s1556_s16 = sshll.u32 %s449_s20, 8  ;;  %s1501_s1 = sshll.u32 %s2403_s24, 4  ;;  %v641_v20 = vld [vmem:[#allocation2 + $0xc] sm:$0x1]  ;;  %vm1941_vm4 = vmand %vm635_vm2, %vm636_vm3  ;;  %vm656_vm5 = vsmask.f32 7938 }
  0x1f   : > { %615 = vmatpush.bf16.msra.mxu2 %v486_v1  ;;  %s452_s30 = scalar_lea.vmem %s2346_s0, %s1556_s16  ;;  %s1502_s19 = sshll.u32 %s2405_s18, 4  ;;  %v642_v22 = vsel %vm1941_vm4, 0, %v641_v20  ;;  %vm1948_vm6 = vmand %vm635_vm2, %vm656_vm5  ;;  %v638_v24 = vld [vmem:[#allocation2] sm:$0x1]  ;;  %v661_v26 = vld [vmem:[#allocation2 + $0x14] sm:$0x1] }
  0x20   : > { %s1912_s14 = scalar_lea.vmem %s452_s30, %s1557_s23  ;;  %s561_s20 = scalar_lea.vmem %s452_s30, %s1501_s1  ;;  %643 = vst [vmem:[#allocation2 + $0xc] sm:$0x1] %v642_v22  ;;  %v639_v25 = vsel %vm1941_vm4, 0, %v638_v24  ;;  %v662_v27 = vsel %vm1948_vm6, 0, %v661_v26  ;;  %v658_v28 = vld [vmem:[#allocation2 + $0x8] sm:$0x1]  ;;  %vm1989_vm9 = vmand %vm698_vm8, %vm656_vm5 }
  0x21   : > { %v458_v2 = vld [vmem:[%s1912_s14] sm:$0xff]  ;;  %v459_v3 = vld [vmem:[%s1912_s14 + $0x8] sm:$0xff]  ;;  %v460_v8 = vld [vmem:[%s1912_s14 + $0x10] sm:$0xff]  ;;  %s568_s17 = scalar_lea.vmem %s452_s30, %s1502_s19  ;;  %640 = vst [vmem:[#allocation2] sm:$0x1] %v639_v25  ;;  %v659_v29 = vsel %vm1948_vm6, 0, %v658_v28 }
  0x22   : > { %v1916_v4 = vpack.c.bf16 %v459_v3, %v458_v2  ;;  %v562_v5 = vld [vmem:[%s561_s20] sm:$0xff]  ;;  %v563_v6 = vld [vmem:[%s561_s20 + $0x8] sm:$0xff]  ;;  %v461_v9 = vld [vmem:[%s1912_s14 + $0x18] sm:$0xff]  ;;  %663 = vst [vmem:[#allocation2 + $0x14] sm:$0x1] %v662_v27  ;;  %s1751_s16 = smov 12  }
  0x23   : > { %v572_v7 = vpack.c.bf16 %v563_v6, %v562_v5  ;;  %v1923_v10 = vpack.c.bf16 %v461_v9, %v460_v8  ;;  %v569_v11 = vld [vmem:[%s568_s17] sm:$0xff]  ;;  %v570_v12 = vld [vmem:[%s568_s17 + $0x8] sm:$0xff]  ;;  %v464_v17 = vld [vmem:[%s1912_s14 + $0x30] sm:$0xff]  ;;  %660 = vst [vmem:[#allocation2 + $0x8] sm:$0x1] %v659_v29  ;;  %vm952_vm12 = vcmask 1046528  }
  0x24   : > { %1496 = vmatmul.msk.bf16.vlgmr.msra.gmra.mxu0 %vm471_vm1, %v1916_v4  ;;  %v604_v13 = vpack.c.bf16 %v570_v12, %v569_v11  ;;  %v462_v14 = vld [vmem:[%s1912_s14 + $0x20] sm:$0xff]  ;;  %v463_v15 = vld [vmem:[%s1912_s14 + $0x28] sm:$0xff]  ;;  %v465_v18 = vld [vmem:[%s1912_s14 + $0x38] sm:$0xff]  ;;  %s596_s24 = scalar_select %p571_p1, 1, 0  ;;  %vm1075_vm15 = vcmask 64512  }
  0x25   : > { %1503 = vmatmul.msk.bf16.vlgmr.msra.gmra.mxu1 %vm471_vm1, %v572_v7  ;;  %v1930_v16 = vpack.c.bf16 %v463_v15, %v462_v14  ;;  %v1936_v19 = vpack.c.bf16 %v465_v18, %v464_v17  ;;  %v1961_v30 = vld [vmem:[%s2351_s5] ss:$0 sm:$0xff]  ;;  %v644_v31 = vld [vmem:[#allocation2 + $0x18] sm:$0x1]  ;;  %v647_v51 = vld [vmem:[#allocation2 + $0x24] sm:$0x1] }
  0x26   : > { %1504 = vmatmul.msk.bf16.vlgmr.msra.gmra.mxu2 %vm471_vm1, %v604_v13  ;;  %v1967_v32 = vld [vmem:[%s2352_s6] ss:$0 sm:$0xff]  ;;  %v645_v33 = vsel %vm1941_vm4, 0, %v644_v31  ;;  %v597_v42 = vstv %s596_s24  ;;  %v648_v55 = vsel %vm1941_vm4, 0, %v647_v51  ;;  %v667_v7 = vld [vmem:[#allocation2 + $0x2c] sm:$0x1] }
  0x27   : > { %646 = vst [vmem:[#allocation2 + $0x18] sm:$0x1] %v645_v33  ;;  %v664_v35 = vld [vmem:[#allocation2 + $0x20] sm:$0x1]  ;;  %vm1977_vm7 = vcmp.eq.s32.totalorder %v597_v42, 1  ;;  %v668_v14 = vsel %vm1948_vm6, 0, %v667_v7 }
  0x28   : > { %v665_v37 = vsel %vm1948_vm6, 0, %v664_v35  ;;  %v789_v57 = vld [vmem:[#allocation2 + $0xc] sm:$0xf]  ;;  %649 = vst [vmem:[#allocation2 + $0x24] sm:$0x1] %v648_v55  ;;  %s1752_s30 = smov 8  }
  0x29   : > { %666 = vst [vmem:[#allocation2 + $0x20] sm:$0x1] %v665_v37  ;;  %v700_v8 = vld [vmem:[#allocation2] sm:$0xf]  ;;  %vm676_vm10 = vsmask.f32 4368 }
  0x2a   : > { %669 = vst [vmem:[#allocation2 + $0x2c] sm:$0x1] %v668_v14  ;;  %vm2006_vm11 = vmor %vm636_vm3, %vm676_vm10  ;;  %v793_v25 = vld [vmem:[#allocation2 + $0x14] sm:$0x1]  ;;  %vm895_vm13 = vsmask.f32 7424 }
  0x2b   : > { %s628_s25 = scalar_select %p603_p2, 1, 0  ;;  %vm1084_vm2 = vcmask 97280   ;;  %vm1093_vm3 = vcmask 130048   ;;  %vm1111_vm5 = vcmask 195584  }
  0x2c   : > { %s1753_s20 = smov 20   ;;  %s1754_s19 = smov 16  }
  0x2d   : > { %s1755_s17 = smov 4   ;;  %s1756_s1 = smov 24  }
  0x2e   : > { %s1757_s14 = smov 32   ;;  %s1758_s18 = smov 28  }
  0x34   : > { %1497 = vmatmul.msk.bf16.gmra.mxu0 %vm471_vm1, %v1923_v10 }
  0x44   : > { %1498 = vmatmul.msk.bf16.gmra.mxu0 %vm471_vm1, %v1930_v16 }
  0x54   : > { %1499 = vmatmul.msk.bf16.gmra.mxu0 %vm471_vm1, %v1936_v19 }
  0xa1   : > { %v497_v34 = vpop.f32.mrf.mxu0 }
  0xa2   : > { %v521_v36 = vmul.f32 %v1961_v30, %v497_v34  ;;  %v585_v39 = vpop.f32.mrf.mxu1 }
  0xa3   : > { %v590_v41 = vmul.f32 %v1961_v30, %v585_v39  ;;  %v705_v39 = vld [vmem:[#allocation2 + $0x8] sm:$0x1] }
  0xa4   : > { %v533_v38 = vadd.f32 %v1967_v32, %v521_v36 }
  0xa5   : > { %v592_v44 = vadd.f32 %v1967_v32, %v590_v41 }
  0xa6   : > { %v541_v40 = vmax.f32 %v533_v38, 0.0 }
  0xa7   : > { %v594_v48 = vmax.f32 %v592_v44, 0.0  ;;  %v650_v44 = vld [vmem:[#allocation2 + $0x30] sm:$0x1] }
  0xa8   : > { %v549_v43 = vpack.c.bf16 %v541_v40, %v541_v40 }
  0xa9   : > { %v499_v46 = vpop.f32.mrf.mxu0  ;;  %v599_v53 = vsel %vm1977_vm7, %v594_v48, 0.0  ;;  %v651_v48 = vsel %vm1941_vm4, 0, %v650_v44 }
  0xaa   : > { %v709_v47 = vshrl.u32 %v549_v43, 16  ;;  %v522_v49 = vmul.f32 %v1961_v30, %v499_v46  ;;  %v712_v50 = vshll.u32 %v549_v43, 16  ;;  %v601_v58 = vpack.c.bf16 %v599_v53, %v599_v53  ;;  %v587_v59 = vpop.f32.mrf.mxu1  ;;  %652 = vst [vmem:[#allocation2 + $0x30] sm:$0x1] %v651_v48  ;;  %v796_v53 = vld [vmem:[#allocation2 + $0x18] sm:$0xf] }
  0xab   : > { %v591_v62 = vmul.f32 %v1961_v30, %v587_v59 }
  0xac   : > { %v711_v52 = vrot.slane %v709_v47, 7  ;;  %v534_v54 = vadd.f32 %v1967_v32, %v522_v49  ;;  %v679_v63 = vshrl.u32 %v601_v58, 16  ;;  %v682_v0 = vshll.u32 %v601_v58, 16 }
  0xad   : > { %v593_v3 = vadd.f32 %v1967_v32, %v591_v62  ;;  %v670_v62 = vld [vmem:[#allocation2 + $0x38] sm:$0x1] }
  0xae   : > { %v714_v60 = vor.u32 %v712_v50, %v711_v52  ;;  %v542_v61 = vmax.f32 %v534_v54, 0.0  ;;  %v681_v5 = vrot.slane %v679_v63, 7  ;;  %v715_v27 = vrot.slane %v711_v52, 4 }
  0xaf   : > { %v595_v11 = vmax.f32 %v593_v3, 0.0 }
  0xb0   : > { %v790_v1 = vsel %vm1989_vm9, %v714_v60, %v789_v57  ;;  %v550_v2 = vpack.c.bf16 %v542_v61, %v542_v61  ;;  %v684_v13 = vor.u32 %v682_v0, %v681_v5  ;;  %v685_v45 = vrot.slane %v681_v5, 4 }
  0xb1   : > { %791 = vst [vmem:[#allocation2 + $0xc] sm:$0xf] %v790_v1  ;;  %v502_v6 = vpop.f32.mrf.mxu0  ;;  %v600_v18 = vsel %vm1977_vm7, %v595_v11, 0.0  ;;  %v671_v5 = vsel %vm1948_vm6, 0, %v670_v62  ;;  %vm1129_vm7 = vcmask 261120  }
  0xb2   : > { %v717_v9 = vshrl.u32 %v550_v2, 16  ;;  %v523_v12 = vmul.f32 %v1961_v30, %v502_v6  ;;  %v720_v17 = vshll.u32 %v550_v2, 16  ;;  %v701_v22 = vsel %vm1989_vm9, %v684_v13, %v700_v8  ;;  %v800_v8 = vld [vmem:[#allocation2 + $0x20] sm:$0x1]  ;;  %672 = vst [vmem:[#allocation2 + $0x38] sm:$0x1] %v671_v5 }
  0xb3   : > { %v602_v26 = vpack.c.bf16 %v600_v18, %v600_v18  ;;  %702 = vst [vmem:[#allocation2] sm:$0xf] %v701_v22 }
  0xb4   : > { %v719_v15 = vrot.slane %v717_v9, 7  ;;  %v535_v20 = vadd.f32 %v1967_v32, %v523_v12 }
  0xb5   : > { %v687_v33 = vshrl.u32 %v602_v26, 16  ;;  %v690_v38 = vshll.u32 %v602_v26, 16  ;;  %v617_v26 = vpop.f32.mrf.mxu2 }
  0xb6   : > { %v722_v28 = vor.u32 %v720_v17, %v719_v15  ;;  %v724_v29 = vrot.slane %v719_v15, 4  ;;  %v543_v31 = vmax.f32 %v535_v20, 0.0 }
  0xb7   : > { %v689_v37 = vrot.slane %v687_v33, 7 }
  0xb8   : > { %v723_v34 = vsel %vm2006_vm11, %v715_v27, %v722_v28  ;;  %v794_v35 = vsel %vm1941_vm4, %v724_v29, %v793_v25  ;;  %v551_v36 = vpack.c.bf16 %v543_v31, %v543_v31 }
  0xb9   : > { %792 = vst.msk [vmem:[#allocation2 + $0x10] sm:$0xf] %vm698_vm8, %v723_v34  ;;  %v504_v40 = vpop.f32.mrf.mxu0  ;;  %v692_v46 = vor.u32 %v690_v38, %v689_v37  ;;  %v694_v47 = vrot.slane %v689_v37, 4 }
  0xba   : > { %795 = vst [vmem:[#allocation2 + $0x14] sm:$0x1] %v794_v35  ;;  %v726_v41 = vshrl.u32 %v551_v36, 16  ;;  %v729_v42 = vshll.u32 %v551_v36, 16  ;;  %v524_v43 = vmul.f32 %v1961_v30, %v504_v40 }
  0xbb   : > { %v693_v51 = vsel %vm2006_vm11, %v685_v45, %v692_v46  ;;  %v706_v52 = vsel %vm1941_vm4, %v694_v47, %v705_v39 }
  0xbc   : > { %v728_v49 = vrot.slane %v726_v41, 7  ;;  %v536_v50 = vadd.f32 %v1967_v32, %v524_v43  ;;  %704 = vst.msk [vmem:[#allocation2 + $0x4] sm:$0xf] %vm698_vm8, %v693_v51  ;;  %v622_v43 = vmul.f32 %v1961_v30, %v617_v26  ;;  %v673_v51 = vld [vmem:[#allocation2 + $0x44] sm:$0x1] }
  0xbd   : > { %707 = vst [vmem:[#allocation2 + $0x8] sm:$0x1] %v706_v52  ;;  %v803_v52 = vld [vmem:[#allocation2 + $0x24] sm:$0xf]  ;;  %v619_v62 = vpop.f32.mrf.mxu2 }
  0xbe   : > { %v731_v54 = vor.u32 %v729_v42, %v728_v49  ;;  %v544_v55 = vmax.f32 %v536_v50, 0.0  ;;  %v732_v2 = vrot.slane %v728_v49, 4  ;;  %v624_v48 = vadd.f32 %v1967_v32, %v622_v43  ;;  %v653_v50 = vld [vmem:[#allocation2 + $0x3c] sm:$0x1] }
  0xbf   : > { %v629_v49 = vstv %s628_s25 }
  0xc0   : > { %v797_v57 = vsel %vm1989_vm9, %v731_v54, %v796_v53  ;;  %v552_v58 = vpack.c.bf16 %v544_v55, %v544_v55  ;;  %v2026_v59 = vld [vmem:[#allocation2 + $0xc] sm:$0xff]  ;;  %vm2059_vm14 = vcmp.eq.s32.totalorder %v629_v49, 1 }
  0xc1   : > { %798 = vst [vmem:[#allocation2 + $0x18] sm:$0xf] %v797_v57  ;;  %v507_v60 = vpop.f32.mrf.mxu0  ;;  %v850_v61 = vld [vmem:[#allocation2 + $0x14] sm:$0x1]  ;;  %978 = vrot.lane.b32.xlu1 %v2026_v59, %s1751_s16  ;;  %v911_v3 = vshll.u32 %v2026_v59, 16  ;;  %v956_v12 = vrot.slane %v2026_v59, 1 }
  0xc2   : > { %v734_v63 = vshrl.u32 %v552_v58, 16  ;;  %v525_v0 = vmul.f32 %v1961_v30, %v507_v60  ;;  %v888_v1 = vunpack.c.l.b16 %v850_v61  ;;  %v737_v7 = vshll.u32 %v552_v58, 16 }
  0xc3   : > { %v909_v13 = vshrl.u32 %v2026_v59, 16  ;;  %v913_v14 = vrot.slane %v911_v3, 1  ;;  %v2038_v15 = vld [vmem:[#allocation2] sm:$0xff]  ;;  %v626_v61 = vmax.f32 %v624_v48, 0.0 }
  0xc4   : > { %v736_v6 = vrot.slane %v734_v63, 7  ;;  %v537_v9 = vadd.f32 %v1967_v32, %v525_v0  ;;  %v892_v11 = vpack.c.b16 %v888_v1, %v888_v1  ;;  %v847_v25 = vld [vmem:[#allocation2 + $0x8] sm:$0x1]  ;;  %v899_v39 = vshll.u32 %v2038_v15, 16 }
  0xc5   : > { %v914_v27 = vor.u32 %v913_v14, %v909_v13  ;;  %v887_v29 = vunpack.c.l.b16 %v847_v25  ;;  %v953_v53 = vrot.slane %v2038_v15, 1  ;;  %v897_v54 = vshrl.u32 %v2038_v15, 16 }
  0xc6   : > { %v739_v17 = vor.u32 %v737_v7, %v736_v6  ;;  %v741_v18 = vrot.slane %v736_v6, 4  ;;  %v545_v20 = vmax.f32 %v537_v9, 0.0  ;;  %v957_v22 = vrot.slane %v892_v11, 1 }
  0xc7   : > { %v916_v28 = vshll.u32 %v892_v11, 16  ;;  %v891_v38 = vpack.c.b16 %v887_v29, %v887_v29  ;;  %v901_v60 = vrot.slane %v899_v39, 1  ;;  %v654_v0 = vsel %vm1941_vm4, 0, %v653_v50 }
  0xc8   : > { %v740_v31 = vsel %vm2006_vm11, %v732_v2, %v739_v17  ;;  %v801_v33 = vsel %vm1941_vm4, %v741_v18, %v800_v8  ;;  %v553_v34 = vpack.c.bf16 %v545_v20, %v545_v20  ;;  %v958_v35 = vsel %vm952_vm12, %v956_v12, %v957_v22  ;;  %655 = vst [vmem:[#allocation2 + $0x3c] sm:$0x1] %v654_v0  ;;  %v810_v0 = vld [vmem:[#allocation2 + $0x30] sm:$0xf] }
  0xc9   : > { %799 = vst.msk [vmem:[#allocation2 + $0x1c] sm:$0xf] %vm698_vm8, %v740_v31  ;;  %967 = vrot.lane.b32.xlu0 %v958_v35, %s1752_s30  ;;  %1012 = vrot.lane.b32.xlu2 %v958_v35, %s1753_s20  ;;  %v509_v36 = vpop.f32.mrf.mxu0  ;;  %v918_v37 = vrot.slane %v916_v28, 1  ;;  %v954_v45 = vrot.slane %v891_v38, 1  ;;  %v904_v63 = vshll.u32 %v891_v38, 16  ;;  %v623_v1 = vmul.f32 %v1961_v30, %v619_v62 }
  0xca   : > { %802 = vst [vmem:[#allocation2 + $0x20] sm:$0x1] %v801_v33  ;;  %v743_v40 = vshrl.u32 %v553_v34, 16  ;;  %v746_v41 = vshll.u32 %v553_v34, 16  ;;  %v526_v42 = vmul.f32 %v1961_v30, %v509_v36  ;;  %v674_v2 = vsel %vm1948_vm6, 0, %v673_v51 }
  0xcb   : > { %v919_v44 = vsel %vm895_vm13, %v914_v27, %v918_v37  ;;  %v955_v6 = vsel %vm952_vm12, %v953_v53, %v954_v45  ;;  %v631_v8 = vsel %vm2059_vm14, %v626_v61, 0.0  ;;  %v625_v12 = vadd.f32 %v1967_v32, %v623_v1  ;;  %675 = vst [vmem:[#allocation2 + $0x44] sm:$0x1] %v674_v2  ;;  %v807_v33 = vld [vmem:[#allocation2 + $0x2c] sm:$0x1] }
  0xcc   : > { %v745_v46 = vrot.slane %v743_v40, 7  ;;  %v538_v47 = vadd.f32 %v1967_v32, %v526_v42  ;;  %1001 = vrot.lane.b32.xlu1 %v919_v44, %s1754_s19  ;;  %v633_v11 = vpack.c.bf16 %v631_v8, %v631_v8  ;;  %v902_v17 = vor.u32 %v901_v60, %v897_v54 }
  0xcd   : > { %v906_v22 = vrot.slane %v904_v63, 1  ;;  %v627_v35 = vmax.f32 %v625_v12, 0.0  ;;  %vm1120_vm6 = vcmask 228352  }
  0xce   : > { %v748_v57 = vor.u32 %v746_v41, %v745_v46  ;;  %v546_v58 = vmax.f32 %v538_v47, 0.0  ;;  %v749_v20 = vrot.slane %v745_v46, 4  ;;  %v818_v25 = vshrl.u32 %v633_v11, 16 }
  0xcf   : > { %v821_v26 = vshll.u32 %v633_v11, 16  ;;  %v838_v41 = vld [vmem:[#allocation2 + $0x3c] sm:$0xf]  ;;  %v907_v46 = vsel %vm895_vm13, %v902_v17, %v906_v22  ;;  %v632_v50 = vsel %vm2059_vm14, %v627_v35, 0.0 }
  0xd0   : > { %v804_v3 = vsel %vm1989_vm9, %v748_v57, %v803_v52  ;;  %v554_v5 = vpack.c.bf16 %v546_v58, %v546_v58  ;;  %v2071_v7 = vld [vmem:[#allocation2 + $0x18] sm:$0xff]  ;;  %v820_v34 = vrot.slane %v818_v25, 7  ;;  %v634_v54 = vpack.c.bf16 %v632_v50, %v632_v50 }
  0xd1   : > { %805 = vst [vmem:[#allocation2 + $0x24] sm:$0xf] %v804_v3  ;;  %965 = vrot.lane.b32.xlu0 %v955_v6, %s1752_s30  ;;  %946 = vrot.lane.b32.xlu2 %v919_v44, %s1755_s17  ;;  %v512_v23 = vpop.f32.mrf.mxu0  ;;  %v853_v9 = vld [vmem:[#allocation2 + $0x20] sm:$0x1]  ;;  %v923_v42 = vshll.u32 %v2071_v7, 16  ;;  %v959_v48 = vrot.slane %v2071_v7, 1 }
  0xd2   : > { %v751_v13 = vshrl.u32 %v554_v5, 16  ;;  %v527_v14 = vmul.f32 %v1961_v30, %v512_v23  ;;  %v889_v18 = vunpack.c.l.b16 %v853_v9  ;;  %v754_v28 = vshll.u32 %v554_v5, 16  ;;  %v842_v23 = vld [vmem:[#allocation2 + $0x44] sm:$0x1] }
  0xd3   : > { %v823_v40 = vor.u32 %v821_v26, %v820_v34  ;;  %v925_v58 = vrot.slane %v923_v42, 1  ;;  %v826_v63 = vshrl.u32 %v634_v54, 16  ;;  %v829_v55 = vshll.u32 %v634_v54, 16 }
  0xd4   : > { %v753_v27 = vrot.slane %v751_v13, 7  ;;  %v539_v29 = vadd.f32 %v1967_v32, %v527_v14  ;;  %980 = vrot.lane.b32.xlu1 %v2071_v7, %s1751_s16  ;;  %v893_v31 = vpack.c.b16 %v889_v18, %v889_v18  ;;  %v921_v1 = vshrl.u32 %v2071_v7, 16 }
  0xd5   : > { %v839_v49 = vsel %vm1989_vm9, %v823_v40, %v838_v41  ;;  %v828_v5 = vrot.slane %v826_v63, 7 }
  0xd6   : > { %v756_v36 = vor.u32 %v754_v28, %v753_v27  ;;  %v758_v37 = vrot.slane %v753_v27, 4  ;;  %v547_v38 = vmax.f32 %v539_v29, 0.0  ;;  %v960_v39 = vrot.slane %v893_v31, 1  ;;  %840 = vst [vmem:[#allocation2 + $0x3c] sm:$0xf] %v839_v49 }
  0xd7   : > { %v928_v60 = vshll.u32 %v893_v31, 16  ;;  %v926_v6 = vor.u32 %v925_v58, %v921_v1  ;;  %v833_v12 = vrot.slane %v828_v5, 4  ;;  %v814_v29 = vld [vmem:[#allocation2 + $0x38] sm:$0x1] }
  0xd8   : > { %v757_v43 = vsel %vm2006_vm11, %v749_v20, %v756_v36  ;;  %v808_v44 = vsel %vm1941_vm4, %v758_v37, %v807_v33  ;;  %v555_v45 = vpack.c.bf16 %v547_v38, %v547_v38  ;;  %v961_v57 = vsel %vm952_vm12, %v959_v48, %v960_v39 }
  0xd9   : > { %806 = vst.msk [vmem:[#allocation2 + $0x28] sm:$0xf] %vm698_vm8, %v757_v43  ;;  %944 = vrot.lane.b32.xlu0 %v907_v46, %s1755_s17  ;;  %1025 = vrot.lane.b32.xlu2 %v2071_v7, %s1756_s1  ;;  %v514_v47 = vpop.f32.mrf.mxu0  ;;  %v930_v8 = vrot.slane %v928_v60, 1  ;;  %v843_v20 = vsel %vm1941_vm4, %v833_v12, %v842_v23 }
  0xda   : > { %809 = vst [vmem:[#allocation2 + $0x2c] sm:$0x1] %v808_v44  ;;  %v760_v51 = vshrl.u32 %v555_v45, 16  ;;  %v763_v52 = vshll.u32 %v555_v45, 16  ;;  %v528_v53 = vmul.f32 %v1961_v30, %v514_v47  ;;  %v824_v30 = vrot.slane %v820_v34, 4 }
  0xdb   : > { %v931_v56 = vsel %vm895_vm13, %v926_v6, %v930_v8  ;;  %844 = vst [vmem:[#allocation2 + $0x44] sm:$0x1] %v843_v20  ;;  %v1565_v20 = vld [vmem:[%s2348_s2 + $0x8] sm:$0xff] }
  0xdc   : > { %v762_v61 = vrot.slane %v760_v51, 7  ;;  %v540_v62 = vadd.f32 %v1967_v32, %v528_v53  ;;  %1059 = vrot.lane.b32.xlu1 %v961_v57, %s1757_s14  ;;  %v831_v32 = vor.u32 %v829_v55, %v828_v5 }
  0xde   : > { %v765_v2 = vor.u32 %v763_v52, %v762_v61  ;;  %v548_v3 = vmax.f32 %v540_v62, 0.0  ;;  %v832_v18 = vsel %vm2006_vm11, %v824_v30, %v831_v32  ;;  %v766_v25 = vrot.slane %v762_v61, 4 }
  0xdf   : > { %841 = vst.msk [vmem:[#allocation2 + $0x40] sm:$0xf] %vm698_vm8, %v832_v18 }
  0xe0   : > { %v811_v9 = vsel %vm1989_vm9, %v765_v2, %v810_v0  ;;  %v556_v11 = vpack.c.bf16 %v548_v3, %v548_v3  ;;  %v2104_v13 = vld [vmem:[#allocation2 + $0x24] sm:$0xff] }
  0xe1   : > { %812 = vst [vmem:[#allocation2 + $0x30] sm:$0xf] %v811_v9  ;;  %969 = vrot.lane.b32.xlu2 %v961_v57, %s1752_s30  ;;  %1014 = vrot.lane.b32.xlu0 %v961_v57, %s1753_s20  ;;  %v856_v14 = vld [vmem:[#allocation2 + $0x2c] sm:$0x1]  ;;  %v935_v28 = vshll.u32 %v2104_v13, 16  ;;  %v933_v39 = vshrl.u32 %v2104_v13, 16 }
  0xe2   : > { %v768_v17 = vshrl.u32 %v556_v11, 16  ;;  %v890_v22 = vunpack.c.l.b16 %v856_v14  ;;  %v771_v27 = vshll.u32 %v556_v11, 16  ;;  %v962_v49 = vrot.slane %v2104_v13, 1  ;;  %v862_v61 = vld [vmem:[#allocation2 + $0x44] sm:$0x1] }
  0xe3   : > { %v937_v37 = vrot.slane %v935_v28, 1  ;;  %v1034_v62 = vunpack.c.l.b16 %v862_v61  ;;  %v1142_v11 = vld [vmem:[%s2348_s2 + $0x10] sm:$0x3] }
  0xe4   : > { %v770_v26 = vrot.slane %v768_v17, 7  ;;  %948 = vrot.lane.b32.xlu1 %v931_v56, %s1755_s17  ;;  %v894_v31 = vpack.c.b16 %v890_v22, %v890_v22  ;;  %v1152_v32 = vunpack.c.l.b16 %v1142_v11 }
  0xe5   : > { %v938_v24 = vor.u32 %v937_v37, %v933_v39  ;;  %v1035_v55 = vpack.c.b16 %v1034_v62, %v1034_v62  ;;  %v1304_v62 = vld [vmem:[%s2350_s4] sm:$0x3] }
  0xe6   : > { %v773_v33 = vor.u32 %v771_v27, %v770_v26  ;;  %v775_v34 = vrot.slane %v770_v26, 4  ;;  %v940_v38 = vshll.u32 %v894_v31, 16  ;;  %v963_v45 = vrot.slane %v894_v31, 1  ;;  %v1563_v63 = vld [vmem:[#allocation2 + $0x3c] sm:$0xff] }
  0xe7   : > { %v1039_v0 = vshll.u32 %v1563_v63, 16  ;;  %v1056_v1 = vrot.slane %v1563_v63, 1  ;;  %v1057_v2 = vrot.slane %v1035_v55, 1  ;;  %v1037_v3 = vshrl.u32 %v1563_v63, 16 }
  0xe8   : > { %v774_v35 = vsel %vm2006_vm11, %v766_v25, %v773_v33  ;;  %v815_v36 = vsel %vm1941_vm4, %v775_v34, %v814_v29  ;;  %v942_v40 = vrot.slane %v940_v38, 1  ;;  %v964_v52 = vsel %vm952_vm12, %v962_v49, %v963_v45 }
  0xe9   : > { %813 = vst.msk [vmem:[#allocation2 + $0x34] sm:$0xf] %vm698_vm8, %v774_v35  ;;  %1003 = vrot.lane.b32.xlu2 %v931_v56, %s1754_s19  ;;  %1048 = vrot.lane.b32.xlu0 %v931_v56, %s1758_s18  ;;  %v1041_v30 = vrot.slane %v1039_v0, 1  ;;  %v1044_v5 = vshll.u32 %v1035_v55, 16  ;;  %v1058_v6 = vsel %vm952_vm12, %v1056_v1, %v1057_v2  ;;  %v1155_v14 = vpack.c.b16 %v1152_v32, %v1152_v32  ;;  %v1564_v56 = vld [vmem:[%s2348_s2] sm:$0xff] }
  0xea   : > { %816 = vst [vmem:[#allocation2 + $0x38] sm:$0x1] %v815_v36  ;;  %v943_v21 = vsel %vm895_vm13, %v938_v24, %v942_v40  ;;  %vm1102_vm4 = vcmask 162816   ;;  %vm1158_vm8 = vcmask 293888   ;;  %v1306_v55 = vsel %vm484_vm0, %v1304_v62, 0 }
  0xeb   : > { %v1042_v8 = vor.u32 %v1041_v30, %v1037_v3  ;;  %v1046_v23 = vrot.slane %v1044_v5, 1  ;;  %v1168_v17 = vsel %vm484_vm0, %v1155_v14, 0  ;;  %1315 = vmatpush.bf16.msrb.mxu2 %v1306_v55 }
  0xec   : > { %1027 = vrot.lane.b32.xlu1 %v2104_v13, %s1756_s1  ;;  %1175 = vmatpush.bf16.msra.mxu3 %v1168_v17 }
  0xed   : > { %v1047_v9 = vsel %vm895_vm13, %v1042_v8, %v1046_v23 }
  0xee   : > { %1545 = vmatmul.msk.bf16.vlgmr.msrb.gmra.mxu2 %vm471_vm1, %v1916_v4 }
  0xf0   : > { %v1562_v41 = vld [vmem:[#allocation2 + $0x30] sm:$0xff]  ;;  %1176 = vmatpush.bf16.msra.mxu3 %v1565_v20 }
  0xf1   : > { %982 = vrot.lane.b32.xlu0 %v2104_v13, %s1751_s16  ;;  %1050 = vrot.lane.b32.xlu2 %v943_v21, %s1758_s18  ;;  %v859_v42 = vld [vmem:[#allocation2 + $0x38] sm:$0x1]  ;;  %v992_v44 = vshll.u32 %v1562_v41, 16  ;;  %v990_v47 = vshrl.u32 %v1562_v41, 16  ;;  %v1009_v58 = vrot.slane %v1562_v41, 1 }
  0xf2   : > { %v987_v43 = vunpack.c.l.b16 %v859_v42 }
  0xf3   : > { %v994_v48 = vrot.slane %v992_v44, 1 }
  0xf4   : > { %1005 = vrot.lane.b32.xlu1 %v943_v21, %s1754_s19  ;;  %v988_v46 = vpack.c.b16 %v987_v43, %v987_v43  ;;  %1177 = vmatpush.bf16.msra.mxu3 %v1564_v56 }
  0xf5   : > { %v995_v50 = vor.u32 %v994_v48, %v990_v47 }
  0xf6   : > { %v997_v51 = vshll.u32 %v988_v46, 16  ;;  %v1010_v57 = vrot.slane %v988_v46, 1 }
  0xf8   : > { %v999_v53 = vrot.slane %v997_v51, 1  ;;  %v1011_v60 = vsel %vm952_vm12, %v1009_v58, %v1010_v57 }
  0xf9   : > { %1061 = vrot.lane.b32.xlu0 %v964_v52, %s1757_s14  ;;  %1016 = vrot.lane.b32.xlu2 %v964_v52, %s1753_s20 }
  0xfa   : > { %v1000_v54 = vsel %vm895_vm13, %v995_v50, %v999_v53 }
  0xfc   : > { %1052 = vrot.lane.b32.xlu1 %v1000_v54, %s1758_s18 }
  0xfe   : > { %1546 = vmatmul.msk.bf16.gmra.mxu2 %vm471_vm1, %v1923_v10  ;;  %v1235_v10 = vld [vmem:[%s2349_s3] sm:$0x3] }
 0x101   : > { %1029 = vrot.lane.b32.xlu0 %v1562_v41, %s1756_s1  ;;  %1063 = vrot.lane.b32.xlu2 %v1011_v60, %s1757_s14 }
 0x104   : > { %971 = vrot.lane.b32.xlu1 %v964_v52, %s1752_s30 }
 0x109   : > { %950 = vrot.lane.b32.xlu0 %v943_v21, %s1755_s17  ;;  %984 = vrot.lane.b32.xlu2 %v1562_v41, %s1751_s16  ;;  %s445_s16 = sand.u32 1, %s1725_s26   ;;  %s1552_s17 = sshll.u32 %s1737_s29, 5 }
 0x10a   : > { %s1491_s25 = sshll.u32 %s445_s16, 6 }
 0x10c   : > { %1018 = vrot.lane.b32.xlu1 %v1011_v60, %s1753_s20  ;;  %s2254_s20 = scalar_lea.vmem [#allocation3], %s1491_s25  ;;  %s1386_s25 = scalar_lea.sflag [#allocation4], %s445_s16 }
 0x10d   : > { %s1401_s23 = sshll.u32 %s2254_s20, 4  ;;  %s1402_s23 = int_to_ptr.vmem [resolvable:$true] %s1401_s23 }
 0x10e   : > { %1547 = vmatmul.msk.bf16.gmra.mxu2 %vm471_vm1, %v1930_v16  ;;  %v1650_v16 = vld [vmem:[%s2354_s8] ss:$0 sm:$0xff] }
 0x111   : > { %1031 = vrot.lane.b32.xlu2 %v1563_v63, %s1756_s1  ;;  %1007 = vrot.lane.b32.xlu0 %v1000_v54, %s1754_s19  ;;  %s1566_s19 = sshll.u32 %s1733_s28, 3  ;;  %s1675_s28 = scalar_lea.hbm %s2359_s13, 512 }
 0x112   : > { %s1398_s1 = sadd.s32 %s1566_s19, %s1552_s17 }
 0x114   : > { %1065 = vrot.lane.b32.xlu1 %v1058_v6, %s1757_s14  ;;  %s1553_s14 = sshll.u32 %s1398_s1, 3 }
 0x119   : > { %1054 = vrot.lane.b32.xlu0 %v1047_v9, %s1758_s18  ;;  %s1400_s18 = scalar_lea.hbm %s2359_s13, %s1553_s14 }
 0x11a   : > { %s1403_s24 = sshll.u32 %s1400_s18, 4  ;;  %s1404_s24 = int_to_ptr.hbm [resolvable:$true] %s1403_s24 }
 0x11b   : > { %s1669_s19 = sshra.s32 %s1404_s24, 4  ;;  %s1670_s19 = int_to_ptr.hbm [resolvable:$true] %s1669_s19 }
 0x11c   : > { %s1671_s17 = scalar_lea.hbm %s1670_s19, 64  ;;  %p1676_p7 = scmp.lt.s32.totalorder %s1670_s19, %s2359_s13 }
 0x11d   : > { %p1672_p4 = scmp.ne.s32.totalorder %s1670_s19, %s1671_s17  ;;  %p1677_p9 = scmp.lt.s32.totalorder %s1675_s28, %s1671_s17 }
 0x11e   : > { %1548 = vmatmul.msk.bf16.gmra.mxu2 %vm471_vm1, %v1936_v19 }
 0x11f   : > { %p1673_p5 = pnand %p1672_p4, %p1881_p3  ;;  %p1678_p10 = por %p1677_p9, %p1676_p7 }
 0x121   : > { %p1674_p6 = pneg %p1673_p5 }
 0x123   : > { %v1013_v12 = vpop.permute.xlu2 %1012  ;;  %p1679_p11 = pnand %p1678_p10, %p1674_p6 }
 0x12b   : > { %v947_v22 = vpop.permute.xlu2 %946 }
 0x12c   : > { %v1070_v45 = vsel %vm471_vm1, %v2026_v59, %v947_v22 }
 0x133   : > { %v979_v18 = vpop.permute.xlu1 %978  ;;  %v1026_v28 = vpop.permute.xlu2 %1025 }
 0x13b   : > { %v968_v25 = vpop.permute.xlu0 %967  ;;  %v970_v34 = vpop.permute.xlu2 %969 }
 0x13c   : > { %v1079_v46 = vsel %vm1075_vm15, %v1070_v45, %v968_v25 }
 0x13e   : > { %v1002_v26 = vpop.permute.xlu1 %1001 }
 0x143   : > { %v966_v27 = vpop.permute.xlu0 %965  ;;  %v1004_v40 = vpop.permute.xlu2 %1003 }
 0x146   : > { %v981_v29 = vpop.permute.xlu1 %980 }
 0x147   : > { %v1088_v48 = vsel %vm1084_vm2, %v1079_v46, %v981_v29  ;;  %v1649_v29 = vld [vmem:[%s2353_s7] ss:$0 sm:$0xff] }
 0x148   : > { %v1097_v50 = vsel %vm1093_vm3, %v1088_v48, %v1004_v40 }
 0x14b   : > { %v945_v31 = vpop.permute.xlu0 %944  ;;  %v1051_v47 = vpop.permute.xlu2 %1050 }
 0x14c   : > { %v1068_v33 = vsel %vm471_vm1, %v2038_v15, %v945_v31 }
 0x14d   : > { %v1077_v36 = vsel %vm1075_vm15, %v1068_v33, %v966_v27  ;;  %v1249_v27 = vsel %vm484_vm0, %v1235_v10, 0 }
 0x14e   : > { %v1060_v35 = vpop.permute.xlu1 %1059  ;;  %v1086_v37 = vsel %vm1084_vm2, %v1077_v36, %v979_v18  ;;  %1258 = vmatpush.bf16.msrb.mxu1 %v1249_v27 }
 0x14f   : > { %v1095_v39 = vsel %vm1093_vm3, %v1086_v37, %v1002_v26 }
 0x150   : > { %v1104_v21 = vsel %vm1102_vm4, %v1095_v39, %v1013_v12 }
 0x151   : > { %v1113_v15 = vsel %vm1111_vm5, %v1104_v21, %v1026_v28 }
 0x153   : > { %v1015_v38 = vpop.permute.xlu0 %1014  ;;  %v1017_v58 = vpop.permute.xlu2 %1016 }
 0x154   : > { %v1106_v52 = vsel %vm1102_vm4, %v1097_v50, %v1015_v38 }
 0x156   : > { %v949_v24 = vpop.permute.xlu1 %948 }
 0x157   : > { %v1072_v59 = vsel %vm471_vm1, %v2071_v7, %v949_v24 }
 0x158   : > { %v1081_v63 = vsel %vm1075_vm15, %v1072_v59, %v970_v34 }
 0x15b   : > { %v1049_v41 = vpop.permute.xlu0 %1048  ;;  %v1064_v7 = vpop.permute.xlu2 %1063 }
 0x15c   : > { %v1122_v42 = vsel %vm1120_vm6, %v1113_v15, %v1049_v41 }
 0x15d   : > { %v1131_v43 = vsel %vm1129_vm7, %v1122_v42, %v1060_v35 }
 0x15e   : > { %1537 = vmatmul.msk.bf16.vlgmr.msra.gmra.mxu3 %vm1158_vm8, %v1131_v43  ;;  %v1028_v44 = vpop.permute.xlu1 %1027 }
 0x15f   : > { %v1115_v53 = vsel %vm1111_vm5, %v1106_v52, %v1028_v44 }
 0x160   : > { %v1124_v57 = vsel %vm1120_vm6, %v1115_v53, %v1051_v47 }
 0x163   : > { %v983_v49 = vpop.permute.xlu0 %982  ;;  %v985_v11 = vpop.permute.xlu2 %984 }
 0x164   : > { %v1090_v0 = vsel %vm1084_vm2, %v1081_v63, %v983_v49 }
 0x166   : > { %v1006_v51 = vpop.permute.xlu1 %1005 }
 0x167   : > { %v1099_v1 = vsel %vm1093_vm3, %v1090_v0, %v1006_v51 }
 0x168   : > { %v1108_v3 = vsel %vm1102_vm4, %v1099_v1, %v1017_v58 }
 0x16b   : > { %v1062_v54 = vpop.permute.xlu0 %1061  ;;  %v1032_v20 = vpop.permute.xlu2 %1031 }
 0x16c   : > { %v1133_v60 = vsel %vm1129_vm7, %v1124_v57, %v1062_v54 }
 0x16e   : > { %1538 = vmatmul.msk.bf16.gmra.mxu3 %vm1158_vm8, %v1133_v60  ;;  %v1053_v61 = vpop.permute.xlu1 %1052 }
 0x171   : > { %v1317_v0 = vpop.f32.mrf.mxu2 }
 0x173   : > { %v1030_v2 = vpop.permute.xlu0 %1029 }
 0x174   : > { %v1117_v30 = vsel %vm1111_vm5, %v1108_v3, %v1030_v2  ;;  %v2229_v2 = vld [vmem:[%s2357_s11] ss:$0 sm:$0xff] }
 0x175   : > { %v1126_v6 = vsel %vm1120_vm6, %v1117_v30, %v1053_v61  ;;  %v2235_v3 = vld [vmem:[%s2358_s12] ss:$0 sm:$0xff] }
 0x176   : > { %v972_v5 = vpop.permute.xlu1 %971  ;;  %v1135_v23 = vsel %vm1129_vm7, %v1126_v6, %v1064_v7  ;;  %v1341_v7 = vmul.f32 %v2229_v2, %v1317_v0  ;;  %v2240_v30 = vld [vmem:[%s2355_s9] ss:$0 sm:$0xff] }
 0x179   : > { %v1319_v1 = vpop.f32.mrf.mxu2 }
 0x17b   : > { %v951_v8 = vpop.permute.xlu0 %950 }
 0x17c   : > { %v1074_v9 = vsel %vm471_vm1, %v2104_v13, %v951_v8  ;;  %v1353_v8 = vadd.f32 %v2235_v3, %v1341_v7 }
 0x17d   : > { %v1083_v32 = vsel %vm1075_vm15, %v1074_v9, %v972_v5  ;;  %v2245_v5 = vld [vmem:[%s2356_s10] ss:$0 sm:$0xff] }
 0x17e   : > { %1539 = vmatmul.msk.bf16.gmra.mxu3 %vm1158_vm8, %v1135_v23  ;;  %v1019_v4 = vpop.permute.xlu1 %1018  ;;  %v1092_v14 = vsel %vm1084_vm2, %v1083_v32, %v985_v11 }
 0x181   : > { %v1322_v9 = vpop.f32.mrf.mxu2 }
 0x183   : > { %v1008_v12 = vpop.permute.xlu0 %1007 }
 0x184   : > { %v1101_v17 = vsel %vm1093_vm3, %v1092_v14, %v1008_v12  ;;  %v1342_v12 = vmul.f32 %v2229_v2, %v1319_v1 }
 0x185   : > { %v1110_v18 = vsel %vm1102_vm4, %v1101_v17, %v1019_v4 }
 0x186   : > { %v1119_v13 = vsel %vm1111_vm5, %v1110_v18, %v1032_v20  ;;  %v1066_v22 = vpop.permute.xlu1 %1065  ;;  %v1354_v18 = vadd.f32 %v2235_v3, %v1342_v12 }
 0x18b   : > { %v1055_v56 = vpop.permute.xlu0 %1054 }
 0x18c   : > { %v1128_v25 = vsel %vm1120_vm6, %v1119_v13, %v1055_v56  ;;  %v1324_v56 = vpop.f32.mrf.mxu2 }
 0x18d   : > { %v1137_v26 = vsel %vm1129_vm7, %v1128_v25, %v1066_v22  ;;  %v1343_v22 = vmul.f32 %v2229_v2, %v1322_v9 }
 0x18e   : > { %1540 = vmatmul.msk.bf16.gmra.mxu3 %vm1158_vm8, %v1137_v26 }
 0x18f   : > { %v1355_v10 = vadd.f32 %v2235_v3, %v1343_v22 }
 0x1e1   : > { %v1179_v28 = vpop.f32.mrf.mxu3 }
 0x1e2   : > { %v1203_v31 = vmul.f32 %v1649_v29, %v1179_v28 }
 0x1e4   : > { %v1215_v34 = vadd.f32 %v1650_v16, %v1203_v31  ;;  %v1327_v31 = vpop.f32.mrf.mxu2 }
 0x1e6   : > { %v1223_v36 = vmax.f32 %v1215_v34, 0.0 }
 0x1e9   : > { %v1181_v33 = vpop.f32.mrf.mxu3 }
 0x1ea   : > { %v1204_v19 = vmul.f32 %v1649_v29, %v1181_v33  ;;  %v1344_v33 = vmul.f32 %v2229_v2, %v1324_v56 }
 0x1ec   : > { %v1216_v35 = vadd.f32 %v1650_v16, %v1204_v19 }
 0x1ee   : > { %v1224_v37 = vmax.f32 %v1216_v35, 0.0  ;;  %v1356_v35 = vadd.f32 %v2235_v3, %v1344_v33 }
 0x1f0   : > { %v1231_v38 = vpack.c.bf16 %v1224_v37, %v1223_v36 }
 0x1f1   : > { %v1184_v39 = vpop.f32.mrf.mxu3 }
 0x1f2   : > { %1541 = vmatmul.msk.bf16.vlgmr.msrb.gmra.mxu1 %vm471_vm1, %v1231_v38  ;;  %v1205_v24 = vmul.f32 %v1649_v29, %v1184_v39  ;;  %v1345_v38 = vmul.f32 %v2229_v2, %v1327_v31 }
 0x1f4   : > { %v1217_v21 = vadd.f32 %v1650_v16, %v1205_v24 }
 0x1f6   : > { %v1225_v42 = vmax.f32 %v1217_v21, 0.0  ;;  %v1357_v21 = vadd.f32 %v2235_v3, %v1345_v38 }
 0x1f9   : > { %v1186_v40 = vpop.f32.mrf.mxu3 }
 0x1fa   : > { %v1206_v15 = vmul.f32 %v1649_v29, %v1186_v40  ;;  %v1329_v40 = vpop.f32.mrf.mxu2 }
 0x1fc   : > { %v1218_v41 = vadd.f32 %v1650_v16, %v1206_v15 }
 0x1fe   : > { %v1226_v43 = vmax.f32 %v1218_v41, 0.0 }
 0x200   : > { %v1232_v44 = vpack.c.bf16 %v1226_v43, %v1225_v42 }
 0x201   : > { %v1189_v45 = vpop.f32.mrf.mxu3 }
 0x202   : > { %1542 = vmatmul.msk.bf16.gmra.mxu1 %vm471_vm1, %v1232_v44  ;;  %v1207_v46 = vmul.f32 %v1649_v29, %v1189_v45  ;;  %v1346_v44 = vmul.f32 %v2229_v2, %v1329_v40 }
 0x204   : > { %v1219_v48 = vadd.f32 %v1650_v16, %v1207_v46 }
 0x206   : > { %v1227_v51 = vmax.f32 %v1219_v48, 0.0  ;;  %v1358_v48 = vadd.f32 %v2235_v3, %v1346_v44 }
 0x209   : > { %v1191_v47 = vpop.f32.mrf.mxu3 }
 0x20a   : > { %v1208_v49 = vmul.f32 %v1649_v29, %v1191_v47  ;;  %v1332_v47 = vpop.f32.mrf.mxu2 }
 0x20c   : > { %v1220_v50 = vadd.f32 %v1650_v16, %v1208_v49 }
 0x20e   : > { %v1228_v52 = vmax.f32 %v1220_v50, 0.0 }
 0x210   : > { %v1233_v53 = vpack.c.bf16 %v1228_v52, %v1227_v51  ;;  %v1347_v51 = vmul.f32 %v2229_v2, %v1332_v47 }
 0x211   : > { %v1194_v54 = vpop.f32.mrf.mxu3 }
 0x212   : > { %1543 = vmatmul.msk.bf16.gmra.mxu1 %vm471_vm1, %v1233_v53  ;;  %v1209_v57 = vmul.f32 %v1649_v29, %v1194_v54  ;;  %v1359_v54 = vadd.f32 %v2235_v3, %v1347_v51 }
 0x214   : > { %v1221_v59 = vadd.f32 %v1650_v16, %v1209_v57 }
 0x216   : > { %v1229_v62 = vmax.f32 %v1221_v59, 0.0  ;;  %v1334_v59 = vpop.f32.mrf.mxu2 }
 0x219   : > { %v1196_v58 = vpop.f32.mrf.mxu3 }
 0x21a   : > { %v1210_v60 = vmul.f32 %v1649_v29, %v1196_v58 }
 0x21c   : > { %v1222_v61 = vadd.f32 %v1650_v16, %v1210_v60 }
 0x21e   : > { %v1230_v63 = vmax.f32 %v1222_v61, 0.0 }
 0x220   : > { %v1234_v55 = vpack.c.bf16 %v1230_v63, %v1229_v62  ;;  %v1348_v62 = vmul.f32 %v2229_v2, %v1334_v59 }
 0x222   : > { %1544 = vmatmul.msk.bf16.gmra.mxu1 %vm471_vm1, %v1234_v55  ;;  %v1360_v0 = vadd.f32 %v2235_v3, %v1348_v62 }
 0x26f   : > { %v1260_v6 = vpop.f32.mrf.mxu1 }
 0x270   : > { %v1284_v23 = vmul.f32 %v2240_v30, %v1260_v6 }
 0x272   : > { %v1296_v11 = vadd.f32 %v2245_v5, %v1284_v23 }
 0x274   : > { %v1361_v32 = vadd.f32 %v1353_v8, %v1296_v11 }
 0x276   : > { %v1369_v4 = vmax.f32 %v1361_v32, 0.0 }
 0x277   : > { %v1262_v14 = vpop.f32.mrf.mxu1 }
 0x278   : > { %1377 = vst.msk [vmem:[%s2254_s20] sm:$0xff] %vm1093_vm3, %v1369_v4  ;;  %v1285_v17 = vmul.f32 %v2240_v30, %v1262_v14 }
 0x27a   : > { %v1297_v20 = vadd.f32 %v2245_v5, %v1285_v17 }
 0x27c   : > { %v1362_v13 = vadd.f32 %v1354_v18, %v1297_v20 }
 0x27e   : > { %v1370_v25 = vmax.f32 %v1362_v13, 0.0 }
 0x27f   : > { %v1265_v26 = vpop.f32.mrf.mxu1 }
 0x280   : > { %1378 = vst.msk [vmem:[%s2254_s20 + $0x8] sm:$0xff] %vm1093_vm3, %v1370_v25  ;;  %v1286_v27 = vmul.f32 %v2240_v30, %v1265_v26 }
 0x282   : > { %v1298_v28 = vadd.f32 %v2245_v5, %v1286_v27 }
 0x284   : > { %v1363_v29 = vadd.f32 %v1355_v10, %v1298_v28 }
 0x286   : > { %v1371_v16 = vmax.f32 %v1363_v29, 0.0 }
 0x287   : > { %v1267_v34 = vpop.f32.mrf.mxu1 }
 0x288   : > { %1379 = vst.msk [vmem:[%s2254_s20 + $0x10] sm:$0xff] %vm1093_vm3, %v1371_v16  ;;  %v1287_v19 = vmul.f32 %v2240_v30, %v1267_v34 }
 0x28a   : > { %v1299_v36 = vadd.f32 %v2245_v5, %v1287_v19 }
 0x28c   : > { %v1364_v37 = vadd.f32 %v1356_v35, %v1299_v36 }
 0x28e   : > { %v1372_v39 = vmax.f32 %v1364_v37, 0.0 }
 0x28f   : > { %v1270_v24 = vpop.f32.mrf.mxu1 }
 0x290   : > { %1380 = vst.msk [vmem:[%s2254_s20 + $0x18] sm:$0xff] %vm1093_vm3, %v1372_v39  ;;  %v1288_v15 = vmul.f32 %v2240_v30, %v1270_v24 }
 0x292   : > { %v1300_v41 = vadd.f32 %v2245_v5, %v1288_v15 }
 0x294   : > { %v1365_v42 = vadd.f32 %v1357_v21, %v1300_v41 }
 0x296   : > { %v1373_v43 = vmax.f32 %v1365_v42, 0.0 }
 0x297   : > { %v1272_v45 = vpop.f32.mrf.mxu1 }
 0x298   : > { %1381 = vst.msk [vmem:[%s2254_s20 + $0x20] sm:$0xff] %vm1093_vm3, %v1373_v43  ;;  %v1289_v46 = vmul.f32 %v2240_v30, %v1272_v45 }
 0x29a   : > { %v1301_v49 = vadd.f32 %v2245_v5, %v1289_v46 }
 0x29c   : > { %v1366_v50 = vadd.f32 %v1358_v48, %v1301_v49 }
 0x29e   : > { %v1374_v52 = vmax.f32 %v1366_v50, 0.0 }
 0x29f   : > { %v1275_v53 = vpop.f32.mrf.mxu1 }
 0x2a0   : > { %1382 = vst.msk [vmem:[%s2254_s20 + $0x28] sm:$0xff] %vm1093_vm3, %v1374_v52  ;;  %v1290_v57 = vmul.f32 %v2240_v30, %v1275_v53 }
 0x2a2   : > { %v1302_v58 = vadd.f32 %v2245_v5, %v1290_v57 }
 0x2a4   : > { %v1367_v60 = vadd.f32 %v1359_v54, %v1302_v58 }
 0x2a6   : > { %v1375_v61 = vmax.f32 %v1367_v60, 0.0 }
 0x2a7   : > { %v1277_v63 = vpop.f32.mrf.mxu1 }
 0x2a8   : > { %1383 = vst.msk [vmem:[%s2254_s20 + $0x30] sm:$0xff] %vm1093_vm3, %v1375_v61  ;;  %v1291_v55 = vmul.f32 %v2240_v30, %v1277_v63 }
 0x2aa   : > { %v1303_v1 = vadd.f32 %v2245_v5, %v1291_v55 }
 0x2ac   : > { %v1368_v7 = vadd.f32 %v1360_v0, %v1303_v1 }
 0x2ae   : > { %v1376_v6 = vmax.f32 %v1368_v7, 0.0 }
 0x2b0   : > { %1384 = vst.msk [vmem:[%s2254_s20 + $0x38] sm:$0xff] %vm1093_vm3, %v1376_v6 }
 0x2b1   : > { %1682 = shalt.err (!%p1679_p11)
}
 0x2b2   : > { %s1759_s16 = smov 128  }
 0x2b3   : > { %1567 = dma.vmem_to_hbm [thread:$0]  (%p1881_p3), %s1402_s23, 1024, %s1404_s24, %s1386_s25, %s1759_s16, %s1759_s16, %s1752_s30  }
 0x2b4 PF: > { %s2387_s20 = sld [smem:[#allocation6_spill]]  ;;  %p1573_p12 = scmp.ge.s32.totalorder %s1749_s15, 2 }
 0x2b6   : > { %p1570_p13 = pnand %p1573_p12, %p1890_p8 }
 0x2b8   : > { %p1571_p0 = pneg %p1570_p13 }
 0x2ba   : > { %s1418_s1 = sand.u32 1, %s2387_s20  }
 0x2bb   : > { %s1419_s14 = scalar_lea.sflag [#allocation4], %s1418_s1 }
 0x2bc   : > { %1716 = dma.done.wait (%p1571_p0), %s1419_s14, 1024  }
 0x2bd   : > { %1718 = vsyncadd (%p1571_p0), %s1419_s14, 4294966272  ;;  %s26_s15 = sadd.s32 1, %s1749_s15   ;;  %s2388_s21 = sld [smem:[#allocation11_spill]] }
 0x2be   : > { %p23_p1 = scmp.ge.s32.totalorder %s26_s15, 10   ;;  %s2389_s28 = sld [smem:[#allocation7_spill]] }
 0x2bf   : > { %s2390_s29 = sld [smem:[#allocation8_spill]]  ;;  %s2393_s25 = smov %s1725_s26 }
 0x2c0   : > { %s2391_s30 = sld [smem:[#allocation9_spill]]  ;;  %s2394_s26 = smov %s1729_s27 }
 0x2c1   : > { %s2392_s14 = sld [smem:[#allocation10_spill]]  ;;  %25 = sbr.rel (!%p23_p1) target bundleno = 7 (0x7), region = 112 }
 0x2c3   : > { %s2395_s27 = smov %s2388_s21 }
 0x2c6   :  { %1425 = vsyncpa [#allocation4], 1 }
 0x2c7   :  { %1427 = vsyncpa [#allocation4 + $0x1], 1 }

// kernel: tpu_custom_call.1
= control target key start
LH: loop header
LB: loop body
LE: loop exit
PB: predicated region body
PF: predicated region fallthrough
CT: control target
= control target key end

     0   :  { %s2873_s0 = inlined_call_operand.vmem [shape: f32[2,16,16,4], index: 0, kind: input, shape index: {}]   ;;  %s2874_s1 = inlined_call_operand.vmem [shape: bf16[4,4], index: 1, kind: input, shape index: {}]   ;;  %s2875_s2 = inlined_call_operand.vmem [shape: bf16[36,4], index: 2, kind: input, shape index: {}]   ;;  %s2876_s3 = inlined_call_operand.vmem [shape: bf16[4,16], index: 3, kind: input, shape index: {}]   ;;  %s2877_s4 = inlined_call_operand.vmem [shape: bf16[4,16], index: 4, kind: input, shape index: {}]   ;;  %s2878_s5 = inlined_call_operand.vmem [shape: f32[1,4], index: 5, kind: input, shape index: {}]   ;;  %s2879_s6 = inlined_call_operand.vmem [shape: f32[1,4], index: 6, kind: input, shape index: {}]   ;;  %s2880_s7 = inlined_call_operand.vmem [shape: f32[1,4], index: 7, kind: input, shape index: {}]   ;;  %s2881_s8 = inlined_call_operand.vmem [shape: f32[1,4], index: 8, kind: input, shape index: {}]   ;;  %s2882_s9 = inlined_call_operand.vmem [shape: f32[1,16], index: 9, kind: input, shape index: {}]   ;;  %s2883_s10 = inlined_call_operand.vmem [shape: f32[1,16], index: 10, kind: input, shape index: {}]   ;;  %s2884_s11 = inlined_call_operand.vmem [shape: f32[1,16], index: 11, kind: input, shape index: {}]   ;;  %s2885_s12 = inlined_call_operand.vmem [shape: f32[1,16], index: 12, kind: input, shape index: {}]   ;;  %s2886_s13 = inlined_call_operand.hbm [shape: f32[2,16,16,16], index: 13, kind: output, shape index: {}]  }
   0x1   :  { %2892 = sst [smem:[#allocation12_spill]] %s2874_s1 }
   0x2   :  { %18 = vsyncpa [#allocation4], 0 }
   0x3   :  { %20 = vsyncpa [#allocation4 + $0x1], 0  ;;  %s2196_s25 = smov 0   ;;  %s2198_s26 = smov 0  }
   0x4   :  { %s2200_s27 = smov 0   ;;  %s2202_s28 = smov 0  }
   0x5   :  { %s2204_s29 = smov 0   ;;  %s2206_s30 = smov 0  }
   0x6   :  { %s2208_s14 = smov 0   ;;  %s2210_s15 = smov 0  }
   0x7 LB: > { %2893 = sst [smem:[#allocation6_spill]] %s2094_s25  ;;  %s1838_s16 = sadd.s32 4294967295, %s2122_s15   ;;  %s2122_s15 = sphi %s2210_s15, %s26_s15   ;;  %s2118_s14 = sphi %s2208_s14, %s2923_s14   ;;  %s2114_s30 = sphi %s2206_s30, %s2922_s30   ;;  %s2110_s29 = sphi %s2204_s29, %s2921_s29   ;;  %s2106_s28 = sphi %s2202_s28, %s2920_s28   ;;  %s2102_s27 = sphi %s2200_s27, %s2926_s27   ;;  %s2098_s26 = sphi %s2198_s26, %s2925_s26   ;;  %s2094_s25 = sphi %s2196_s25, %s2924_s25  }
   0x8   : > { %2894 = sst [smem:[#allocation7_spill]] %s2114_s30  ;;  %s1839_s17 = sadd.s32 4294967294, %s2122_s15  }
   0x9   : > { %2895 = sst [smem:[#allocation8_spill]] %s2118_s14  ;;  %s35_s18 = sadd.s32 1, %s2114_s30 }
   0xa   : > { %p36_p0 = scmp.ge.s32.totalorder %s35_s18, 4  ;;  %s38_s19 = sadd.s32 1, %s2118_s14 }
   0xb   : > { %p335_p1 = scmp.ne.s32.totalorder %s2102_s27, %s2098_s26  ;;  %p336_p2 = scmp.eq.s32.totalorder %s1838_s16, 7 }
   0xc   : > { %s2928_s18 = smov (%p36_p0, %s35_s18), 0  ;;  %s2930_s19 = smov (!%p36_p0, %s38_s19), %s2118_s14 }
   0xd   : > { %2896 = sst [smem:[#allocation9_spill]] %s2928_s18  ;;  %s321_s20 = ssub.s32 %s2114_s30, %s2928_s18 }
   0xe   : > { %p2247_p3 = por %p336_p2, %p335_p1  ;;  %p40_p4 = scmp.ge.s32.totalorder %s2930_s19, 2 }
   0xf   : > { %p341_p5 = scmp.ne.s32.totalorder %s2098_s26, %s2094_s25  ;;  %p342_p6 = scmp.eq.s32.totalorder %s1839_s17, 7 }
  0x10   : > { %p1842_p7 = scmp.ge.s32.totalorder %s2122_s15, 1  ;;  %s2932_s19 = smov (%p40_p4, %s2930_s19), 0 }
  0x11   : > { %2898 = sst [smem:[#allocation10_spill]] %s2932_s19  ;;  %p2256_p8 = por %p342_p6, %p341_p5 }
  0x12   : > { %p404_p9 = scmp.lt.s32.totalorder %s2122_s15, 9  ;;  %s320_s23 = ssub.s32 %s2118_s14, %s2932_s19 }
  0x13   : > { %s325_s24 = sadd.s32 1, %s2102_s27  ;;  %s322_s16 = sor.u32 %s321_s20, %s320_s23 }
  0x14   : > { %p405_p10 = pnand %p1842_p7, %p404_p9  ;;  %p323_p11 = scmp.eq.s32.totalorder %s322_s16, 0 }
  0x15   : > { %s2901_s1 = sld [smem:[#allocation12_spill]] (!%p405_p10)  ;;  %p448_p12 = scmp.lt.s32.totalorder (!%p405_p10), %s2110_s29, 1 }
  0x16   : > { %s2265_s18 = scalar_select %p323_p11, %s2102_s27, %s325_s24  }
  0x17   : > { %408 = sbr.rel (%p405_p10) target bundleno = 682 (0x2aa), region = 72  ;;  %s1846_s17 = sshll.u32 (!%p405_p10), %s2106_s28, 2 }
  0x18   : > { %2900 = sst [smem:[#allocation11_spill]] %s2265_s18  ;;  %s1939_s23 = sshll.u32 (!%p405_p10), %s2106_s28, 6 }
  0x19   : > { %s1852_s24 = sadd.s32 (!%p405_p10), 4294967295, %s1846_s17  ;;  %s564_s18 = sadd.s32 (!%p405_p10), 4, %s1846_s17 }
  0x1a   : > { %p558_p13 = scmp.gt.s32.totalorder (!%p405_p10), %s1852_s24, 0  ;;  %p565_p0 = scmp.lt.s32.totalorder (!%p405_p10), %s564_s18, 15 }
  0x1b   : > { %p571_p1 = scmp.gt.s32.totalorder (!%p405_p10), %s2106_s28, 0  ;;  %p603_p2 = scmp.lt.s32.totalorder (!%p405_p10), %s2106_s28, 3 }
  0x1c   : > { %v470_v0 = vld [vmem:[%s2901_s1] sm:$0x3]  ;;  %vm484_vm0 = vcmask 1041408   ;;  %s449_s20 = scalar_select %p448_p12, %s2110_s29, 1  ;;  %vm471_vm1 = vcmask 31744   ;;  %vm635_vm2 = vcmask 24576  }
  0x1d   : > { %v486_v1 = vsel %vm484_vm0, %v470_v0, 0  ;;  %s2934_s24 = smov (!%p558_p13, %s1852_s24), 0  ;;  %s2936_s18 = smov (!%p565_p0, %s564_s18), 15  ;;  %vm636_vm3 = vsmask.f32 256  ;;  %vm698_vm8 = vcmask 27648  }
  0x1e   : > { %495 = vmatpush.bf16.msra.mxu0 %v486_v1  ;;  %583 = vmatpush.bf16.msra.mxu1 %v486_v1  ;;  %s1938_s16 = sshll.u32 %s449_s20, 8  ;;  %s1853_s1 = sshll.u32 %s2934_s24, 4  ;;  %v641_v20 = vld [vmem:[#allocation2 + $0xc] sm:$0x1]  ;;  %vm2307_vm4 = vmand %vm635_vm2, %vm636_vm3  ;;  %v638_v23 = vld [vmem:[#allocation2] sm:$0x1] }
  0x1f   : > { %615 = vmatpush.bf16.msra.mxu2 %v486_v1  ;;  %s452_s30 = scalar_lea.vmem %s2873_s0, %s1938_s16  ;;  %s1854_s19 = sshll.u32 %s2936_s18, 4  ;;  %v642_v22 = vsel %vm2307_vm4, 0, %v641_v20  ;;  %v639_v24 = vsel %vm2307_vm4, 0, %v638_v23  ;;  %vm656_vm5 = vsmask.f32 7938  ;;  %vm1092_vm12 = vcmask 1042432  }
  0x20   : > { %s2278_s14 = scalar_lea.vmem %s452_s30, %s1939_s23  ;;  %s561_s20 = scalar_lea.vmem %s452_s30, %s1853_s1  ;;  %643 = vst [vmem:[#allocation2 + $0xc] sm:$0x1] %v642_v22  ;;  %vm2316_vm6 = vmand %vm635_vm2, %vm656_vm5  ;;  %v658_v26 = vld [vmem:[#allocation2 + $0x8] sm:$0x1]  ;;  %v661_v28 = vld [vmem:[#allocation2 + $0x14] sm:$0x1] }
  0x21   : > { %v458_v2 = vld [vmem:[%s2278_s14] sm:$0xff]  ;;  %v459_v3 = vld [vmem:[%s2278_s14 + $0x8] sm:$0xff]  ;;  %v460_v8 = vld [vmem:[%s2278_s14 + $0x10] sm:$0xff]  ;;  %s568_s17 = scalar_lea.vmem %s452_s30, %s1854_s19  ;;  %640 = vst [vmem:[#allocation2] sm:$0x1] %v639_v24  ;;  %v659_v27 = vsel %vm2316_vm6, 0, %v658_v26 }
  0x22   : > { %v2282_v4 = vpack.c.bf16 %v459_v3, %v458_v2  ;;  %v562_v5 = vld [vmem:[%s561_s20] sm:$0xff]  ;;  %v563_v6 = vld [vmem:[%s561_s20 + $0x8] sm:$0xff]  ;;  %v461_v9 = vld [vmem:[%s2278_s14 + $0x18] sm:$0xff]  ;;  %660 = vst [vmem:[#allocation2 + $0x8] sm:$0x1] %v659_v27  ;;  %v662_v29 = vsel %vm2316_vm6, 0, %v661_v28 }
  0x23   : > { %v572_v7 = vpack.c.bf16 %v563_v6, %v562_v5  ;;  %v2289_v10 = vpack.c.bf16 %v461_v9, %v460_v8  ;;  %v569_v11 = vld [vmem:[%s568_s17] sm:$0xff]  ;;  %v570_v12 = vld [vmem:[%s568_s17 + $0x8] sm:$0xff]  ;;  %v464_v17 = vld [vmem:[%s2278_s14 + $0x30] sm:$0xff]  ;;  %663 = vst [vmem:[#allocation2 + $0x14] sm:$0x1] %v662_v29  ;;  %vm1093_vm13 = vcmask 1046532  }
  0x24   : > { %1848 = vmatmul.msk.bf16.vlgmr.msra.gmra.mxu0 %vm471_vm1, %v2282_v4  ;;  %v604_v13 = vpack.c.bf16 %v570_v12, %v569_v11  ;;  %v462_v14 = vld [vmem:[%s2278_s14 + $0x20] sm:$0xff]  ;;  %v463_v15 = vld [vmem:[%s2278_s14 + $0x28] sm:$0xff]  ;;  %v465_v18 = vld [vmem:[%s2278_s14 + $0x38] sm:$0xff]  ;;  %s596_s25 = scalar_select %p571_p1, 1, 0 }
  0x25   : > { %1855 = vmatmul.msk.bf16.vlgmr.msra.gmra.mxu1 %vm471_vm1, %v572_v7  ;;  %v2296_v16 = vpack.c.bf16 %v463_v15, %v462_v14  ;;  %v2302_v19 = vpack.c.bf16 %v465_v18, %v464_v17  ;;  %v1188_v30 = vld [vmem:[%s2875_s2 + $0x4] sm:$0xc]  ;;  %v644_v33 = vld [vmem:[#allocation2 + $0x18] sm:$0x1]  ;;  %v2331_v34 = vld [vmem:[%s2878_s5] ss:$0 sm:$0xff] }
  0x26   : > { %1856 = vmatmul.msk.bf16.vlgmr.msra.gmra.mxu2 %vm471_vm1, %v604_v13  ;;  %v1195_v31 = vunpack.c.l.b16 %v1188_v30  ;;  %v645_v35 = vsel %vm2307_vm4, 0, %v644_v33  ;;  %v664_v38 = vld [vmem:[#allocation2 + $0x20] sm:$0x1]  ;;  %v597_v49 = vstv %s596_s25  ;;  %v963_v54 = vld [vmem:[%s2875_s2] sm:$0xc]  ;;  %vm2371_vm9 = vmand %vm698_vm8, %vm656_vm5  ;;  %s445_s30 = sand.u32 1, %s2098_s26  }
  0x27   : > { %646 = vst [vmem:[#allocation2 + $0x18] sm:$0x1] %v645_v35  ;;  %v2339_v40 = vld [vmem:[%s2879_s6] ss:$0 sm:$0xff]  ;;  %v665_v41 = vsel %vm2316_vm6, 0, %v664_v38  ;;  %vm2351_vm7 = vcmp.eq.s32.totalorder %v597_v49, 1  ;;  %v977_v61 = vunpack.c.l.b16 %v963_v54  ;;  %vm2433_vm2 = vmor %vm1092_vm12, %vm1093_vm13 }
  0x28   : > { %v1196_v32 = vpack.c.b16 %v1195_v31, %v1195_v31  ;;  %666 = vst [vmem:[#allocation2 + $0x20] sm:$0x1] %v665_v41  ;;  %v863_v43 = vld [vmem:[%s2875_s2] sm:$0x3]  ;;  %v647_v59 = vld [vmem:[#allocation2 + $0x24] sm:$0x1] }
  0x29   : > { %v1057_v45 = vsel %vm484_vm0, %v863_v43, 0  ;;  %v1123_v60 = vld [vmem:[%s2875_s2 + $0x4] sm:$0x3]  ;;  %v648_v1 = vsel %vm2307_vm4, 0, %v647_v59  ;;  %v789_v2 = vld [vmem:[#allocation2 + $0xc] sm:$0xf]  ;;  %v978_v7 = vpack.c.b16 %v977_v61, %v977_v61 }
  0x2a   : > { %v1197_v36 = vrot.slane %v1196_v32, 2  ;;  %1066 = vmatpush.bf16.msrb.mxu1 %v1057_v45  ;;  %649 = vst [vmem:[#allocation2 + $0x24] sm:$0x1] %v648_v1  ;;  %v1149_v6 = vsel %vm484_vm0, %v1123_v60, 0  ;;  %vm676_vm10 = vsmask.f32 4368 }
  0x2b   : > { %1158 = vmatpush.bf16.msrb.mxu2 %v1149_v6  ;;  %v979_v14 = vrot.slane %v978_v7, 2  ;;  %v667_v24 = vld [vmem:[#allocation2 + $0x2c] sm:$0x1]  ;;  %v700_v27 = vld [vmem:[#allocation2] sm:$0xf]  ;;  %vm2389_vm11 = vmor %vm636_vm3, %vm676_vm10  ;;  %s1843_s20 = sshll.u32 %s445_s30, 6 }
  0x2c   : > { %v1202_v42 = vsel %vm484_vm0, %v1197_v36, 0  ;;  %v668_v33 = vsel %vm2316_vm6, 0, %v667_v24  ;;  %vm864_vm14 = vsmask.f32 3328  ;;  %vm865_vm15 = vsmask.f32 7440 }
  0x2d   : > { %1211 = vmatpush.bf16.msrb.mxu0 %v1202_v42  ;;  %v993_v26 = vsel %vm484_vm0, %v979_v14, 0  ;;  %669 = vst [vmem:[#allocation2 + $0x2c] sm:$0x1] %v668_v33  ;;  %v793_v42 = vld [vmem:[#allocation2 + $0x14] sm:$0x1]  ;;  %vm2449_vm3 = vmor %vm864_vm14, %vm865_vm15  ;;  %s2782_s19 = scalar_lea.vmem [#allocation3], %s1843_s20 }
  0x2e   : > { %1002 = vmatpush.bf16.msra.mxu3 %v993_v26  ;;  %v796_v1 = vld [vmem:[#allocation2 + $0x18] sm:$0xf]  ;;  %s628_s14 = scalar_select %p603_p2, 1, 0 }
  0x2f   : > { %s1946_s17 = sshll.u32 %s2106_s28, 3  ;;  %s1934_s1 = sshll.u32 %s2110_s29, 5 }
  0x30   : > { %s1753_s24 = sshll.u32 %s2782_s19, 4  ;;  %s1738_s25 = scalar_lea.sflag [#allocation4], %s445_s30  ;;  %s1754_s24 = int_to_ptr.vmem [resolvable:$true] %s1753_s24 }
  0x34   : > { %1849 = vmatmul.msk.bf16.gmra.mxu0 %vm471_vm1, %v2289_v10 }
  0x44   : > { %1850 = vmatmul.msk.bf16.gmra.mxu0 %vm471_vm1, %v2296_v16 }
  0x54   : > { %1851 = vmatmul.msk.bf16.gmra.mxu0 %vm471_vm1, %v2302_v19 }
  0xa1   : > { %v497_v37 = vpop.f32.mrf.mxu0 }
  0xa2   : > { %v521_v39 = vmul.f32 %v2331_v34, %v497_v37  ;;  %v585_v46 = vpop.f32.mrf.mxu1 }
  0xa3   : > { %v590_v48 = vmul.f32 %v2331_v34, %v585_v46 }
  0xa4   : > { %v533_v44 = vadd.f32 %v2339_v40, %v521_v39 }
  0xa5   : > { %v592_v51 = vadd.f32 %v2339_v40, %v590_v48 }
  0xa6   : > { %v541_v47 = vmax.f32 %v533_v44, 0.0 }
  0xa7   : > { %v594_v57 = vmax.f32 %v592_v51, 0.0 }
  0xa8   : > { %v549_v50 = vpack.c.bf16 %v541_v47, %v541_v47 }
  0xa9   : > { %v499_v53 = vpop.f32.mrf.mxu0  ;;  %v599_v63 = vsel %vm2351_vm7, %v594_v57, 0.0 }
  0xaa   : > { %v709_v55 = vshrl.u32 %v549_v50, 16  ;;  %v712_v56 = vshll.u32 %v549_v50, 16  ;;  %v522_v58 = vmul.f32 %v2331_v34, %v499_v53  ;;  %v601_v3 = vpack.c.bf16 %v599_v63, %v599_v63  ;;  %v587_v5 = vpop.f32.mrf.mxu1  ;;  %v705_v53 = vld [vmem:[#allocation2 + $0x8] sm:$0x1]  ;;  %v650_v63 = vld [vmem:[#allocation2 + $0x30] sm:$0x1] }
  0xab   : > { %v591_v11 = vmul.f32 %v2331_v34, %v587_v5 }
  0xac   : > { %v711_v62 = vrot.slane %v709_v55, 7  ;;  %v534_v0 = vadd.f32 %v2339_v40, %v522_v58  ;;  %v679_v13 = vshrl.u32 %v601_v3, 16  ;;  %v682_v17 = vshll.u32 %v601_v3, 16  ;;  %v1265_v58 = vld [vmem:[%s2875_s2 + $0x8] sm:$0x3] }
  0xad   : > { %v593_v20 = vadd.f32 %v2339_v40, %v591_v11  ;;  %v651_v3 = vsel %vm2307_vm4, 0, %v650_v63 }
  0xae   : > { %v714_v8 = vor.u32 %v712_v56, %v711_v62  ;;  %v542_v9 = vmax.f32 %v534_v0, 0.0  ;;  %v681_v22 = vrot.slane %v679_v13, 7  ;;  %v715_v35 = vrot.slane %v711_v62, 4  ;;  %652 = vst [vmem:[#allocation2 + $0x30] sm:$0x1] %v651_v3 }
  0xaf   : > { %v595_v30 = vmax.f32 %v593_v20, 0.0  ;;  %v1273_v62 = vsel %vm484_vm0, %v1265_v58, 0 }
  0xb0   : > { %v790_v15 = vsel %vm2371_vm9, %v714_v8, %v789_v2  ;;  %v550_v18 = vpack.c.bf16 %v542_v9, %v542_v9  ;;  %v684_v32 = vor.u32 %v682_v17, %v681_v22  ;;  %v685_v59 = vrot.slane %v681_v22, 4  ;;  %1282 = vmatpush.bf16.msrb.mxu3 %v1273_v62 }
  0xb1   : > { %791 = vst [vmem:[#allocation2 + $0xc] sm:$0xf] %v790_v15  ;;  %v502_v23 = vpop.f32.mrf.mxu0  ;;  %v600_v37 = vsel %vm2351_vm7, %v595_v30, 0.0 }
  0xb2   : > { %v717_v28 = vshrl.u32 %v550_v18, 16  ;;  %v720_v29 = vshll.u32 %v550_v18, 16  ;;  %v523_v31 = vmul.f32 %v2331_v34, %v502_v23  ;;  %v701_v39 = vsel %vm2371_vm9, %v684_v32, %v700_v27  ;;  %v670_v27 = vld [vmem:[#allocation2 + $0x38] sm:$0x1] }
  0xb3   : > { %v602_v43 = vpack.c.bf16 %v600_v37, %v600_v37  ;;  %702 = vst [vmem:[#allocation2] sm:$0xf] %v701_v39 }
  0xb4   : > { %v719_v36 = vrot.slane %v717_v28, 7  ;;  %v535_v38 = vadd.f32 %v2339_v40, %v523_v31  ;;  %v671_v31 = vsel %vm2316_vm6, 0, %v670_v27 }
  0xb5   : > { %v687_v47 = vshrl.u32 %v602_v43, 16  ;;  %v690_v52 = vshll.u32 %v602_v43, 16  ;;  %672 = vst [vmem:[#allocation2 + $0x38] sm:$0x1] %v671_v31 }
  0xb6   : > { %v722_v44 = vor.u32 %v720_v29, %v719_v36  ;;  %v724_v45 = vrot.slane %v719_v36, 4  ;;  %v543_v46 = vmax.f32 %v535_v38, 0.0 }
  0xb7   : > { %v689_v51 = vrot.slane %v687_v47, 7 }
  0xb8   : > { %v723_v48 = vsel %vm2389_vm11, %v715_v35, %v722_v44  ;;  %v794_v49 = vsel %vm2307_vm4, %v724_v45, %v793_v42  ;;  %v551_v50 = vpack.c.bf16 %v543_v46, %v543_v46  ;;  %v2410_v8 = vld [vmem:[#allocation2 + $0xc] sm:$0xf]  ;;  %v800_v35 = vld [vmem:[#allocation2 + $0x20] sm:$0x1] }
  0xb9   : > { %792 = vst.msk [vmem:[#allocation2 + $0x10] sm:$0xf] %vm698_vm8, %v723_v48  ;;  %v504_v54 = vpop.f32.mrf.mxu0  ;;  %v692_v60 = vor.u32 %v690_v52, %v689_v51  ;;  %v694_v61 = vrot.slane %v689_v51, 4  ;;  %v892_v20 = vshrl.u32 %v2410_v8, 16  ;;  %v895_v22 = vshll.u32 %v2410_v8, 16 }
  0xba   : > { %795 = vst [vmem:[#allocation2 + $0x14] sm:$0x1] %v794_v49  ;;  %v726_v55 = vshrl.u32 %v551_v50, 16  ;;  %v729_v56 = vshll.u32 %v551_v50, 16  ;;  %v524_v57 = vmul.f32 %v2331_v34, %v504_v54  ;;  %v845_v7 = vld [vmem:[#allocation2] sm:$0xf] }
  0xbb   : > { %v693_v5 = vsel %vm2389_vm11, %v685_v59, %v692_v60  ;;  %v706_v6 = vsel %vm2307_vm4, %v694_v61, %v705_v53  ;;  %v868_v13 = vshrl.u32 %v845_v7, 16  ;;  %v871_v14 = vshll.u32 %v845_v7, 16 }
  0xbc   : > { %v728_v0 = vrot.slane %v726_v55, 7  ;;  %v536_v2 = vadd.f32 %v2339_v40, %v524_v57  ;;  %704 = vst.msk [vmem:[#allocation2 + $0x4] sm:$0xf] %vm698_vm8, %v693_v5  ;;  %v1881_v42 = vrot.slane %v845_v7, 9  ;;  %v2427_v44 = vrot.slane %v892_v20, 4 }
  0xbd   : > { %707 = vst [vmem:[#allocation2 + $0x8] sm:$0x1] %v706_v6  ;;  %v870_v24 = vrot.slane %v868_v13, 4  ;;  %v873_v26 = vrot.slane %v871_v14, 5  ;;  %v2429_v45 = vrot.slane %v895_v22, 5 }
  0xbe   : > { %v731_v9 = vor.u32 %v729_v56, %v728_v0  ;;  %v544_v11 = vmax.f32 %v536_v2, 0.0  ;;  %v732_v32 = vrot.slane %v728_v0, 4  ;;  %v803_v22 = vld [vmem:[#allocation2 + $0x24] sm:$0xf] }
  0xbf   : > { %v874_v43 = vor.u32 %v873_v26, %v870_v24 }
  0xc0   : > { %v797_v15 = vsel %vm2371_vm9, %v731_v9, %v796_v1  ;;  %v552_v17 = vpack.c.bf16 %v544_v11, %v544_v11  ;;  %v2415_v18 = vld [vmem:[#allocation2 + $0xc] sm:$0xff] }
  0xc1   : > { %798 = vst [vmem:[#allocation2 + $0x18] sm:$0xf] %v797_v15  ;;  %v507_v23 = vpop.f32.mrf.mxu0  ;;  %1893 = vmatmul.msk.bf16.vlgmr.msrb.gmra.mxu0 %vm471_vm1, %v2415_v18  ;;  %v2425_v37 = vld [vmem:[#allocation2 + $0x10] sm:$0xf]  ;;  %v875_v9 = vrot.slane %v874_v43, 4 }
  0xc2   : > { %v734_v28 = vshrl.u32 %v552_v17, 16  ;;  %v737_v29 = vshll.u32 %v552_v17, 16  ;;  %v525_v30 = vmul.f32 %v2331_v34, %v507_v23  ;;  %v901_v55 = vshll.u32 %v2425_v37, 16  ;;  %v850_v31 = vld [vmem:[#allocation2 + $0x14] sm:$0x1] }
  0xc3   : > { %v1940_v38 = vld [vmem:[#allocation2] sm:$0xff]  ;;  %v1104_v6 = vrot.slane %v2425_v37, 5  ;;  %v905_v13 = vshrl.u32 %v2425_v37, 16 }
  0xc4   : > { %v736_v33 = vrot.slane %v734_v28, 7  ;;  %v537_v36 = vadd.f32 %v2339_v40, %v525_v30  ;;  %v846_v39 = vld [vmem:[#allocation2 + $0x4] sm:$0xf]  ;;  %v847_v49 = vld [vmem:[#allocation2 + $0x8] sm:$0x1]  ;;  %1877 = vmatmul.msk.bf16.vlgmr.msrb.gmra.mxu1 %vm471_vm1, %v1940_v38  ;;  %v2460_v27 = vrot.slane %v901_v55, 5 }
  0xc5   : > { %v1097_v51 = vrot.slane %v846_v39, 5  ;;  %v1100_v52 = vrot.slane %v847_v49, 5  ;;  %v877_v53 = vshll.u32 %v846_v39, 16  ;;  %v881_v54 = vshrl.u32 %v846_v39, 16 }
  0xc6   : > { %v739_v46 = vor.u32 %v737_v29, %v736_v33  ;;  %v741_v47 = vrot.slane %v736_v33, 4  ;;  %v545_v48 = vmax.f32 %v537_v36, 0.0  ;;  %v887_v59 = vshll.u32 %v847_v49, 16 }
  0xc7   : > { %v1098_v61 = vsel %vm2433_vm2, %v1881_v42, %v1097_v51  ;;  %v1099_v62 = vrot.slane %v1097_v51, 4  ;;  %v879_v63 = vrot.slane %v877_v53, 5  ;;  %v883_v0 = vrot.slane %v881_v54, 4 }
  0xc8   : > { %v740_v56 = vsel %vm2389_vm11, %v732_v32, %v739_v46  ;;  %v801_v57 = vsel %vm2307_vm4, %v741_v47, %v800_v35  ;;  %v553_v58 = vpack.c.bf16 %v545_v48, %v545_v48  ;;  %v1124_v17 = vunpack.c.l.b16 %v1098_v61 }
  0xc9   : > { %799 = vst.msk [vmem:[#allocation2 + $0x1c] sm:$0xf] %vm698_vm8, %v740_v56  ;;  %v509_v60 = vpop.f32.mrf.mxu0  ;;  %v1101_v7 = vsel %vm2433_vm2, %v1099_v62, %v1100_v52  ;;  %v884_v11 = vor.u32 %v883_v0, %v879_v63  ;;  %v880_v23 = vsel %vm2449_vm3, %v875_v9, %v879_v63  ;;  %v889_v26 = vrot.slane %v887_v59, 5  ;;  %v807_v56 = vld [vmem:[#allocation2 + $0x2c] sm:$0x1] }
  0xca   : > { %802 = vst [vmem:[#allocation2 + $0x20] sm:$0x1] %v801_v57  ;;  %v743_v1 = vshrl.u32 %v553_v58, 16  ;;  %v746_v2 = vshll.u32 %v553_v58, 16  ;;  %v526_v3 = vmul.f32 %v2331_v34, %v509_v60  ;;  %v1125_v20 = vunpack.c.l.b16 %v1101_v7 }
  0xcb   : > { %v885_v24 = vrot.slane %v884_v11, 4  ;;  %v1882_v33 = vrot.slane %v2410_v8, 9  ;;  %v898_v35 = vor.u32 %v2429_v45, %v2427_v44  ;;  %v907_v36 = vrot.slane %v905_v13, 4 }
  0xcc   : > { %v745_v14 = vrot.slane %v743_v1, 7  ;;  %v538_v15 = vadd.f32 %v2339_v40, %v526_v3  ;;  %v1132_v30 = vpack.c.b16 %v1125_v20, %v1124_v17  ;;  %v964_v39 = vunpack.c.l.b16 %v880_v23  ;;  %v851_v1 = vld [vmem:[#allocation2 + $0x18] sm:$0xf] }
  0xcd   : > { %v890_v32 = vsel %vm2449_vm3, %v885_v24, %v889_v26  ;;  %v1106_v47 = vrot.slane %v1104_v6, 4  ;;  %v1107_v48 = vrot.slane %v850_v31, 5  ;;  %v908_v8 = vor.u32 %v907_v36, %v2460_v27 }
  0xce   : > { %v748_v28 = vor.u32 %v746_v2, %v745_v14  ;;  %v546_v29 = vmax.f32 %v538_v15, 0.0  ;;  %1885 = vmatmul.msk.bf16.vlgmr.msrb.gmra.mxu2 %vm471_vm1, %v1132_v30  ;;  %v965_v42 = vunpack.c.l.b16 %v890_v32  ;;  %v911_v49 = vshll.u32 %v850_v31, 16  ;;  %v810_v30 = vld [vmem:[#allocation2 + $0x30] sm:$0xf] }
  0xcf   : > { %v749_v53 = vrot.slane %v745_v14, 4  ;;  %v1105_v57 = vsel %vm2433_vm2, %v1882_v33, %v1104_v6  ;;  %v899_v58 = vrot.slane %v898_v35, 4  ;;  %v909_v59 = vrot.slane %v908_v8, 4 }
  0xd0   : > { %v804_v37 = vsel %vm2371_vm9, %v748_v28, %v803_v22  ;;  %v554_v38 = vpack.c.bf16 %v546_v29, %v546_v29  ;;  %v2470_v43 = vld [vmem:[#allocation2 + $0x18] sm:$0xff]  ;;  %v972_v45 = vpack.c.b16 %v965_v42, %v964_v39  ;;  %v913_v60 = vrot.slane %v911_v49, 5 }
  0xd1   : > { %805 = vst [vmem:[#allocation2 + $0x24] sm:$0xf] %v804_v37  ;;  %v512_v46 = vpop.f32.mrf.mxu0  ;;  %1894 = vmatmul.msk.bf16.gmra.mxu0 %vm471_vm1, %v2470_v43  ;;  %v1108_v0 = vsel %vm2433_vm2, %v1106_v47, %v1107_v48  ;;  %v1126_v7 = vunpack.c.l.b16 %v1105_v57  ;;  %v852_v9 = vld [vmem:[#allocation2 + $0x1c] sm:$0xf]  ;;  %v904_v14 = vsel %vm2449_vm3, %v899_v58, %v2460_v27  ;;  %v916_v15 = vshrl.u32 %v851_v1, 16 }
  0xd2   : > { %v751_v51 = vshrl.u32 %v554_v38, 16  ;;  %v754_v44 = vshll.u32 %v554_v38, 16  ;;  %v527_v52 = vmul.f32 %v2331_v34, %v512_v46  ;;  %1857 = vmatmul.msk.bf16.vlgmr.msra.gmra.mxu3 %vm471_vm1, %v972_v45  ;;  %v1127_v13 = vunpack.c.l.b16 %v1108_v0  ;;  %v853_v37 = vld [vmem:[#allocation2 + $0x20] sm:$0x1]  ;;  %v1444_v47 = vld [vmem:[%s2875_s2 + $0xc] sm:$0xc] }
  0xd3   : > { %v919_v23 = vshll.u32 %v851_v1, 16  ;;  %v925_v24 = vshll.u32 %v852_v9, 16  ;;  %v929_v26 = vshrl.u32 %v852_v9, 16  ;;  %v966_v32 = vunpack.c.l.b16 %v904_v14 }
  0xd4   : > { %v753_v54 = vrot.slane %v751_v51, 7  ;;  %v539_v55 = vadd.f32 %v2339_v40, %v527_v52  ;;  %1878 = vmatmul.msk.bf16.gmra.mxu1 %vm471_vm1, %v2415_v18  ;;  %v914_v18 = vsel %vm2449_vm3, %v909_v59, %v913_v60  ;;  %v2496_v31 = vpack.c.b16 %v1127_v13, %v1126_v7 }
  0xd5   : > { %v967_v27 = vunpack.c.l.b16 %v914_v18  ;;  %v1111_v33 = vrot.slane %v852_v9, 5  ;;  %v918_v38 = vrot.slane %v916_v15, 4  ;;  %v921_v39 = vrot.slane %v919_v23, 5  ;;  %v1371_v18 = vld [vmem:[%s2875_s2 + $0xc] sm:$0x3] }
  0xd6   : > { %v756_v61 = vor.u32 %v754_v44, %v753_v54  ;;  %v758_v62 = vrot.slane %v753_v54, 4  ;;  %v547_v63 = vmax.f32 %v539_v55, 0.0  ;;  %v927_v42 = vrot.slane %v925_v24, 5 }
  0xd7   : > { %v931_v46 = vrot.slane %v929_v26, 4  ;;  %v1883_v51 = vrot.slane %v851_v1, 9  ;;  %v1113_v44 = vrot.slane %v1111_v33, 4  ;;  %v1114_v45 = vrot.slane %v853_v37, 5 }
  0xd8   : > { %v757_v2 = vsel %vm2389_vm11, %v749_v53, %v756_v61  ;;  %v808_v3 = vsel %vm2307_vm4, %v758_v62, %v807_v56  ;;  %v555_v6 = vpack.c.bf16 %v547_v63, %v547_v63  ;;  %v1449_v52 = vunpack.c.l.b16 %v1444_v47  ;;  %v1320_v61 = vld [vmem:[%s2875_s2 + $0x8] sm:$0xc]  ;;  %v814_v62 = vld [vmem:[#allocation2 + $0x38] sm:$0x1]  ;;  %v854_v7 = vld [vmem:[#allocation2 + $0x24] sm:$0xf] }
  0xd9   : > { %806 = vst.msk [vmem:[#allocation2 + $0x28] sm:$0xf] %vm698_vm8, %v757_v2  ;;  %v514_v11 = vpop.f32.mrf.mxu0  ;;  %v2507_v55 = vpack.c.b16 %v967_v27, %v966_v32  ;;  %v922_v56 = vor.u32 %v921_v39, %v918_v38  ;;  %v932_v57 = vor.u32 %v931_v46, %v927_v42  ;;  %v935_v58 = vshll.u32 %v853_v37, 16 }
  0xda   : > { %809 = vst [vmem:[#allocation2 + $0x2c] sm:$0x1] %v808_v3  ;;  %v760_v17 = vshrl.u32 %v555_v6, 16  ;;  %v763_v20 = vshll.u32 %v555_v6, 16  ;;  %v528_v22 = vmul.f32 %v2331_v34, %v514_v11  ;;  %v1112_v63 = vsel %vm2433_vm2, %v1883_v51, %v1111_v33 }
  0xdb   : > { %v1450_v0 = vpack.c.b16 %v1449_v52, %v1449_v52  ;;  %v1115_v3 = vsel %vm2433_vm2, %v1113_v44, %v1114_v45  ;;  %v923_v6 = vrot.slane %v922_v56, 4  ;;  %v933_v9 = vrot.slane %v932_v57, 4 }
  0xdc   : > { %v762_v28 = vrot.slane %v760_v17, 7  ;;  %v540_v29 = vadd.f32 %v2339_v40, %v528_v22  ;;  %v937_v11 = vrot.slane %v935_v58, 5  ;;  %v1325_v14 = vunpack.c.l.b16 %v1320_v61 }
  0xdd   : > { %v1451_v13 = vrot.slane %v1450_v0, 2  ;;  %v1129_v23 = vunpack.c.l.b16 %v1115_v3  ;;  %v943_v32 = vshll.u32 %v854_v7, 16 }
  0xde   : > { %v765_v35 = vor.u32 %v763_v20, %v762_v28  ;;  %v548_v36 = vmax.f32 %v540_v29, 0.0  ;;  %1886 = vmatmul.msk.bf16.gmra.mxu2 %vm471_vm1, %v2496_v31  ;;  %v766_v59 = vrot.slane %v762_v28, 4  ;;  %v1128_v20 = vunpack.c.l.b16 %v1112_v63 }
  0xdf   : > { %v1456_v24 = vsel %vm484_vm0, %v1451_v13, 0  ;;  %v1326_v26 = vpack.c.b16 %v1325_v14, %v1325_v14  ;;  %v1381_v28 = vsel %vm484_vm0, %v1371_v18, 0  ;;  %v928_v29 = vsel %vm2449_vm3, %v923_v6, %v927_v42  ;;  %v617_v18 = vpop.f32.mrf.mxu2 }
  0xe0   : > { %v811_v48 = vsel %vm2371_vm9, %v765_v35, %v810_v30  ;;  %v556_v8 = vpack.c.bf16 %v548_v36, %v548_v36  ;;  %v2505_v49 = vld [vmem:[#allocation2 + $0x24] sm:$0xff]  ;;  %v940_v30 = vshrl.u32 %v854_v7, 16  ;;  %1465 = vmatpush.bf16.msra.mxu0 %v1456_v24  ;;  %1390 = vmatpush.bf16.msra.mxu2 %v1381_v28  ;;  %v938_v27 = vsel %vm2449_vm3, %v933_v9, %v937_v11 }
  0xe1   : > { %812 = vst [vmem:[#allocation2 + $0x30] sm:$0xf] %v811_v48  ;;  %1895 = vmatmul.msk.bf16.gmra.mxu0 %vm471_vm1, %v2505_v49  ;;  %v855_v22 = vld [vmem:[#allocation2 + $0x28] sm:$0xf]  ;;  %v1327_v36 = vrot.slane %v1326_v26, 2  ;;  %v2536_v37 = vpack.c.b16 %v1129_v23, %v1128_v20  ;;  %v968_v39 = vunpack.c.l.b16 %v928_v29  ;;  %v969_v46 = vunpack.c.l.b16 %v938_v27 }
  0xe2   : > { %v768_v53 = vshrl.u32 %v556_v8, 16  ;;  %v771_v54 = vshll.u32 %v556_v8, 16  ;;  %1858 = vmatmul.msk.bf16.gmra.mxu3 %vm471_vm1, %v2507_v55  ;;  %v949_v33 = vshll.u32 %v855_v22, 16  ;;  %v953_v35 = vshrl.u32 %v855_v22, 16  ;;  %v856_v45 = vld [vmem:[#allocation2 + $0x2c] sm:$0x1] }
  0xe3   : > { %v1332_v38 = vsel %vm484_vm0, %v1327_v36, 0  ;;  %v942_v47 = vrot.slane %v940_v30, 4  ;;  %v945_v48 = vrot.slane %v943_v32, 5  ;;  %v1118_v42 = vrot.slane %v855_v22, 5 }
  0xe4   : > { %v770_v60 = vrot.slane %v768_v53, 7  ;;  %1879 = vmatmul.msk.bf16.gmra.mxu1 %vm471_vm1, %v2470_v43  ;;  %v951_v8 = vrot.slane %v949_v33, 5  ;;  %v955_v51 = vrot.slane %v953_v35, 4  ;;  %v2543_v52 = vpack.c.b16 %v969_v46, %v968_v39  ;;  %v673_v33 = vld [vmem:[#allocation2 + $0x44] sm:$0x1] }
  0xe5   : > { %1341 = vmatpush.bf16.msra.mxu1 %v1332_v38  ;;  %v1884_v53 = vrot.slane %v854_v7, 9  ;;  %v1120_v56 = vrot.slane %v1118_v42, 4  ;;  %v1121_v57 = vrot.slane %v856_v45, 5  ;;  %v629_v20 = vstv %s628_s14  ;;  %s1750_s14 = sadd.s32 %s1946_s17, %s1934_s1 }
  0xe6   : > { %v773_v1 = vor.u32 %v771_v54, %v770_v60  ;;  %v775_v2 = vrot.slane %v770_v60, 4  ;;  %v946_v54 = vor.u32 %v945_v48, %v942_v47  ;;  %v956_v58 = vor.u32 %v955_v51, %v951_v8  ;;  %v1503_v60 = vld [vmem:[%s2875_s2 + $0x10] sm:$0x3]  ;;  %s1935_s18 = sshll.u32 %s1750_s14, 3 }
  0xe7   : > { %v1511_v61 = vsel %vm484_vm0, %v1503_v60, 0  ;;  %v1122_v63 = vsel %vm2433_vm2, %v1120_v56, %v1121_v57  ;;  %vm2578_vm5 = vcmp.eq.s32.totalorder %v629_v20, 1  ;;  %v619_v46 = vpop.f32.mrf.mxu2  ;;  %v674_v47 = vsel %vm2316_vm6, 0, %v673_v33  ;;  %s1752_s23 = scalar_lea.hbm %s2886_s13, %s1935_s18  ;;  %s2048_s18 = scalar_lea.hbm %s2886_s13, 512 }
  0xe8   : > { %v774_v15 = vsel %vm2389_vm11, %v766_v59, %v773_v1  ;;  %v815_v17 = vsel %vm2307_vm4, %v775_v2, %v814_v62  ;;  %v959_v59 = vshll.u32 %v856_v45, 16  ;;  %v1119_v62 = vsel %vm2433_vm2, %v1884_v53, %v1118_v42  ;;  %1520 = vmatpush.bf16.msra.mxu3 %v1511_v61  ;;  %v2582_v28 = vld [vmem:[#allocation2 + $0x30] sm:$0xf]  ;;  %675 = vst [vmem:[#allocation2 + $0x44] sm:$0x1] %v674_v47  ;;  %s1755_s16 = sshll.u32 %s1752_s23, 4  ;;  %s1756_s16 = int_to_ptr.hbm [resolvable:$true] %s1755_s16 }
  0xe9   : > { %813 = vst.msk [vmem:[#allocation2 + $0x34] sm:$0xf] %vm698_vm8, %v774_v15  ;;  %v947_v0 = vrot.slane %v946_v54, 4  ;;  %v957_v1 = vrot.slane %v956_v58, 4  ;;  %v1130_v3 = vunpack.c.l.b16 %v1119_v62  ;;  %v1131_v6 = vunpack.c.l.b16 %v1122_v63  ;;  %v653_v15 = vld [vmem:[#allocation2 + $0x3c] sm:$0x1] }
  0xea   : > { %816 = vst [vmem:[#allocation2 + $0x38] sm:$0x1] %v815_v17  ;;  %v961_v2 = vrot.slane %v959_v59, 5  ;;  %v622_v17 = vmul.f32 %v2331_v34, %v617_v18  ;;  %v654_v22 = vsel %vm2307_vm4, 0, %v653_v15  ;;  %v1242_v32 = vshrl.u32 %v2582_v28, 16  ;;  %s2042_s20 = sshra.s32 %s1756_s16, 4  ;;  %s2043_s20 = int_to_ptr.hbm [resolvable:$true] %s2042_s20 }
  0xeb   : > { %v952_v7 = vsel %vm2449_vm3, %v947_v0, %v951_v8  ;;  %v2564_v11 = vpack.c.b16 %v1131_v6, %v1130_v3  ;;  %655 = vst [vmem:[#allocation2 + $0x3c] sm:$0x1] %v654_v22  ;;  %v1245_v35 = vshll.u32 %v2582_v28, 16  ;;  %v623_v48 = vmul.f32 %v2331_v34, %v619_v46  ;;  %s2044_s17 = scalar_lea.hbm %s2043_s20, 64  ;;  %p2049_p7 = scmp.lt.s32.totalorder %s2043_s20, %s2886_s13 }
  0xec   : > { %v962_v9 = vsel %vm2449_vm3, %v957_v1, %v961_v2  ;;  %v970_v13 = vunpack.c.l.b16 %v952_v7  ;;  %v624_v24 = vadd.f32 %v2339_v40, %v622_v17  ;;  %v1244_v8 = vrot.slane %v1242_v32, 4  ;;  %p2045_p4 = scmp.ne.s32.totalorder %s2043_s20, %s2044_s17  ;;  %p2050_p9 = scmp.lt.s32.totalorder %s2048_s18, %s2044_s17 }
  0xed   : > { %v971_v14 = vunpack.c.l.b16 %v962_v9  ;;  %v625_v51 = vadd.f32 %v2339_v40, %v623_v48  ;;  %v1247_v45 = vrot.slane %v1245_v35, 5 }
  0xee   : > { %1887 = vmatmul.msk.bf16.gmra.mxu2 %vm471_vm1, %v2536_v37  ;;  %v626_v30 = vmax.f32 %v624_v24, 0.0  ;;  %p2046_p5 = pnand %p2045_p4, %p2247_p3  ;;  %p2051_p10 = por %p2050_p9, %p2049_p7 }
  0xef   : > { %v2571_v23 = vpack.c.b16 %v971_v14, %v970_v13  ;;  %v627_v59 = vmax.f32 %v625_v51, 0.0  ;;  %v1248_v61 = vor.u32 %v1247_v45, %v1244_v8  ;;  %v842_v13 = vld [vmem:[#allocation2 + $0x44] sm:$0x1] }
  0xf0   : > { %v2541_v44 = vld [vmem:[#allocation2 + $0x30] sm:$0xff]  ;;  %v631_v27 = vsel %vm2578_vm5, %v626_v30, 0.0  ;;  %p2047_p6 = pneg %p2046_p5 }
  0xf1   : > { %1896 = vmatmul.msk.bf16.gmra.mxu0 %vm471_vm1, %v2541_v44  ;;  %v2584_v29 = vld [vmem:[#allocation2 + $0x34] sm:$0xf]  ;;  %v633_v39 = vpack.c.bf16 %v631_v27, %v631_v27  ;;  %v859_v57 = vld [vmem:[#allocation2 + $0x38] sm:$0x1]  ;;  %v632_v25 = vsel %vm2578_vm5, %v627_v59, 0.0  ;;  %v1249_v2 = vrot.slane %v1248_v61, 4 }
  0xf2   : > { %1859 = vmatmul.msk.bf16.gmra.mxu3 %vm471_vm1, %v2543_v52  ;;  %v1251_v36 = vshll.u32 %v2584_v29, 16  ;;  %v1255_v38 = vshrl.u32 %v2584_v29, 16  ;;  %v838_v58 = vld [vmem:[#allocation2 + $0x3c] sm:$0xf]  ;;  %v1261_v34 = vshll.u32 %v859_v57, 16  ;;  %v634_v63 = vpack.c.bf16 %v632_v25, %v632_v25  ;;  %p2052_p11 = pnand %p2051_p10, %p2047_p6 }
  0xf3   : > { %v818_v42 = vshrl.u32 %v633_v39, 16  ;;  %v1315_v41 = vrot.slane %v2584_v29, 5  ;;  %v1318_v46 = vrot.slane %v859_v57, 5 }
  0xf4   : > { %1880 = vmatmul.msk.bf16.gmra.mxu1 %vm471_vm1, %v2505_v49  ;;  %v1253_v53 = vrot.slane %v1251_v36, 5  ;;  %v1257_v54 = vrot.slane %v1255_v38, 4  ;;  %v826_v0 = vshrl.u32 %v634_v63, 16  ;;  %v829_v1 = vshll.u32 %v634_v63, 16 }
  0xf5   : > { %v820_v56 = vrot.slane %v818_v42, 7  ;;  %v1263_v6 = vrot.slane %v1261_v34, 5  ;;  %v1901_v38 = vrot.slane %v2582_v28, 9 }
  0xf6   : > { %v1258_v62 = vor.u32 %v1257_v54, %v1253_v53  ;;  %v828_v9 = vrot.slane %v826_v0, 7  ;;  %v1254_v12 = vsel %vm2449_vm3, %v1249_v2, %v1253_v53 }
  0xf7   : > { %v824_v7 = vrot.slane %v820_v56, 4  ;;  %v1266_v17 = vunpack.c.l.b16 %v1254_v12  ;;  %v1316_v51 = vsel %vm2433_vm2, %v1901_v38, %v1315_v41 }
  0xf8   : > { %v1259_v3 = vrot.slane %v1258_v62, 4  ;;  %v833_v14 = vrot.slane %v828_v9, 4  ;;  %v1321_v57 = vunpack.c.l.b16 %v1316_v51  ;;  %v1586_v51 = vld [vmem:[%s2876_s3] sm:$0x3] }
  0xfa   : > { %v1264_v18 = vsel %vm2449_vm3, %v1259_v3, %v1263_v6 }
  0xfb   : > { %v1267_v20 = vunpack.c.l.b16 %v1264_v18 }
  0xfd   : > { %v1268_v22 = vpack.c.b16 %v1267_v20, %v1266_v17 }
  0xfe   : > { %1888 = vmatmul.msk.bf16.gmra.mxu2 %vm471_vm1, %v2564_v11 }
 0x101   : > { %1914 = vmatmul.msk.bf16.vlgmr.msra.gmra.mxu0 %vm471_vm1, %v2543_v52 }
 0x102   : > { %1860 = vmatmul.msk.bf16.gmra.mxu3 %vm471_vm1, %v2571_v23 }
 0x104   : > { %1902 = vmatmul.msk.bf16.vlgmr.msra.gmra.mxu1 %vm471_vm1, %v2496_v31  ;;  %v821_v31 = vshll.u32 %v633_v39, 16  ;;  %v1317_v39 = vrot.slane %v1315_v41, 4 }
 0x106   : > { %v823_v60 = vor.u32 %v821_v31, %v820_v56  ;;  %v1319_v45 = vsel %vm2433_vm2, %v1317_v39, %v1318_v46 }
 0x108   : > { %v839_v40 = vsel %vm2371_vm9, %v823_v60, %v838_v58  ;;  %v1322_v58 = vunpack.c.l.b16 %v1319_v45 }
 0x109   : > { %840 = vst [vmem:[#allocation2 + $0x3c] sm:$0xf] %v839_v40 }
 0x10a   : > { %v1323_v60 = vpack.c.b16 %v1322_v58, %v1321_v57 }
 0x10e   : > { %1910 = vmatmul.msk.bf16.vlgmr.msra.gmra.mxu2 %vm471_vm1, %v2470_v43  ;;  %v831_v43 = vor.u32 %v829_v1, %v828_v9 }
 0x110   : > { %v832_v15 = vsel %vm2389_vm11, %v824_v7, %v831_v43  ;;  %v860_v24 = vld [vmem:[#allocation2 + $0x3c] sm:$0xf] }
 0x111   : > { %1915 = vmatmul.msk.bf16.gmra.mxu0 %vm471_vm1, %v2571_v23  ;;  %841 = vst.msk [vmem:[#allocation2 + $0x40] sm:$0xf] %vm698_vm8, %v832_v15  ;;  %v1421_v21 = vshrl.u32 %v860_v24, 16  ;;  %v1424_v30 = vshll.u32 %v860_v24, 16 }
 0x112   : > { %1897 = vmatmul.msk.bf16.vlgmr.msrb.gmra.mxu3 %vm471_vm1, %v2507_v55  ;;  %v843_v55 = vsel %vm2307_vm4, %v833_v14, %v842_v13 }
 0x113   : > { %844 = vst [vmem:[#allocation2 + $0x44] sm:$0x1] %v843_v55  ;;  %v1423_v33 = vrot.slane %v1421_v21, 4  ;;  %v1426_v35 = vrot.slane %v1424_v30, 5 }
 0x114   : > { %1903 = vmatmul.msk.bf16.gmra.mxu1 %vm471_vm1, %v2536_v37 }
 0x115   : > { %v1427_v47 = vor.u32 %v1426_v35, %v1423_v33 }
 0x117   : > { %v1428_v42 = vrot.slane %v1427_v47, 4 }
 0x118   : > { %v861_v26 = vld [vmem:[#allocation2 + $0x40] sm:$0xf] }
 0x119   : > { %v1430_v32 = vshll.u32 %v861_v26, 16  ;;  %v1434_v27 = vshrl.u32 %v861_v26, 16  ;;  %v1945_v25 = vld [vmem:[#allocation2 + $0x3c] sm:$0xff]  ;;  %v1498_v62 = vrot.slane %v861_v26, 5 }
 0x11b   : > { %v1432_v36 = vrot.slane %v1430_v32, 5  ;;  %v1500_v40 = vrot.slane %v1498_v62, 4 }
 0x11d   : > { %v1433_v53 = vsel %vm2449_vm3, %v1428_v42, %v1432_v36 }
 0x11e   : > { %1911 = vmatmul.msk.bf16.gmra.mxu2 %vm471_vm1, %v2505_v49  ;;  %v1436_v49 = vrot.slane %v1434_v27, 4  ;;  %v1445_v54 = vunpack.c.l.b16 %v1433_v53  ;;  %v1600_v53 = vsel %vm484_vm0, %v1586_v51, 0 }
 0x11f   : > { %1609 = vmatpush.bf16.msrb.mxu1 %v1600_v53 }
 0x120   : > { %v1437_v29 = vor.u32 %v1436_v49, %v1432_v36 }
 0x121   : > { %1916 = vmatmul.msk.bf16.gmra.mxu0 %vm471_vm1, %v1268_v22 }
 0x122   : > { %1898 = vmatmul.msk.bf16.gmra.mxu3 %vm471_vm1, %v2543_v52  ;;  %v862_v52 = vld [vmem:[#allocation2 + $0x44] sm:$0x1]  ;;  %v1438_v31 = vrot.slane %v1437_v29, 4 }
 0x123   : > { %v1440_v48 = vshll.u32 %v862_v52, 16  ;;  %v1501_v63 = vrot.slane %v862_v52, 5  ;;  %v1655_v52 = vld [vmem:[%s2877_s4] sm:$0x3] }
 0x124   : > { %1904 = vmatmul.msk.bf16.gmra.mxu1 %vm471_vm1, %v2564_v11  ;;  %v1657_v47 = vsel %vm484_vm0, %v1655_v52, 0  ;;  %vm1728_vm0 = vcmask 130048  }
 0x125   : > { %v1442_v8 = vrot.slane %v1440_v48, 5  ;;  %v1502_v2 = vsel %vm2433_vm2, %v1500_v40, %v1501_v63  ;;  %1666 = vmatpush.bf16.msrb.mxu2 %v1657_v47 }
 0x126   : > { %v1505_v7 = vunpack.c.l.b16 %v1502_v2 }
 0x127   : > { %v1443_v28 = vsel %vm2449_vm3, %v1438_v31, %v1442_v8 }
 0x128   : > { %v1446_v56 = vunpack.c.l.b16 %v1443_v28 }
 0x12a   : > { %v1447_v59 = vpack.c.b16 %v1446_v56, %v1445_v54 }
 0x12e   : > { %1912 = vmatmul.msk.bf16.gmra.mxu2 %vm471_vm1, %v2541_v44 }
 0x131   : > { %1917 = vmatmul.msk.bf16.gmra.mxu0 %vm471_vm1, %v1447_v59 }
 0x132   : > { %1899 = vmatmul.msk.bf16.gmra.mxu3 %vm471_vm1, %v2571_v23  ;;  %v1918_v23 = vrot.slane %v860_v24, 9 }
 0x134   : > { %1905 = vmatmul.msk.bf16.gmra.mxu1 %vm471_vm1, %v1323_v60  ;;  %v1499_v1 = vsel %vm2433_vm2, %v1918_v23, %v1498_v62 }
 0x135   : > { %v1504_v6 = vunpack.c.l.b16 %v1499_v1 }
 0x137   : > { %v1506_v43 = vpack.c.b16 %v1505_v7, %v1504_v6 }
 0x13e   : > { %1913 = vmatmul.msk.bf16.gmra.mxu2 %vm471_vm1, %v1945_v25  ;;  %v1213_v44 = vpop.f32.mrf.mxu0 }
 0x141   : > { %v1068_v5 = vpop.f32.mrf.mxu1 }
 0x142   : > { %1900 = vmatmul.msk.bf16.gmra.mxu3 %vm471_vm1, %v1268_v22 }
 0x146   : > { %v2652_v9 = vpop.f32.mrf.mxu0 }
 0x149   : > { %v2646_v34 = vpop.f32.mrf.mxu1 }
 0x14e   : > { %v1218_v15 = vpop.f32.mrf.mxu0  ;;  %1927 = vmatmul.msk.bf16.vlgmr.msrb.gmra.mxu2 %vm471_vm1, %v2282_v4 }
 0x151   : > { %v1160_v61 = vpop.f32.mrf.mxu2  ;;  %v1073_v12 = vpop.f32.mrf.mxu1 }
 0x152   : > { %1919 = vmatmul.msk.bf16.vlgmr.msra.gmra.mxu3 %vm471_vm1, %v2536_v37 }
 0x155   : > { %v1004_v0 = vpop.f32.mrf.mxu3 }
 0x156   : > { %v1069_v3 = vadd.f32 %v1068_v5, %v1004_v0  ;;  %v2662_v26 = vpop.f32.mrf.mxu0 }
 0x158   : > { %v1180_v13 = vadd.f32 %v1160_v61, %v1069_v3 }
 0x159   : > { %v2654_v37 = vpop.f32.mrf.mxu2  ;;  %v2658_v20 = vpop.f32.mrf.mxu1 }
 0x15a   : > { %v1233_v14 = vadd.f32 %v1213_v44, %v1180_v13 }
 0x15d   : > { %v1006_v18 = vpop.f32.mrf.mxu3 }
 0x15e   : > { %v1223_v27 = vpop.f32.mrf.mxu0  ;;  %1928 = vmatmul.msk.bf16.gmra.mxu2 %vm471_vm1, %v2289_v10  ;;  %v1071_v0 = vadd.f32 %v2646_v34, %v1006_v18 }
 0x160   : > { %v1181_v3 = vadd.f32 %v2654_v37, %v1071_v0  ;;  %v2714_v37 = vld [vmem:[%s2880_s7] ss:$0 sm:$0xff] }
 0x161   : > { %v1165_v55 = vpop.f32.mrf.mxu2  ;;  %v1078_v30 = vpop.f32.mrf.mxu1 }
 0x162   : > { %1920 = vmatmul.msk.bf16.gmra.mxu3 %vm471_vm1, %v2564_v11  ;;  %v1234_v13 = vadd.f32 %v2652_v9, %v1181_v3 }
 0x165   : > { %v1009_v17 = vpop.f32.mrf.mxu3 }
 0x166   : > { %v1074_v50 = vadd.f32 %v1073_v12, %v1009_v17  ;;  %v2673_v46 = vpop.f32.mrf.mxu0 }
 0x168   : > { %v1182_v22 = vadd.f32 %v1165_v55, %v1074_v50 }
 0x169   : > { %v2660_v41 = vpop.f32.mrf.mxu2  ;;  %v2667_v49 = vpop.f32.mrf.mxu1 }
 0x16a   : > { %v1235_v24 = vadd.f32 %v1218_v15, %v1182_v22 }
 0x16d   : > { %v2664_v21 = vpop.f32.mrf.mxu3 }
 0x16e   : > { %v1228_v45 = vpop.f32.mrf.mxu0  ;;  %1929 = vmatmul.msk.bf16.gmra.mxu2 %vm471_vm1, %v2296_v16  ;;  %v1076_v34 = vadd.f32 %v2658_v20, %v2664_v21 }
 0x170   : > { %v1183_v9 = vadd.f32 %v2660_v41, %v1076_v34 }
 0x171   : > { %v1170_v32 = vpop.f32.mrf.mxu2  ;;  %v1083_v29 = vpop.f32.mrf.mxu1 }
 0x172   : > { %1921 = vmatmul.msk.bf16.gmra.mxu3 %vm471_vm1, %v1323_v60 }
 0x175   : > { %v1014_v33 = vpop.f32.mrf.mxu3 }
 0x176   : > { %v1079_v35 = vadd.f32 %v1078_v30, %v1014_v33  ;;  %v2700_v62 = vpop.f32.mrf.mxu0  ;;  %v2721_v33 = vld [vmem:[%s2881_s8] ss:$0 sm:$0xff] }
 0x178   : > { %v1184_v11 = vadd.f32 %v1170_v32, %v1079_v35 }
 0x179   : > { %v2669_v38 = vpop.f32.mrf.mxu2  ;;  %v2692_v25 = vpop.f32.mrf.mxu1 }
 0x17a   : > { %v1237_v36 = vadd.f32 %v1223_v27, %v1184_v11  ;;  %v1236_v11 = vadd.f32 %v2662_v26, %v1183_v9 }
 0x17d   : > { %v2671_v39 = vpop.f32.mrf.mxu3 }
 0x17e   : > { %1930 = vmatmul.msk.bf16.gmra.mxu2 %vm471_vm1, %v2302_v19  ;;  %v1467_v16 = vpop.f32.mrf.mxu0 }
 0x181   : > { %v1175_v31 = vpop.f32.mrf.mxu2  ;;  %v1343_v10 = vpop.f32.mrf.mxu1 }
 0x182   : > { %1922 = vmatmul.msk.bf16.gmra.mxu3 %vm471_vm1, %v1506_v43 }
 0x185   : > { %v1019_v48 = vpop.f32.mrf.mxu3 }
 0x186   : > { %v1084_v42 = vadd.f32 %v1083_v29, %v1019_v48  ;;  %v1469_v43 = vpop.f32.mrf.mxu0 }
 0x188   : > { %v1186_v8 = vadd.f32 %v1175_v31, %v1084_v42 }
 0x189   : > { %v2698_v61 = vpop.f32.mrf.mxu2  ;;  %v1345_v2 = vpop.f32.mrf.mxu1 }
 0x18a   : > { %v1239_v28 = vadd.f32 %v1228_v45, %v1186_v8 }
 0x18d   : > { %v2686_v54 = vpop.f32.mrf.mxu3 }
 0x18e   : > { %v1472_v30 = vpop.f32.mrf.mxu0 }
 0x191   : > { %v1392_v40 = vpop.f32.mrf.mxu2  ;;  %v1348_v12 = vpop.f32.mrf.mxu1 }
 0x195   : > { %v1284_v56 = vpop.f32.mrf.mxu3 }
 0x196   : > { %v1304_v57 = vadd.f32 %v1284_v56, %v1233_v14  ;;  %v1474_v31 = vpop.f32.mrf.mxu0  ;;  %v1081_v56 = vadd.f32 %v2667_v49, %v2671_v39 }
 0x198   : > { %v1363_v19 = vadd.f32 %v1343_v10, %v1304_v57 }
 0x199   : > { %v1394_v6 = vpop.f32.mrf.mxu2  ;;  %v1350_v32 = vpop.f32.mrf.mxu1 }
 0x19a   : > { %v1412_v15 = vadd.f32 %v1392_v40, %v1363_v19 }
 0x19c   : > { %v1487_v18 = vadd.f32 %v1467_v16, %v1412_v15 }
 0x19d   : > { %v1286_v58 = vpop.f32.mrf.mxu3 }
 0x19e   : > { %v1305_v14 = vadd.f32 %v1286_v58, %v1234_v13  ;;  %v1477_v40 = vpop.f32.mrf.mxu0 }
 0x1a0   : > { %v1364_v55 = vadd.f32 %v1345_v2, %v1305_v14 }
 0x1a1   : > { %v1397_v17 = vpop.f32.mrf.mxu2  ;;  %v1353_v53 = vpop.f32.mrf.mxu1 }
 0x1a5   : > { %v1289_v4 = vpop.f32.mrf.mxu3 }
 0x1a6   : > { %v1306_v59 = vadd.f32 %v1289_v4, %v1235_v24  ;;  %v1413_v24 = vadd.f32 %v1394_v6, %v1364_v55 }
 0x1a8   : > { %v1488_v20 = vadd.f32 %v1469_v43, %v1413_v24  ;;  %v1365_v35 = vadd.f32 %v1348_v12, %v1306_v59 }
 0x1a9   : > { %v1399_v52 = vpop.f32.mrf.mxu2  ;;  %v1355_v49 = vpop.f32.mrf.mxu1 }
 0x1aa   : > { %v1414_v42 = vadd.f32 %v1397_v17, %v1365_v35  ;;  %v1479_v17 = vpop.f32.mrf.mxu0 }
 0x1ac   : > { %v1489_v57 = vadd.f32 %v1472_v30, %v1414_v42 }
 0x1ad   : > { %v1291_v60 = vpop.f32.mrf.mxu3 }
 0x1ae   : > { %v1307_v47 = vadd.f32 %v1291_v60, %v1236_v11  ;;  %v1185_v60 = vadd.f32 %v2669_v38, %v1081_v56 }
 0x1b0   : > { %v1366_v8 = vadd.f32 %v1350_v32, %v1307_v47  ;;  %v1238_v16 = vadd.f32 %v2673_v46, %v1185_v60 }
 0x1b1   : > { %v1402_v59 = vpop.f32.mrf.mxu2  ;;  %v1358_v34 = vpop.f32.mrf.mxu1 }
 0x1b2   : > { %v1415_v4 = vadd.f32 %v1399_v52, %v1366_v8 }
 0x1b4   : > { %v1490_v10 = vadd.f32 %v1474_v31, %v1415_v4 }
 0x1b5   : > { %v1294_v5 = vpop.f32.mrf.mxu3 }
 0x1b6   : > { %v2694_v44 = vadd.f32 %v1294_v5, %v1237_v36 }
 0x1b8   : > { %v1367_v0 = vadd.f32 %v1353_v53, %v2694_v44  ;;  %v1086_v44 = vadd.f32 %v2692_v25, %v2686_v54  ;;  %v1482_v25 = vpop.f32.mrf.mxu0 }
 0x1b9   : > { %v1404_v38 = vpop.f32.mrf.mxu2 }
 0x1ba   : > { %v1416_v13 = vadd.f32 %v1402_v59, %v1367_v0 }
 0x1bc   : > { %v1491_v55 = vadd.f32 %v1477_v40, %v1416_v13  ;;  %v2773_v40 = vld [vmem:[%s2883_s10] ss:$0 sm:$0xff] }
 0x1bd   : > { %v1296_v23 = vpop.f32.mrf.mxu3 }
 0x1be   : > { %v1309_v39 = vadd.f32 %v1296_v23, %v1238_v16 }
 0x1c0   : > { %v1368_v43 = vadd.f32 %v1355_v49, %v1309_v39 }
 0x1c2   : > { %v1417_v23 = vadd.f32 %v1404_v38, %v1368_v43 }
 0x1c4   : > { %v1492_v9 = vadd.f32 %v1479_v17, %v1417_v23 }
 0x1c5   : > { %v1299_v63 = vpop.f32.mrf.mxu3 }
 0x1c6   : > { %v2703_v1 = vadd.f32 %v1299_v63, %v1239_v28 }
 0x1c8   : > { %v1369_v32 = vadd.f32 %v1358_v34, %v2703_v1 }
 0x1cd   : > { %v2706_v7 = vpop.f32.mrf.mxu3 }
 0x1d5   : > { %v1522_v50 = vpop.f32.mrf.mxu3 }
 0x1d6   : > { %v1542_v22 = vadd.f32 %v1522_v50, %v1487_v18  ;;  %v1187_v18 = vadd.f32 %v2698_v61, %v1086_v44 }
 0x1d8   : > { %v1554_v27 = vmul.f32 %v2714_v37, %v1542_v22  ;;  %v1407_v22 = vpop.f32.mrf.mxu2 }
 0x1d9   : > { %v1418_v11 = vadd.f32 %v1407_v22, %v1369_v32 }
 0x1da   : > { %v1566_v29 = vadd.f32 %v2721_v33, %v1554_v27  ;;  %v1240_v27 = vadd.f32 %v2700_v62, %v1187_v18 }
 0x1db   : > { %v1493_v1 = vadd.f32 %v1482_v25, %v1418_v11 }
 0x1dc   : > { %v1574_v51 = vmax.f32 %v1566_v29, 0.0 }
 0x1dd   : > { %v1524_v21 = vpop.f32.mrf.mxu3 }
 0x1de   : > { %v1543_v36 = vadd.f32 %v1524_v21, %v1488_v20  ;;  %v1311_v20 = vadd.f32 %v2706_v7, %v1240_v27  ;;  %v1484_v7 = vpop.f32.mrf.mxu0 }
 0x1e0   : > { %v1555_v41 = vmul.f32 %v2714_v37, %v1543_v36  ;;  %v1360_v36 = vpop.f32.mrf.mxu1 }
 0x1e1   : > { %v1370_v52 = vadd.f32 %v1360_v36, %v1311_v20 }
 0x1e2   : > { %v1567_v48 = vadd.f32 %v2721_v33, %v1555_v41  ;;  %v1409_v41 = vpop.f32.mrf.mxu2 }
 0x1e3   : > { %v1419_v62 = vadd.f32 %v1409_v41, %v1370_v52 }
 0x1e4   : > { %v1575_v45 = vmax.f32 %v1567_v48, 0.0 }
 0x1e5   : > { %v1527_v28 = vpop.f32.mrf.mxu3  ;;  %v1494_v8 = vadd.f32 %v1484_v7, %v1419_v62 }
 0x1e6   : > { %v1582_v26 = vpack.c.bf16 %v1575_v45, %v1574_v51  ;;  %v1544_v58 = vadd.f32 %v1527_v28, %v1489_v57 }
 0x1e8   : > { %1923 = vmatmul.msk.bf16.vlgmr.msrb.gmra.mxu1 %vm471_vm1, %v1582_v26  ;;  %v1556_v5 = vmul.f32 %v2714_v37, %v1544_v58 }
 0x1ea   : > { %v1568_v3 = vadd.f32 %v2721_v33, %v1556_v5  ;;  %v1668_v59 = vpop.f32.mrf.mxu2  ;;  %v2757_v5 = vld [vmem:[%s2884_s11] ss:$0 sm:$0xff] }
 0x1ec   : > { %v1576_v14 = vmax.f32 %v1568_v3, 0.0 }
 0x1ed   : > { %v1529_v63 = vpop.f32.mrf.mxu3 }
 0x1ee   : > { %v1545_v2 = vadd.f32 %v1529_v63, %v1490_v10  ;;  %v1692_v10 = vmul.f32 %v2757_v5, %v1668_v59 }
 0x1f0   : > { %v1557_v6 = vmul.f32 %v2714_v37, %v1545_v2 }
 0x1f2   : > { %v1569_v19 = vadd.f32 %v2721_v33, %v1557_v6  ;;  %v1670_v60 = vpop.f32.mrf.mxu2 }
 0x1f3   : > { %v1693_v6 = vmul.f32 %v2757_v5, %v1670_v60 }
 0x1f4   : > { %v1577_v12 = vmax.f32 %v1569_v19, 0.0 }
 0x1f5   : > { %v1532_v15 = vpop.f32.mrf.mxu3 }
 0x1f6   : > { %v1583_v46 = vpack.c.bf16 %v1577_v12, %v1576_v14  ;;  %v1546_v50 = vadd.f32 %v1532_v15, %v1491_v55 }
 0x1f8   : > { %1924 = vmatmul.msk.bf16.gmra.mxu1 %vm471_vm1, %v1583_v46  ;;  %v1558_v24 = vmul.f32 %v2714_v37, %v1546_v50 }
 0x1fa   : > { %v1570_v21 = vadd.f32 %v2721_v33, %v1558_v24  ;;  %v1673_v2 = vpop.f32.mrf.mxu2 }
 0x1fb   : > { %v1694_v15 = vmul.f32 %v2757_v5, %v1673_v2 }
 0x1fc   : > { %v1578_v47 = vmax.f32 %v1570_v21, 0.0 }
 0x1fd   : > { %v1534_v30 = vpop.f32.mrf.mxu3 }
 0x1fe   : > { %v1547_v54 = vadd.f32 %v1534_v30, %v1492_v9 }
 0x200   : > { %v1559_v35 = vmul.f32 %v2714_v37, %v1547_v54 }
 0x202   : > { %v1571_v61 = vadd.f32 %v2721_v33, %v1559_v35  ;;  %v1675_v14 = vpop.f32.mrf.mxu2 }
 0x203   : > { %v1695_v22 = vmul.f32 %v2757_v5, %v1675_v14 }
 0x204   : > { %v1579_v29 = vmax.f32 %v1571_v61, 0.0 }
 0x205   : > { %v1537_v48 = vpop.f32.mrf.mxu3 }
 0x206   : > { %v1584_v42 = vpack.c.bf16 %v1579_v29, %v1578_v47  ;;  %v1548_v31 = vadd.f32 %v1537_v48, %v1493_v1 }
 0x208   : > { %1925 = vmatmul.msk.bf16.gmra.mxu1 %vm471_vm1, %v1584_v42  ;;  %v1560_v51 = vmul.f32 %v2714_v37, %v1548_v31 }
 0x20a   : > { %v1572_v28 = vadd.f32 %v2721_v33, %v1560_v51  ;;  %v1678_v34 = vpop.f32.mrf.mxu2 }
 0x20b   : > { %v1696_v54 = vmul.f32 %v2757_v5, %v1678_v34 }
 0x20c   : > { %v1580_v57 = vmax.f32 %v1572_v28, 0.0 }
 0x20d   : > { %v1539_v45 = vpop.f32.mrf.mxu3 }
 0x20e   : > { %v1549_v53 = vadd.f32 %v1539_v45, %v1494_v8 }
 0x210   : > { %v1561_v56 = vmul.f32 %v2714_v37, %v1549_v53  ;;  %v2763_v37 = vld [vmem:[%s2885_s12] ss:$0 sm:$0xff] }
 0x211   : > { %v1704_v0 = vadd.f32 %v2763_v37, %v1692_v10  ;;  %v1705_v38 = vadd.f32 %v2763_v37, %v1693_v6  ;;  %v1706_v46 = vadd.f32 %v2763_v37, %v1694_v15  ;;  %v1707_v30 = vadd.f32 %v2763_v37, %v1695_v22 }
 0x212   : > { %v1573_v26 = vadd.f32 %v2721_v33, %v1561_v56  ;;  %v2768_v33 = vld [vmem:[%s2882_s9] ss:$0 sm:$0xff]  ;;  %v1680_v21 = vpop.f32.mrf.mxu2  ;;  %v1708_v35 = vadd.f32 %v2763_v37, %v1696_v54 }
 0x213   : > { %v1697_v47 = vmul.f32 %v2757_v5, %v1680_v21 }
 0x214   : > { %v1581_v58 = vmax.f32 %v1573_v26, 0.0 }
 0x215   : > { %v1709_v1 = vadd.f32 %v2763_v37, %v1697_v47 }
 0x216   : > { %v1585_v4 = vpack.c.bf16 %v1581_v58, %v1580_v57 }
 0x218   : > { %1926 = vmatmul.msk.bf16.gmra.mxu1 %vm471_vm1, %v1585_v4 }
 0x21a   : > { %v1683_v48 = vpop.f32.mrf.mxu2 }
 0x21b   : > { %v1698_v31 = vmul.f32 %v2757_v5, %v1683_v48 }
 0x21d   : > { %v1710_v51 = vadd.f32 %v2763_v37, %v1698_v31 }
 0x222   : > { %v1685_v28 = vpop.f32.mrf.mxu2 }
 0x223   : > { %v1699_v57 = vmul.f32 %v2757_v5, %v1685_v28 }
 0x225   : > { %v1711_v59 = vadd.f32 %v2763_v37, %v1699_v57 }
 0x265   : > { %v1611_v63 = vpop.f32.mrf.mxu1 }
 0x266   : > { %v1635_v16 = vmul.f32 %v2768_v33, %v1611_v63 }
 0x268   : > { %v1647_v49 = vadd.f32 %v2773_v40, %v1635_v16 }
 0x26a   : > { %v1712_v39 = vadd.f32 %v1704_v0, %v1647_v49 }
 0x26c   : > { %v1720_v3 = vmax.f32 %v1712_v39, 0.0 }
 0x26d   : > { %v1613_v19 = vpop.f32.mrf.mxu1 }
 0x26e   : > { %1729 = vst.msk [vmem:[%s2782_s19] sm:$0xff] %vm1728_vm0, %v1720_v3  ;;  %v1636_v13 = vmul.f32 %v2768_v33, %v1613_v19 }
 0x270   : > { %v1648_v43 = vadd.f32 %v2773_v40, %v1636_v13 }
 0x272   : > { %v1713_v12 = vadd.f32 %v1705_v38, %v1648_v43 }
 0x274   : > { %v1721_v44 = vmax.f32 %v1713_v12, 0.0 }
 0x275   : > { %v1616_v55 = vpop.f32.mrf.mxu1 }
 0x276   : > { %1730 = vst.msk [vmem:[%s2782_s19 + $0x8] sm:$0xff] %vm1728_vm0, %v1721_v44  ;;  %v1637_v17 = vmul.f32 %v2768_v33, %v1616_v55 }
 0x278   : > { %v1649_v50 = vadd.f32 %v2773_v40, %v1637_v17 }
 0x27a   : > { %v1714_v23 = vadd.f32 %v1706_v46, %v1649_v50 }
 0x27c   : > { %v1722_v18 = vmax.f32 %v1714_v23, 0.0 }
 0x27d   : > { %v1618_v24 = vpop.f32.mrf.mxu1 }
 0x27e   : > { %1731 = vst.msk [vmem:[%s2782_s19 + $0x10] sm:$0xff] %vm1728_vm0, %v1722_v18  ;;  %v1638_v9 = vmul.f32 %v2768_v33, %v1618_v24 }
 0x280   : > { %v1650_v32 = vadd.f32 %v2773_v40, %v1638_v9 }
 0x282   : > { %v1715_v27 = vadd.f32 %v1707_v30, %v1650_v32 }
 0x284   : > { %v1723_v25 = vmax.f32 %v1715_v27, 0.0 }
 0x285   : > { %v1621_v20 = vpop.f32.mrf.mxu1 }
 0x286   : > { %1732 = vst.msk [vmem:[%s2782_s19 + $0x18] sm:$0xff] %vm1728_vm0, %v1723_v25  ;;  %v1639_v11 = vmul.f32 %v2768_v33, %v1621_v20 }
 0x288   : > { %v1651_v61 = vadd.f32 %v2773_v40, %v1639_v11 }
 0x28a   : > { %v1716_v36 = vadd.f32 %v1708_v35, %v1651_v61 }
 0x28c   : > { %v1724_v52 = vmax.f32 %v1716_v36, 0.0 }
 0x28d   : > { %v1623_v29 = vpop.f32.mrf.mxu1 }
 0x28e   : > { %1733 = vst.msk [vmem:[%s2782_s19 + $0x20] sm:$0xff] %vm1728_vm0, %v1724_v52  ;;  %v1640_v41 = vmul.f32 %v2768_v33, %v1623_v29 }
 0x290   : > { %v1652_v42 = vadd.f32 %v2773_v40, %v1640_v41 }
 0x292   : > { %v1717_v62 = vadd.f32 %v1709_v1, %v1652_v42 }
 0x294   : > { %v1725_v7 = vmax.f32 %v1717_v62, 0.0 }
 0x295   : > { %v1626_v8 = vpop.f32.mrf.mxu1 }
 0x296   : > { %1734 = vst.msk [vmem:[%s2782_s19 + $0x28] sm:$0xff] %vm1728_vm0, %v1725_v7  ;;  %v1641_v45 = vmul.f32 %v2768_v33, %v1626_v8 }
 0x298   : > { %v1653_v53 = vadd.f32 %v2773_v40, %v1641_v45 }
 0x29a   : > { %v1718_v56 = vadd.f32 %v1710_v51, %v1653_v53 }
 0x29c   : > { %v1726_v26 = vmax.f32 %v1718_v56, 0.0 }
 0x29d   : > { %v1628_v58 = vpop.f32.mrf.mxu1 }
 0x29e   : > { %1735 = vst.msk [vmem:[%s2782_s19 + $0x30] sm:$0xff] %vm1728_vm0, %v1726_v26  ;;  %v1642_v4 = vmul.f32 %v2768_v33, %v1628_v58 }
 0x2a0   : > { %v1654_v60 = vadd.f32 %v2773_v40, %v1642_v4 }
 0x2a2   : > { %v1719_v10 = vadd.f32 %v1711_v59, %v1654_v60 }
 0x2a4   : > { %v1727_v63 = vmax.f32 %v1719_v10, 0.0 }
 0x2a6   : > { %1736 = vst.msk [vmem:[%s2782_s19 + $0x38] sm:$0xff] %vm1728_vm0, %v1727_v63 }
 0x2a7   : > { %2055 = shalt.err (!%p2052_p11)
}
 0x2a8   : > { %s2124_s30 = smov 128   ;;  %s2125_s19 = smov 8  }
 0x2a9   : > { %1947 = dma.vmem_to_hbm [thread:$0]  (%p2247_p3), %s1754_s24, 1024, %s1756_s16, %s1738_s25, %s2124_s30, %s2124_s30, %s2125_s19  }
 0x2aa PF: > { %s2918_s23 = sld [smem:[#allocation6_spill]]  ;;  %p1953_p12 = scmp.ge.s32.totalorder %s2122_s15, 2 }
 0x2ac   : > { %p1950_p13 = pnand %p1953_p12, %p2256_p8 }
 0x2ae   : > { %p1951_p0 = pneg %p1950_p13 }
 0x2b0   : > { %s1770_s1 = sand.u32 1, %s2918_s23  }
 0x2b1   : > { %s1771_s14 = scalar_lea.sflag [#allocation4], %s1770_s1 }
 0x2b2   : > { %2089 = dma.done.wait (%p1951_p0), %s1771_s14, 1024  }
 0x2b3   : > { %2091 = vsyncadd (%p1951_p0), %s1771_s14, 4294966272  ;;  %s26_s15 = sadd.s32 1, %s2122_s15   ;;  %s2919_s20 = sld [smem:[#allocation11_spill]] }
 0x2b4   : > { %p23_p1 = scmp.ge.s32.totalorder %s26_s15, 10   ;;  %s2920_s28 = sld [smem:[#allocation7_spill]] }
 0x2b5   : > { %s2921_s29 = sld [smem:[#allocation8_spill]]  ;;  %s2924_s25 = smov %s2098_s26 }
 0x2b6   : > { %s2922_s30 = sld [smem:[#allocation9_spill]]  ;;  %s2925_s26 = smov %s2102_s27 }
 0x2b7   : > { %s2923_s14 = sld [smem:[#allocation10_spill]]  ;;  %25 = sbr.rel (!%p23_p1) target bundleno = 7 (0x7), region = 112 }
 0x2b9   : > { %s2926_s27 = smov %s2919_s20 }
 0x2bc   :  { %1777 = vsyncpa [#allocation4], 1 }
 0x2bd   :  { %1779 = vsyncpa [#allocation4 + $0x1], 1 }

</bundles_post_ra>
